<compile_context>
chip_gen: v7x
topology: tpu7x:2x2x1
jax: 0.10.0
libtpu: 0.0.40
codegen_flags: <defaults>
</compile_context>

<pallas_src>
import functools

import jax
import jax.numpy as jnp
from jax.experimental import pallas as pl
from jax.experimental.pallas import tpu as pltpu


def _round_up(x, m):
    return ((x + m - 1) // m) * m


# ----------------------------------------------------------------------------
# Fused Pallas kernel: conv1+BN+ReLU -> conv2+BN+ReLU -> (optional SE)
# ----------------------------------------------------------------------------
def _make_double_conv_kernel(H, W, Wp, Cp, lead, se_mode):
    P = (H + 2) * Wp                # flat padded grid size
    N1 = H * Wp - 2                 # contiguous slab covering every interior pixel
    A = lead + Wp + 1               # 8-aligned scratch row where the h1 slab starts
    Pt = lead + P                   # total scratch rows
    inv_hw = 1.0 / float(H * W)

    def kernel(xc_ref, mask_ref, w1_ref, sh1_ref, w2_ref, sh2_ref, *rest):
        if se_mode:
            fc1w_ref, fc1b_ref, fc2w_ref, fc2b_ref, o_ref, h1p_ref = rest
        else:
            o_ref, h1p_ref = rest

        mask = mask_ref[...]                               # (N1, 1) f32, 0 on seam columns

        # -------- conv1: ONE (N1, K1) @ (K1, Cp) bf16 matmul (taps pre-stacked in K) ------
        acc1 = jnp.dot(xc_ref[...], w1_ref[...], preferred_element_type=jnp.float32)
        # BN scale folded into w1; epilogue = shift + ReLU + seam mask (f32 on the VPU).
        h1 = jnp.maximum(acc1 + sh1_ref[...], 0.0) * mask

        # Zero-padded conv1 activation laid out on the flat padded grid (bf16, VMEM only).
        h1p_ref[0:A, :] = jnp.zeros((A, Cp), jnp.bfloat16)
        h1p_ref[A + N1:Pt, :] = jnp.zeros((Pt - A - N1, Cp), jnp.bfloat16)
        h1p_ref[A:A + N1, :] = h1.astype(jnp.bfloat16)     # 8-aligned store

        # -------- conv2: 9 shifted (N1, Cp) @ (Cp, Cp) bf16 matmuls, f32 accumulate -------
        acc2 = jnp.zeros((N1, Cp), jnp.float32)
        for kh in range(3):
            for kw in range(3):
                t = kh * 3 + kw
                s = lead + kh * Wp + kw                    # Wp % 8 == 0 => row shift aligned
                acc2 = acc2 + jnp.dot(h1p_ref[s:s + N1, :], w2_ref[t],
                                      preferred_element_type=jnp.float32)
        y = jnp.maximum(acc2 + sh2_ref[...], 0.0)

        if se_mode:
            # SE fused: seam mask (needed for a correct mean), global avg pool, FC+ReLU,
            # FC+sigmoid, channel gate — all on the conv2 tile still resident on-chip.
            y = y * mask
            pooled = jnp.sum(y, axis=0, keepdims=True) * inv_hw            # (1, Cp) f32
            hid = jnp.maximum(
                jnp.dot(pooled.astype(jnp.bfloat16), fc1w_ref[...],
                        preferred_element_type=jnp.float32) + fc1b_ref[...], 0.0)
            gate = jax.nn.sigmoid(
                jnp.dot(hid.astype(jnp.bfloat16), fc2w_ref[...],
                        preferred_element_type=jnp.float32) + fc2b_ref[...])
            y = y * gate

        o_ref[...] = y.astype(o_ref.dtype)                 # bf16, lane-dense, unmasked vst

    return kernel


# ----------------------------------------------------------------------------
# Wrapper: layout plumbing, BN folding, channel padding, pallas_call
# ----------------------------------------------------------------------------
def double_conv_forward(x_nchw, p, se_mode=False, eps=1e-5):
    N, Cin, H, W = x_nchw.shape
    Cout = p["w1"].shape[0]
    Wp = _round_up(W + 2, 8)           # padded width, multiple of 8 => aligned row shifts
    P = (H + 2) * Wp
    N1 = H * Wp - 2
    lead = (-(Wp + 1)) % 8             # extra leading scratch rows so h1 slab is 8-aligned
    Cp = _round_up(Cout, 128)          # lane-dense channel dim for MXU + output stores
    K1 = _round_up(9 * Cin, 128)       # conv1 contraction depth (9 taps stacked)

    # NCHW -> NHWC, spatial zero-pad (3x3/pad=1; extra right columns are zeros / masked).
    x = jnp.transpose(x_nchw, (0, 2, 3, 1))
    xp = jnp.pad(x, ((0, 0), (1, 1), (1, Wp - W - 1), (0, 0)))
    xp = xp.reshape(N, P, Cin)

    # Wrapper-side im2col for conv1 ONLY (Cin is tiny, so this is nearly free in HBM):
    # stack the 9 shifted taps along the channel axis -> one K>=128 MXU-filling dot.
    taps = [xp[:, kh * Wp + kw: kh * Wp + kw + N1, :]
            for kh in range(3) for kw in range(3)]
    xcol = jnp.concatenate(taps, axis=-1)                                   # (N, N1, 9*Cin)
    xcol = jnp.pad(xcol, ((0, 0), (0, 0), (0, K1 - 9 * Cin))).astype(jnp.bfloat16)

    def bn_fold(w, b, g, be, m, v):
        scale = g / jnp.sqrt(v + eps)
        shift = be + (b - m) * scale
        # (Cout, Cin, 3, 3) -> (kh, kw, Cin, Cout); fold BN scale into output columns.
        wt = jnp.transpose(w, (2, 3, 1, 0)) * scale[None, None, None, :]
        return wt, shift

    w1t, sh1v = bn_fold(p["w1"], p["b1"], p["g1"], p["be1"], p["m1"], p["v1"])
    w2t, sh2v = bn_fold(p["w2"], p["b2"], p["g2"], p["be2"], p["m2"], p["v2"])

    w1k = jnp.pad(w1t.reshape(9 * Cin, Cout),
                  ((0, K1 - 9 * Cin), (0, Cp - Cout))).astype(jnp.bfloat16)   # (K1, Cp)
    sh1 = jnp.pad(sh1v, (0, Cp - Cout)).reshape(1, Cp).astype(jnp.float32)
    w2k = jnp.pad(w2t.reshape(9, Cout, Cout),
                  ((0, 0), (0, Cp - Cout), (0, Cp - Cout))).astype(jnp.bfloat16)  # (9,Cp,Cp)
    sh2 = jnp.pad(sh2v, (0, Cp - Cout)).reshape(1, Cp).astype(jnp.float32)

    # Seam mask: zero every slab position whose column is spatial padding.
    q = jnp.arange(N1)
    col = (q + 1) % Wp
    mask = ((col >= 1) & (col <= W)).astype(jnp.float32).reshape(N1, 1)

    in_arrays = [xcol, mask, w1k, sh1, w2k, sh2]
    in_specs = [
        pl.BlockSpec((None, N1, K1), lambda n: (n, 0, 0)),
        pl.BlockSpec((N1, 1), lambda n: (0, 0)),
        pl.BlockSpec((K1, Cp), lambda n: (0, 0)),
        pl.BlockSpec((1, Cp), lambda n: (0, 0)),
        pl.BlockSpec((9, Cp, Cp), lambda n: (0, 0, 0)),
        pl.BlockSpec((1, Cp), lambda n: (0, 0)),
    ]

    if se_mode:
        Cr = p["fc1_w"].shape[0]
        Crp = _round_up(Cr, 128)
        w_fc1 = jnp.zeros((Cp, Crp), jnp.bfloat16).at[:Cout, :Cr].set(
            p["fc1_w"].T.astype(jnp.bfloat16))
        b_fc1 = jnp.zeros((1, Crp), jnp.float32).at[0, :Cr].set(p["fc1_b"])
        w_fc2 = jnp.zeros((Crp, Cp), jnp.bfloat16).at[:Cr, :Cout].set(
            p["fc2_w"].T.astype(jnp.bfloat16))
        b_fc2 = jnp.zeros((1, Cp), jnp.float32).at[0, :Cout].set(p["fc2_b"])
        in_arrays += [w_fc1, b_fc1, w_fc2, b_fc2]
        in_specs += [
            pl.BlockSpec((Cp, Crp), lambda n: (0, 0)),
            pl.BlockSpec((1, Crp), lambda n: (0, 0)),
            pl.BlockSpec((Crp, Cp), lambda n: (0, 0)),
            pl.BlockSpec((1, Cp), lambda n: (0, 0)),
        ]

    kernel = _make_double_conv_kernel(H, W, Wp, Cp, lead, se_mode)

    out_slab = pl.pallas_call(
        kernel,
        out_shape=jax.ShapeDtypeStruct((N, N1, Cp), jnp.bfloat16),
        grid_spec=pltpu.PrefetchScalarGridSpec(
            num_scalar_prefetch=0,
            grid=(N,),
            in_specs=in_specs,
            out_specs=pl.BlockSpec((None, N1, Cp), lambda n: (n, 0, 0)),
            scratch_shapes=[pltpu.VMEM((lead + P, Cp), jnp.bfloat16)],
        ),
        compiler_params=pltpu.CompilerParams(
            dimension_semantics=("parallel",),
            vmem_limit_bytes=32 * 1024 * 1024,
        ),
    )(*in_arrays)

    # Slab rows map to padded-grid rows [Wp+1, Wp+1+N1); strip seam columns & channel pad.
    # (Output stays bf16 end-to-end — half the epilogue bytes.)
    out = jnp.pad(out_slab, ((0, 0), (1, 1), (0, 0)))          # (N, H*Wp, Cp)
    out = out.reshape(N, H, Wp, Cp)[:, :, 1:W + 1, :Cout]      # (N, H, W, Cout)
    return jnp.transpose(out, (0, 3, 1, 2))                    # NHWC -> NCHW (bf16)


# ----------------------------------------------------------------------------
# Deterministic parameter init (shapes from double_conv.__init__ / SELayer.__init__)
# ----------------------------------------------------------------------------
def make_params(key, in_ch, out_ch, se_mode, reduction=16):
    ks = jax.random.split(key, 16)
    u = lambda k, s, lo, hi: jax.random.uniform(k, s, jnp.float32, lo, hi)
    p = {
        "w1": u(ks[0], (out_ch, in_ch, 3, 3), -0.2, 0.2),
        "b1": u(ks[1], (out_ch,), -0.1, 0.1),
        "g1": u(ks[2], (out_ch,), 0.8, 1.2),
        "be1": u(ks[3], (out_ch,), -0.1, 0.1),
        "m1": u(ks[4], (out_ch,), -0.1, 0.1),
        "v1": u(ks[5], (out_ch,), 0.5, 1.5),
        "w2": u(ks[6], (out_ch, out_ch, 3, 3), -0.2, 0.2),
        "b2": u(ks[7], (out_ch,), -0.1, 0.1),
        "g2": u(ks[8], (out_ch,), 0.8, 1.2),
        "be2": u(ks[9], (out_ch,), -0.1, 0.1),
        "m2": u(ks[10], (out_ch,), -0.1, 0.1),
        "v2": u(ks[11], (out_ch,), 0.5, 1.5),
    }
    if se_mode:
        cr = out_ch // reduction
        p["fc1_w"] = u(ks[12], (cr, out_ch), -0.3, 0.3)
        p["fc1_b"] = u(ks[13], (cr,), -0.1, 0.1)
        p["fc2_w"] = u(ks[14], (out_ch, cr), -0.3, 0.3)
        p["fc2_b"] = u(ks[15], (out_ch,), -0.1, 0.1)
    return p


# ----------------------------------------------------------------------------
# Plain-JAX reference (f32) for correctness checking
# ----------------------------------------------------------------------------
def _ref_conv_bn_relu(x, w, b, g, be, m, v, eps=1e-5):
    y = jax.lax.conv_general_dilated(
        x, w, window_strides=(1, 1), padding=((1, 1), (1, 1)),
        dimension_numbers=("NCHW", "OIHW", "NCHW"))
    y = y + b[None, :, None, None]
    y = (y - m[None, :, None, None]) * (g / jnp.sqrt(v + eps))[None, :, None, None] \
        + be[None, :, None, None]
    return jnp.maximum(y, 0.0)


def ref_double_conv(x, p, se_mode=False):
    y = _ref_conv_bn_relu(x, p["w1"], p["b1"], p["g1"], p["be1"], p["m1"], p["v1"])
    y = _ref_conv_bn_relu(y, p["w2"], p["b2"], p["g2"], p["be2"], p["m2"], p["v2"])
    if se_mode:
        pooled = jnp.mean(y, axis=(2, 3))                                 # (N, C)
        h = jnp.maximum(pooled @ p["fc1_w"].T + p["fc1_b"], 0.0)
        s = jax.nn.sigmoid(h @ p["fc2_w"].T + p["fc2_b"])
        y = y * s[:, :, None, None]
    return y


def _check(out, ref, name):
    err = float(jnp.max(jnp.abs(out.astype(jnp.float32) - ref)))
    # bf16 operands/activations/output across two chained convs -> relaxed tolerance.
    tol = 5e-2 * max(1.0, float(jnp.max(jnp.abs(ref))))
    assert err < tol, f"{name} mismatch: max|err|={err:.4g} tol={tol:.4g}"


# ----------------------------------------------------------------------------
if __name__ == "__main__":
    key = jax.random.PRNGKey(0)
    kx, kp1, kp2 = jax.random.split(key, 3)

    N, Cin, H, W = 2, 4, 16, 16
    x = jax.random.normal(kx, (N, Cin, H, W), jnp.float32)

    # --- SE_mode=False (module default), out_ch=8 ---
    params_a = make_params(kp1, Cin, 8, se_mode=False)
    fwd_a = jax.jit(functools.partial(double_conv_forward, se_mode=False))
    out_a = jax.block_until_ready(fwd_a(x, params_a))
    ref_a = ref_double_conv(x, params_a, se_mode=False)
    assert out_a.shape == (N, 8, H, W)
    _check(out_a, ref_a, "SE_mode=False")

    # --- SE_mode=True, out_ch=32 so channel // 16 = 2 ---
    params_b = make_params(kp2, Cin, 32, se_mode=True)
    fwd_b = jax.jit(functools.partial(double_conv_forward, se_mode=True))
    out_b = jax.block_until_ready(fwd_b(x, params_b))
    ref_b = ref_double_conv(x, params_b, se_mode=True)
    assert out_b.shape == (N, 32, H, W)
    _check(out_b, ref_b, "SE_mode=True")

    print("KERNEL_OK")
</pallas_src>

<mosaic_0001>
module attributes {stable_mosaic.version = 11 : i64} {
  func.func @kernel(%arg0: i32, %arg1: memref<1x382x128xbf16, #tpu.memory_space<vmem>>, %arg2: memref<382x1xf32, #tpu.memory_space<vmem>>, %arg3: memref<128x128xbf16, #tpu.memory_space<vmem>>, %arg4: memref<1x128xf32, #tpu.memory_space<vmem>>, %arg5: memref<9x128x128xbf16, #tpu.memory_space<vmem>>, %arg6: memref<1x128xf32, #tpu.memory_space<vmem>>, %arg7: memref<1x382x128xbf16, #tpu.memory_space<vmem>>, %arg8: memref<439x128xbf16, #tpu.memory_space<vmem>>) attributes {dimension_semantics = [#tpu.dimension_semantics<parallel>], iteration_bounds = array<i64: 2>, scalar_prefetch = 0 : i64, scratch_operands = 1 : i64, tpu.core_type = #tpu.core_type<tc>, window_params = [{transform_indices = @transform_0, window_bounds = array<i64: 1, 382, 128>}, {pipeline_mode = #tpu.pipeline_mode<synchronous>, transform_indices = @transform_1, window_bounds = array<i64: 382, 1>}, {pipeline_mode = #tpu.pipeline_mode<synchronous>, transform_indices = @transform_2, window_bounds = array<i64: 128, 128>}, {pipeline_mode = #tpu.pipeline_mode<synchronous>, transform_indices = @transform_3, window_bounds = array<i64: 1, 128>}, {pipeline_mode = #tpu.pipeline_mode<synchronous>, transform_indices = @transform_4, window_bounds = array<i64: 9, 128, 128>}, {pipeline_mode = #tpu.pipeline_mode<synchronous>, transform_indices = @transform_5, window_bounds = array<i64: 1, 128>}, {transform_indices = @transform_6, window_bounds = array<i64: 1, 382, 128>}]} {
    %c0 = arith.constant 0 : index
    %c0_0 = arith.constant 0 : index
    %0 = vector.load %arg2[%c0, %c0_0] : memref<382x1xf32, #tpu.memory_space<vmem>>, vector<382x1xf32>
    %c0_1 = arith.constant 0 : index
    %c0_2 = arith.constant 0 : index
    %c0_3 = arith.constant 0 : index
    %1 = vector.load %arg1[%c0_1, %c0_2, %c0_3] : memref<1x382x128xbf16, #tpu.memory_space<vmem>>, vector<1x382x128xbf16>
    %2 = vector.shape_cast %1 : vector<1x382x128xbf16> to vector<382x128xbf16>
    %c0_4 = arith.constant 0 : index
    %c0_5 = arith.constant 0 : index
    %3 = vector.load %arg3[%c0_4, %c0_5] : memref<128x128xbf16, #tpu.memory_space<vmem>>, vector<128x128xbf16>
    %cst = arith.constant dense<0.000000e+00> : vector<382x128xf32>
    %4 = tpu.matmul %2, %3, %cst {dimension_numbers = #tpu.dot_dimension_numbers<[1], [0], [0], [1], [0, 0, 1, 1], [], []>} : vector<382x128xbf16>, vector<128x128xbf16>, vector<382x128xf32> -> vector<382x128xf32>
    %c0_6 = arith.constant 0 : index
    %c0_7 = arith.constant 0 : index
    %5 = vector.load %arg4[%c0_6, %c0_7] : memref<1x128xf32, #tpu.memory_space<vmem>>, vector<1x128xf32>
    %6 = vector.broadcast %5 : vector<1x128xf32> to vector<382x128xf32>
    %7 = arith.addf %4, %6 : vector<382x128xf32>
    %cst_8 = arith.constant 0.000000e+00 : f32
    %8 = vector.broadcast %cst_8 : f32 to vector<382x128xf32>
    %9 = arith.maximumf %7, %8 : vector<382x128xf32>
    %10 = vector.broadcast %0 : vector<382x1xf32> to vector<382x128xf32>
    %11 = arith.mulf %9, %10 : vector<382x128xf32>
    %cst_9 = arith.constant 0.000000e+00 : bf16
    %12 = vector.broadcast %cst_9 : bf16 to vector<32x128xbf16>
    %c0_10 = arith.constant 0 : index
    %c0_11 = arith.constant 0 : index
    %13 = vector.load %arg8[%c0_10, %c0_11] : memref<439x128xbf16, #tpu.memory_space<vmem>>, vector<32x128xbf16>
    tpu.vector_store %arg8[%c0_10, %c0_11], %12 {strides = array<i32>} : memref<439x128xbf16, #tpu.memory_space<vmem>>, vector<32x128xbf16>,
    %cst_12 = arith.constant 0.000000e+00 : bf16
    %14 = vector.broadcast %cst_12 : bf16 to vector<25x128xbf16>
    %c414 = arith.constant 414 : index
    %c0_13 = arith.constant 0 : index
    %15 = vector.load %arg8[%c414, %c0_13] : memref<439x128xbf16, #tpu.memory_space<vmem>>, vector<25x128xbf16>
    tpu.vector_store %arg8[%c414, %c0_13], %14 {strides = array<i32>} : memref<439x128xbf16, #tpu.memory_space<vmem>>, vector<25x128xbf16>,
    %16 = arith.truncf %11 : vector<382x128xf32> to vector<382x128xbf16>
    %c32 = arith.constant 32 : index
    %c0_14 = arith.constant 0 : index
    %17 = vector.load %arg8[%c32, %c0_14] : memref<439x128xbf16, #tpu.memory_space<vmem>>, vector<382x128xbf16>
    tpu.vector_store %arg8[%c32, %c0_14], %16 {strides = array<i32>} : memref<439x128xbf16, #tpu.memory_space<vmem>>, vector<382x128xbf16>,
    %cst_15 = arith.constant 0.000000e+00 : f32
    %18 = vector.broadcast %cst_15 : f32 to vector<382x128xf32>
    %c7 = arith.constant 7 : index
    %c0_16 = arith.constant 0 : index
    %19 = vector.load %arg8[%c7, %c0_16] : memref<439x128xbf16, #tpu.memory_space<vmem>>, vector<382x128xbf16>
    %c0_17 = arith.constant 0 : index
    %c0_18 = arith.constant 0 : index
    %c0_19 = arith.constant 0 : index
    %20 = vector.load %arg5[%c0_17, %c0_18, %c0_19] : memref<9x128x128xbf16, #tpu.memory_space<vmem>>, vector<1x128x128xbf16>
    %21 = vector.shape_cast %20 : vector<1x128x128xbf16> to vector<128x128xbf16>
    %cst_20 = arith.constant dense<0.000000e+00> : vector<382x128xf32>
    %22 = tpu.matmul %19, %21, %cst_20 {dimension_numbers = #tpu.dot_dimension_numbers<[1], [0], [0], [1], [0, 0, 1, 1], [], []>} : vector<382x128xbf16>, vector<128x128xbf16>, vector<382x128xf32> -> vector<382x128xf32>
    %23 = arith.addf %18, %22 : vector<382x128xf32>
    %c8 = arith.constant 8 : index
    %c0_21 = arith.constant 0 : index
    %24 = vector.load %arg8[%c8, %c0_21] : memref<439x128xbf16, #tpu.memory_space<vmem>>, vector<382x128xbf16>
    %c1 = arith.constant 1 : index
    %c0_22 = arith.constant 0 : index
    %c0_23 = arith.constant 0 : index
    %25 = vector.load %arg5[%c1, %c0_22, %c0_23] : memref<9x128x128xbf16, #tpu.memory_space<vmem>>, vector<1x128x128xbf16>
    %26 = vector.shape_cast %25 : vector<1x128x128xbf16> to vector<128x128xbf16>
    %cst_24 = arith.constant dense<0.000000e+00> : vector<382x128xf32>
    %27 = tpu.matmul %24, %26, %cst_24 {dimension_numbers = #tpu.dot_dimension_numbers<[1], [0], [0], [1], [0, 0, 1, 1], [], []>} : vector<382x128xbf16>, vector<128x128xbf16>, vector<382x128xf32> -> vector<382x128xf32>
    %28 = arith.addf %23, %27 : vector<382x128xf32>
    %c9 = arith.constant 9 : index
    %c0_25 = arith.constant 0 : index
    %29 = vector.load %arg8[%c9, %c0_25] : memref<439x128xbf16, #tpu.memory_space<vmem>>, vector<382x128xbf16>
    %c2 = arith.constant 2 : index
    %c0_26 = arith.constant 0 : index
    %c0_27 = arith.constant 0 : index
    %30 = vector.load %arg5[%c2, %c0_26, %c0_27] : memref<9x128x128xbf16, #tpu.memory_space<vmem>>, vector<1x128x128xbf16>
    %31 = vector.shape_cast %30 : vector<1x128x128xbf16> to vector<128x128xbf16>
    %cst_28 = arith.constant dense<0.000000e+00> : vector<382x128xf32>
    %32 = tpu.matmul %29, %31, %cst_28 {dimension_numbers = #tpu.dot_dimension_numbers<[1], [0], [0], [1], [0, 0, 1, 1], [], []>} : vector<382x128xbf16>, vector<128x128xbf16>, vector<382x128xf32> -> vector<382x128xf32>
    %33 = arith.addf %28, %32 : vector<382x128xf32>
    %c31 = arith.constant 31 : index
    %c0_29 = arith.constant 0 : index
    %34 = vector.load %arg8[%c31, %c0_29] : memref<439x128xbf16, #tpu.memory_space<vmem>>, vector<382x128xbf16>
    %c3 = arith.constant 3 : index
    %c0_30 = arith.constant 0 : index
    %c0_31 = arith.constant 0 : index
    %35 = vector.load %arg5[%c3, %c0_30, %c0_31] : memref<9x128x128xbf16, #tpu.memory_space<vmem>>, vector<1x128x128xbf16>
    %36 = vector.shape_cast %35 : vector<1x128x128xbf16> to vector<128x128xbf16>
    %cst_32 = arith.constant dense<0.000000e+00> : vector<382x128xf32>
    %37 = tpu.matmul %34, %36, %cst_32 {dimension_numbers = #tpu.dot_dimension_numbers<[1], [0], [0], [1], [0, 0, 1, 1], [], []>} : vector<382x128xbf16>, vector<128x128xbf16>, vector<382x128xf32> -> vector<382x128xf32>
    %38 = arith.addf %33, %37 : vector<382x128xf32>
    %c32_33 = arith.constant 32 : index
    %c0_34 = arith.constant 0 : index
    %39 = vector.load %arg8[%c32_33, %c0_34] : memref<439x128xbf16, #tpu.memory_space<vmem>>, vector<382x128xbf16>
    %c4 = arith.constant 4 : index
    %c0_35 = arith.constant 0 : index
    %c0_36 = arith.constant 0 : index
    %40 = vector.load %arg5[%c4, %c0_35, %c0_36] : memref<9x128x128xbf16, #tpu.memory_space<vmem>>, vector<1x128x128xbf16>
    %41 = vector.shape_cast %40 : vector<1x128x128xbf16> to vector<128x128xbf16>
    %cst_37 = arith.constant dense<0.000000e+00> : vector<382x128xf32>
    %42 = tpu.matmul %39, %41, %cst_37 {dimension_numbers = #tpu.dot_dimension_numbers<[1], [0], [0], [1], [0, 0, 1, 1], [], []>} : vector<382x128xbf16>, vector<128x128xbf16>, vector<382x128xf32> -> vector<382x128xf32>
    %43 = arith.addf %38, %42 : vector<382x128xf32>
    %c33 = arith.constant 33 : index
    %c0_38 = arith.constant 0 : index
    %44 = vector.load %arg8[%c33, %c0_38] : memref<439x128xbf16, #tpu.memory_space<vmem>>, vector<382x128xbf16>
    %c5 = arith.constant 5 : index
    %c0_39 = arith.constant 0 : index
    %c0_40 = arith.constant 0 : index
    %45 = vector.load %arg5[%c5, %c0_39, %c0_40] : memref<9x128x128xbf16, #tpu.memory_space<vmem>>, vector<1x128x128xbf16>
    %46 = vector.shape_cast %45 : vector<1x128x128xbf16> to vector<128x128xbf16>
    %cst_41 = arith.constant dense<0.000000e+00> : vector<382x128xf32>
    %47 = tpu.matmul %44, %46, %cst_41 {dimension_numbers = #tpu.dot_dimension_numbers<[1], [0], [0], [1], [0, 0, 1, 1], [], []>} : vector<382x128xbf16>, vector<128x128xbf16>, vector<382x128xf32> -> vector<382x128xf32>
    %48 = arith.addf %43, %47 : vector<382x128xf32>
    %c55 = arith.constant 55 : index
    %c0_42 = arith.constant 0 : index
    %49 = vector.load %arg8[%c55, %c0_42] : memref<439x128xbf16, #tpu.memory_space<vmem>>, vector<382x128xbf16>
    %c6 = arith.constant 6 : index
    %c0_43 = arith.constant 0 : index
    %c0_44 = arith.constant 0 : index
    %50 = vector.load %arg5[%c6, %c0_43, %c0_44] : memref<9x128x128xbf16, #tpu.memory_space<vmem>>, vector<1x128x128xbf16>
    %51 = vector.shape_cast %50 : vector<1x128x128xbf16> to vector<128x128xbf16>
    %cst_45 = arith.constant dense<0.000000e+00> : vector<382x128xf32>
    %52 = tpu.matmul %49, %51, %cst_45 {dimension_numbers = #tpu.dot_dimension_numbers<[1], [0], [0], [1], [0, 0, 1, 1], [], []>} : vector<382x128xbf16>, vector<128x128xbf16>, vector<382x128xf32> -> vector<382x128xf32>
    %53 = arith.addf %48, %52 : vector<382x128xf32>
    %c56 = arith.constant 56 : index
    %c0_46 = arith.constant 0 : index
    %54 = vector.load %arg8[%c56, %c0_46] : memref<439x128xbf16, #tpu.memory_space<vmem>>, vector<382x128xbf16>
    %c7_47 = arith.constant 7 : index
    %c0_48 = arith.constant 0 : index
    %c0_49 = arith.constant 0 : index
    %55 = vector.load %arg5[%c7_47, %c0_48, %c0_49] : memref<9x128x128xbf16, #tpu.memory_space<vmem>>, vector<1x128x128xbf16>
    %56 = vector.shape_cast %55 : vector<1x128x128xbf16> to vector<128x128xbf16>
    %cst_50 = arith.constant dense<0.000000e+00> : vector<382x128xf32>
    %57 = tpu.matmul %54, %56, %cst_50 {dimension_numbers = #tpu.dot_dimension_numbers<[1], [0], [0], [1], [0, 0, 1, 1], [], []>} : vector<382x128xbf16>, vector<128x128xbf16>, vector<382x128xf32> -> vector<382x128xf32>
    %58 = arith.addf %53, %57 : vector<382x128xf32>
    %c57 = arith.constant 57 : index
    %c0_51 = arith.constant 0 : index
    %59 = vector.load %arg8[%c57, %c0_51] : memref<439x128xbf16, #tpu.memory_space<vmem>>, vector<382x128xbf16>
    %c8_52 = arith.constant 8 : index
    %c0_53 = arith.constant 0 : index
    %c0_54 = arith.constant 0 : index
    %60 = vector.load %arg5[%c8_52, %c0_53, %c0_54] : memref<9x128x128xbf16, #tpu.memory_space<vmem>>, vector<1x128x128xbf16>
    %61 = vector.shape_cast %60 : vector<1x128x128xbf16> to vector<128x128xbf16>
    %cst_55 = arith.constant dense<0.000000e+00> : vector<382x128xf32>
    %62 = tpu.matmul %59, %61, %cst_55 {dimension_numbers = #tpu.dot_dimension_numbers<[1], [0], [0], [1], [0, 0, 1, 1], [], []>} : vector<382x128xbf16>, vector<128x128xbf16>, vector<382x128xf32> -> vector<382x128xf32>
    %63 = arith.addf %58, %62 : vector<382x128xf32>
    %c0_56 = arith.constant 0 : index
    %c0_57 = arith.constant 0 : index
    %64 = vector.load %arg6[%c0_56, %c0_57] : memref<1x128xf32, #tpu.memory_space<vmem>>, vector<1x128xf32>
    %65 = vector.broadcast %64 : vector<1x128xf32> to vector<382x128xf32>
    %66 = arith.addf %63, %65 : vector<382x128xf32>
    %cst_58 = arith.constant 0.000000e+00 : f32
    %67 = vector.broadcast %cst_58 : f32 to vector<382x128xf32>
    %68 = arith.maximumf %66, %67 : vector<382x128xf32>
    %69 = arith.truncf %68 : vector<382x128xf32> to vector<382x128xbf16>
    %c0_59 = arith.constant 0 : index
    %c0_60 = arith.constant 0 : index
    %c0_61 = arith.constant 0 : index
    %70 = vector.load %arg7[%c0_59, %c0_60, %c0_61] : memref<1x382x128xbf16, #tpu.memory_space<vmem>>, vector<1x382x128xbf16>
    %71 = vector.shape_cast %70 : vector<1x382x128xbf16> to vector<382x128xbf16>
    %72 = vector.shape_cast %69 : vector<382x128xbf16> to vector<1x382x128xbf16>
    tpu.vector_store %arg7[%c0_59, %c0_60, %c0_61], %72 {strides = array<i32>} : memref<1x382x128xbf16, #tpu.memory_space<vmem>>, vector<1x382x128xbf16>,
    return
  }
  func.func @transform_0(%arg0: i32) -> (i32, i32, i32) {
    %c0_i32 = arith.constant 0 : i32
    %c0_i32_0 = arith.constant 0 : i32
    %c0_i32_1 = arith.constant 0 : i32
    return %arg0, %c0_i32, %c0_i32_0 : i32, i32, i32
  }
  func.func @transform_1(%arg0: i32) -> (i32, i32) {
    %c0_i32 = arith.constant 0 : i32
    %c0_i32_0 = arith.constant 0 : i32
    %c0_i32_1 = arith.constant 0 : i32
    return %c0_i32, %c0_i32_0 : i32, i32
  }
  func.func @transform_2(%arg0: i32) -> (i32, i32) {
    %c0_i32 = arith.constant 0 : i32
    %c0_i32_0 = arith.constant 0 : i32
    %c0_i32_1 = arith.constant 0 : i32
    return %c0_i32, %c0_i32_0 : i32, i32
  }
  func.func @transform_3(%arg0: i32) -> (i32, i32) {
    %c0_i32 = arith.constant 0 : i32
    %c0_i32_0 = arith.constant 0 : i32
    %c0_i32_1 = arith.constant 0 : i32
    return %c0_i32, %c0_i32_0 : i32, i32
  }
  func.func @transform_4(%arg0: i32) -> (i32, i32, i32) {
    %c0_i32 = arith.constant 0 : i32
    %c0_i32_0 = arith.constant 0 : i32
    %c0_i32_1 = arith.constant 0 : i32
    %c0_i32_2 = arith.constant 0 : i32
    return %c0_i32, %c0_i32_0, %c0_i32_1 : i32, i32, i32
  }
  func.func @transform_5(%arg0: i32) -> (i32, i32) {
    %c0_i32 = arith.constant 0 : i32
    %c0_i32_0 = arith.constant 0 : i32
    %c0_i32_1 = arith.constant 0 : i32
    return %c0_i32, %c0_i32_0 : i32, i32
  }
  func.func @transform_6(%arg0: i32) -> (i32, i32, i32) {
    %c0_i32 = arith.constant 0 : i32
    %c0_i32_0 = arith.constant 0 : i32
    %c0_i32_1 = arith.constant 0 : i32
    return %arg0, %c0_i32, %c0_i32_0 : i32, i32, i32
  }
}

</mosaic_0001>

<bundles_post_ra>
// kernel: double_conv_forward.1
= control target key start
LH: loop header
LB: loop body
LE: loop exit
PB: predicated region body
PF: predicated region fallthrough
CT: control target
= control target key end

     0   :  { %s9309_s21 = smov 0   ;;  %s11582_s0 = inlined_call_operand.vmem [shape: bf16[2,382,128], index: 0, kind: input, shape index: {}]   ;;  %s11583_s1 = inlined_call_operand.vmem [shape: f32[382,1], index: 1, kind: input, shape index: {}]   ;;  %s11584_s2 = inlined_call_operand.vmem [shape: bf16[128,128], index: 2, kind: input, shape index: {}]   ;;  %s11585_s3 = inlined_call_operand.vmem [shape: f32[1,128], index: 3, kind: input, shape index: {}]   ;;  %s11586_s4 = inlined_call_operand.vmem [shape: bf16[9,128,128], index: 4, kind: input, shape index: {}]   ;;  %s11587_s5 = inlined_call_operand.vmem [shape: f32[1,128], index: 5, kind: input, shape index: {}]   ;;  %s11588_s6 = inlined_call_operand.vmem [shape: bf16[2,382,128], index: 6, kind: output, shape index: {}]  }
   0x1 LB: > { %s6784_s22 = sadd.s32 4294967295, %s9271_s21   ;;  %p6788_p0 = scmp.ge.s32.totalorder %s9271_s21, 1  ;;  %s9271_s21 = sphi %s9309_s21, %s16_s21  }
   0x2   : > { %p212_p1 = scmp.lt.s32.totalorder %s9271_s21, 3 }
   0x4   : > { %p213_p2 = pnand %p6788_p0, %p212_p1 }
   0x6   : > { %216 = sbr.rel (%p213_p2) target bundleno = 988 (0x3dc), region = 44 }
   0xd   : > { %v9000_v0 = vld [vmem:[%s11584_s2] sm:$0xff]   ;;  %v9001_v1 = vld [vmem:[%s11584_s2 + $0x8] sm:$0xff]   ;;  %v9273_v2 = vmov 0   ;;  %p242_p3 = scmp.lt.s32.totalorder %s6784_s22, 1  ;;  %v9002_v3 = vld [vmem:[%s11584_s2 + $0x10] sm:$0xff]   ;;  %vm1132_vm2 = vcmask 1043456  }
   0xe   : > { %8998 = vset.pattern.permute.xlu0 %v9273_v2  ;;  %1129 = vst [vmem:[#allocation2 + $0xcc] sm:$0x8] %v9273_v2  ;;  %1130 = vst [vmem:[#allocation2 + $0xd0] sm:$0xf] %v9273_v2  ;;  %8999 = vset.pattern.permute.xlu1 %v9273_v2  ;;  %v253_v4 = vld [vmem:[%s11583_s1] sm:$0xff]  ;;  %v9003_v5 = vld [vmem:[%s11584_s2 + $0x18] sm:$0xff]  }
   0xf   : > { %1131 = vst [vmem:[#allocation2 + $0xd4] sm:$0xf] %v9273_v2  ;;  %1125 = vst [vmem:[#allocation2] sm:$0xf] %v9273_v2  ;;  %7964 = vmatprep.subr.bf16.mxu0 %v9000_v0  ;;  %s11984_s22 = smov (!%p242_p3, %s6784_s22), 1  ;;  %839 = vperm.xlu0 %8998, %v253_v4   ;;  %v255_v6 = vld [vmem:[%s11583_s1 + $0x10] sm:$0xff] }
  0x10   : > { %1126 = vst [vmem:[#allocation2 + $0x4] sm:$0xf] %v9273_v2  ;;  %1127 = vst [vmem:[#allocation2 + $0x8] sm:$0xf] %v9273_v2  ;;  %7965 = vmatpush3.bf16.msra.mxu0 %v9000_v0  ;;  %s8988_s29 = smul.u32 192, %s11984_s22  ;;  %v254_v7 = vld [vmem:[%s11583_s1 + $0x8] sm:$0xff]  ;;  %849 = vperm.xlu1 %8999, %v255_v6  }
  0x11   : > { %1128 = vst [vmem:[#allocation2 + $0xc] sm:$0xf] %v9273_v2  ;;  %7966 = vmatprep.subr.bf16.mxu0 %v9001_v1  ;;  %v256_v9 = vld [vmem:[%s11583_s1 + $0x18] sm:$0xff]  ;;  %v9004_v10 = vld [vmem:[%s11584_s2 + $0x20] sm:$0xff]   ;;  %v258_v12 = vld [vmem:[%s11583_s1 + $0x28] sm:$0xff] }
  0x12   : > { %s9337_s10 = scalar_lea.vmem %s11582_s0, %s8988_s29  ;;  %v257_v11 = vld [vmem:[%s11583_s1 + $0x20] sm:$0xff]  ;;  %v9005_v13 = vld [vmem:[%s11584_s2 + $0x28] sm:$0xff]   ;;  %v259_v14 = vld [vmem:[%s11583_s1 + $0x30] sm:$0xff]  ;;  %vm1904_vm0 = vsmask.f32 4352  ;;  %s11464_s20 = scalar_lea.vmem %s11588_s6, %s8988_s29 }
  0x13   : > { %v9008_v8 = vld [vmem:[%s9337_s10] sm:$0xff]   ;;  %844 = vperm.xlu0 %8998, %v254_v7   ;;  %v260_v15 = vld [vmem:[%s11583_s1 + $0x38] sm:$0xff]  ;;  %v9006_v16 = vld [vmem:[%s11584_s2 + $0x30] sm:$0xff]   ;;  %vm2447_vm1 = vsmask.f32 7424 }
  0x14   : > { %7967 = vmatpush3.bf16.msra.mxu0 %v9001_v1  ;;  %7980 = vmatprep.mubr.bf16.mxu0 %v9008_v8  ;;  %v261_v17 = vld [vmem:[%s11583_s1 + $0x40] sm:$0xff]  ;;  %v262_v18 = vld [vmem:[%s11583_s1 + $0x48] sm:$0xff]  ;;  %v9007_v19 = vld [vmem:[%s11584_s2 + $0x38] sm:$0xff]   ;;  %vm1133_vm3 = vsmask.f32 3328 }
  0x15   : > { %7968 = vmatprep.subr.bf16.mxu0 %v9002_v3  ;;  %854 = vperm.xlu1 %8999, %v256_v9   ;;  %v263_v20 = vld [vmem:[%s11583_s1 + $0x50] sm:$0xff]  ;;  %v264_v21 = vld [vmem:[%s11583_s1 + $0x58] sm:$0xff]  ;;  %v9009_v22 = vld [vmem:[%s9337_s10 + $0x8] sm:$0xff]  }
  0x16   : > { %v265_v23 = vld [vmem:[%s11583_s1 + $0x60] sm:$0xff]  ;;  %v266_v24 = vld [vmem:[%s11583_s1 + $0x68] sm:$0xff]  ;;  %v9010_v25 = vld [vmem:[%s9337_s10 + $0x10] sm:$0xff]  }
  0x17   : > { %859 = vperm.xlu0 %8998, %v257_v11   ;;  %v267_v26 = vld [vmem:[%s11583_s1 + $0x70] sm:$0xff]  ;;  %v268_v27 = vld [vmem:[%s11583_s1 + $0x78] sm:$0xff]  ;;  %v269_v28 = vld [vmem:[%s11583_s1 + $0x80] sm:$0xff] }
  0x18   : > { %7969 = vmatpush3.bf16.msra.mxu0 %v9002_v3  ;;  %v9011_v29 = vld [vmem:[%s9337_s10 + $0x18] sm:$0xff]   ;;  %v270_v30 = vld [vmem:[%s11583_s1 + $0x88] sm:$0xff]  ;;  %v9012_v31 = vld [vmem:[%s9337_s10 + $0x20] sm:$0xff]  }
  0x19   : > { %7970 = vmatprep.subr.bf16.mxu0 %v9003_v5  ;;  %864 = vperm.xlu1 %8999, %v258_v12   ;;  %v271_v32 = vld [vmem:[%s11583_s1 + $0x90] sm:$0xff]  ;;  %v272_v33 = vld [vmem:[%s11583_s1 + $0x98] sm:$0xff]  ;;  %v9013_v34 = vld [vmem:[%s9337_s10 + $0x28] sm:$0xff]  }
  0x1a   : > { %v273_v35 = vld [vmem:[%s11583_s1 + $0xa0] sm:$0xff]  ;;  %v9014_v36 = vld [vmem:[%s9337_s10 + $0x30] sm:$0xff]   ;;  %v274_v37 = vld [vmem:[%s11583_s1 + $0xa8] sm:$0xff] }
  0x1b   : > { %869 = vperm.xlu0 %8998, %v259_v14   ;;  %v275_v38 = vld [vmem:[%s11583_s1 + $0xb0] sm:$0xff]  ;;  %v276_v39 = vld [vmem:[%s11583_s1 + $0xb8] sm:$0xff]  ;;  %v277_v40 = vld [vmem:[%s11583_s1 + $0xc0] sm:$0xff] }
  0x1c   : > { %7971 = vmatpush3.bf16.msra.mxu0 %v9003_v5  ;;  %v9015_v41 = vld [vmem:[%s9337_s10 + $0x38] sm:$0xff]   ;;  %v278_v42 = vld [vmem:[%s11583_s1 + $0xc8] sm:$0xff]  ;;  %v9016_v43 = vld [vmem:[%s9337_s10 + $0x40] sm:$0xff]  }
  0x1d   : > { %7972 = vmatprep.subr.bf16.mxu0 %v9004_v10  ;;  %874 = vperm.xlu1 %8999, %v260_v15   ;;  %v279_v44 = vld [vmem:[%s11583_s1 + $0xd0] sm:$0xff]  ;;  %v280_v45 = vld [vmem:[%s11583_s1 + $0xd8] sm:$0xff]  ;;  %v281_v46 = vld [vmem:[%s11583_s1 + $0xe0] sm:$0xff] }
  0x1e   : > { %v9017_v47 = vld [vmem:[%s9337_s10 + $0x48] sm:$0xff]   ;;  %v9018_v49 = vld [vmem:[%s9337_s10 + $0x50] sm:$0xff]   ;;  %v284_v51 = vld [vmem:[%s11583_s1 + $0xf8] sm:$0xff] }
  0x1f   : > { %879 = vperm.xlu0 %8998, %v261_v17   ;;  %v282_v48 = vld [vmem:[%s11583_s1 + $0xe8] sm:$0xff]  ;;  %v283_v50 = vld [vmem:[%s11583_s1 + $0xf0] sm:$0xff]  ;;  %v285_v52 = vld [vmem:[%s11583_s1 + $0x100] sm:$0xff] }
  0x20   : > { %7973 = vmatpush3.bf16.msra.mxu0 %v9004_v10  ;;  %v9019_v53 = vld [vmem:[%s9337_s10 + $0x58] sm:$0xff]   ;;  %v286_v54 = vld [vmem:[%s11583_s1 + $0x108] sm:$0xff]  ;;  %v9020_v55 = vld [vmem:[%s9337_s10 + $0x60] sm:$0xff]  }
  0x21   : > { %7974 = vmatprep.subr.bf16.mxu0 %v9005_v13  ;;  %884 = vperm.xlu1 %8999, %v262_v18   ;;  %v287_v56 = vld [vmem:[%s11583_s1 + $0x110] sm:$0xff]  ;;  %v288_v57 = vld [vmem:[%s11583_s1 + $0x118] sm:$0xff]  ;;  %v289_v58 = vld [vmem:[%s11583_s1 + $0x120] sm:$0xff] }
  0x22   : > { %v9021_v59 = vld [vmem:[%s9337_s10 + $0x68] sm:$0xff]   ;;  %v9022_v61 = vld [vmem:[%s9337_s10 + $0x70] sm:$0xff]   ;;  %v292_v63 = vld [vmem:[%s11583_s1 + $0x138] sm:$0xff] }
  0x23   : > { %889 = vperm.xlu0 %8998, %v263_v20   ;;  %v290_v60 = vld [vmem:[%s11583_s1 + $0x128] sm:$0xff]  ;;  %v291_v62 = vld [vmem:[%s11583_s1 + $0x130] sm:$0xff]  ;;  %v293_v0 = vld [vmem:[%s11583_s1 + $0x140] sm:$0xff] }
  0x24   : > { %7975 = vmatpush3.bf16.msra.mxu0 %v9005_v13  ;;  %v9023_v1 = vld [vmem:[%s9337_s10 + $0x78] sm:$0xff]   ;;  %v294_v2 = vld [vmem:[%s11583_s1 + $0x148] sm:$0xff]  ;;  %v9032_v3 = vld [vmem:[%s11586_s4 + $0x40] sm:$0xff]  }
  0x25   : > { %7976 = vmatprep.subr.bf16.mxu0 %v9006_v16  ;;  %894 = vperm.xlu1 %8999, %v264_v21   ;;  %v9033_v4 = vld [vmem:[%s11586_s4 + $0x100] sm:$0xff]   ;;  %v295_v6 = vld [vmem:[%s11583_s1 + $0x150] sm:$0xff]  ;;  %v296_v7 = vld [vmem:[%s11583_s1 + $0x158] sm:$0xff] }
  0x26   : > { %v9024_v5 = vld [vmem:[%s9337_s10 + $0x80] sm:$0xff]   ;;  %8284 = vmatprep.subr.bf16.mxu1 %v9033_v4  ;;  %v9034_v8 = vld [vmem:[%s11586_s4 + $0x48] sm:$0xff]   ;;  %v9036_v13 = vld [vmem:[%s11586_s4 + $0x50] sm:$0xff]  }
  0x27   : > { %899 = vperm.xlu0 %8998, %v265_v23   ;;  %8285 = vmatpush3.bf16.msra.mxu1 %v9033_v4  ;;  %v9035_v9 = vld [vmem:[%s11586_s4 + $0x108] sm:$0xff]   ;;  %v297_v10 = vld [vmem:[%s11583_s1 + $0x160] sm:$0xff]  ;;  %v9037_v14 = vld [vmem:[%s11586_s4 + $0x110] sm:$0xff]  }
  0x28   : > { %7977 = vmatpush3.bf16.msra.mxu0 %v9006_v16  ;;  %8286 = vmatprep.subr.bf16.mxu1 %v9035_v9  ;;  %v9025_v11 = vld [vmem:[%s9337_s10 + $0x88] sm:$0xff]   ;;  %v9026_v15 = vld [vmem:[%s9337_s10 + $0x90] sm:$0xff]   ;;  %v300_v17 = vld [vmem:[%s11583_s1 + $0x178] sm:$0x3f] }
  0x29   : > { %7978 = vmatprep.subr.bf16.mxu0 %v9007_v19  ;;  %904 = vperm.xlu1 %8999, %v266_v24   ;;  %v298_v12 = vld [vmem:[%s11583_s1 + $0x168] sm:$0xff]  ;;  %v299_v16 = vld [vmem:[%s11583_s1 + $0x170] sm:$0xff]  ;;  %v9027_v18 = vld [vmem:[%s9337_s10 + $0x98] sm:$0xff]  }
  0x2a   : > { %v9029_v20 = vld [vmem:[%s9337_s10 + $0xa8] sm:$0xff]   ;;  %v9030_v21 = vld [vmem:[%s9337_s10 + $0xb0] sm:$0xff]   ;;  %v9031_v23 = vld [vmem:[%s9337_s10 + $0xb8] sm:$0x7f]  }
  0x2b   : > { %909 = vperm.xlu0 %8998, %v267_v26   ;;  %8287 = vmatpush3.bf16.msra.mxu1 %v9035_v9  ;;  %v9039_v24 = vld [vmem:[%s11586_s4 + $0x118] sm:$0xff]   ;;  %v9041_v26 = vld [vmem:[%s11586_s4 + $0x120] sm:$0xff]   ;;  %vm1134_vm4 = vmand %vm1132_vm2, %vm1133_vm3 }
  0x2c   : > { %7979 = vmatpush3.bf16.msra.mxu0 %v9007_v19  ;;  %8288 = vmatprep.subr.bf16.mxu1 %v9037_v14  ;;  %v9028_v19 = vld [vmem:[%s9337_s10 + $0xa0] sm:$0xff]  }
  0x2d   : > { %914 = vperm.xlu1 %8999, %v268_v27   ;;  %8028 = vmatprep.subr.bf16.mxu0 %v9032_v3  ;;  %v9042_v27 = vld [vmem:[%s11586_s4 + $0x68] sm:$0xff]  }
  0x2f   : > { %7981 = vmatmul.mubr.bf16.vlgmr.msra.gmra.mrb[0].mxu0 %v9009_v22  ;;  %919 = vperm.xlu0 %8998, %v269_v28   ;;  %v9038_v22 = vld [vmem:[%s11586_s4 + $0x58] sm:$0xff]   ;;  %v9043_v28 = vld [vmem:[%s11586_s4 + $0x128] sm:$0xff]  }
  0x30   : > { %7984 = vmatprep.mubr.bf16.mxu0 %v9010_v25  ;;  %8029 = vmatpush3.bf16.msra.mxu0 %v9032_v3  ;;  %v9040_v25 = vld [vmem:[%s11586_s4 + $0x60] sm:$0xff]  }
  0x31   : > { %924 = vperm.xlu1 %8999, %v270_v30   ;;  %8030 = vmatprep.subr.bf16.mxu0 %v9034_v8  ;;  %v9045_v30 = vld [vmem:[%s11586_s4 + $0x130] sm:$0xff]  }
  0x32   : > { %8289 = vmatpush3.bf16.msra.mxu1 %v9037_v14 }
  0x33   : > { %929 = vperm.xlu0 %8998, %v271_v32   ;;  %8290 = vmatprep.subr.bf16.mxu1 %v9039_v24  ;;  %v9047_v32 = vld [vmem:[%s11586_s4 + $0x138] sm:$0xff]  }
  0x34   : > { %8031 = vmatpush3.bf16.msra.mxu0 %v9034_v8 }
  0x35   : > { %934 = vperm.xlu1 %8999, %v272_v33   ;;  %8032 = vmatprep.subr.bf16.mxu0 %v9036_v13  ;;  %v1379_v33 = vld [vmem:[#allocation2 + $0x4] sm:$0xf] }
  0x36   : > { %8291 = vmatpush3.bf16.msra.mxu1 %v9039_v24 }
  0x37   : > { %7985 = vmatmul.mubr.bf16.gmra.mrb[4].mxu0 %v9011_v29  ;;  %939 = vperm.xlu0 %8998, %v273_v35   ;;  %v9044_v29 = vld [vmem:[%s11586_s4 + $0x70] sm:$0xff]  }
  0x38   : > { %7988 = vmatprep.mubr.bf16.mxu0 %v9012_v31  ;;  %8033 = vmatpush3.bf16.msra.mxu0 %v9036_v13  ;;  %v9046_v31 = vld [vmem:[%s11586_s4 + $0x78] sm:$0xff]  }
  0x39   : > { %944 = vperm.xlu1 %8999, %v274_v37   ;;  %8034 = vmatprep.subr.bf16.mxu0 %v9038_v22 }
  0x3a   : > { %8292 = vmatprep.subr.bf16.mxu1 %v9041_v26 }
  0x3b   : > { %949 = vperm.xlu0 %8998, %v275_v38   ;;  %8293 = vmatpush3.bf16.msra.mxu1 %v9041_v26 }
  0x3c   : > { %8035 = vmatpush3.bf16.msra.mxu0 %v9038_v22  ;;  %8294 = vmatprep.subr.bf16.mxu1 %v9043_v28 }
  0x3d   : > { %954 = vperm.xlu1 %8999, %v276_v39   ;;  %8036 = vmatprep.subr.bf16.mxu0 %v9040_v25 }
  0x3f   : > { %7989 = vmatmul.mubr.bf16.gmra.mrb[8].mxu0 %v9013_v34  ;;  %959 = vperm.xlu0 %8998, %v277_v40   ;;  %v1380_v34 = vld [vmem:[#allocation2 + $0x8] sm:$0xf] }
  0x40   : > { %7992 = vmatprep.mubr.bf16.mxu0 %v9014_v36  ;;  %8037 = vmatpush3.bf16.msra.mxu0 %v9040_v25  ;;  %v9567_v35 = vcombine.low %v1379_v33, %v1380_v34  ;;  %v9573_v36 = vld [vmem:[%s11586_s4 + $0x140] sm:$0xff]  }
  0x41   : > { %964 = vperm.xlu1 %8999, %v278_v42   ;;  %8038 = vmatprep.subr.bf16.mxu0 %v9042_v27 }
  0x42   : > { %8295 = vmatpush3.bf16.msra.mxu1 %v9043_v28  ;;  %11709 = vst [vmem:[#allocation3_spill] sm:$0xff] %v9567_v35 }
  0x43   : > { %969 = vperm.xlu0 %8998, %v279_v44   ;;  %8296 = vmatprep.subr.bf16.mxu1 %v9045_v30 }
  0x44   : > { %8039 = vmatpush3.bf16.msra.mxu0 %v9042_v27 }
  0x45   : > { %974 = vperm.xlu1 %8999, %v280_v45   ;;  %8040 = vmatprep.subr.bf16.mxu0 %v9044_v29 }
  0x46   : > { %8297 = vmatpush3.bf16.msra.mxu1 %v9045_v30 }
  0x47   : > { %7993 = vmatmul.mubr.bf16.gmra.mrb[12].mxu0 %v9015_v41  ;;  %979 = vperm.xlu0 %8998, %v281_v46   ;;  %v9579_v41 = vld [vmem:[%s11586_s4] sm:$0xff]   ;;  %v9590_v46 = vld [vmem:[#allocation2 + $0xc] sm:$0xf] }
  0x48   : > { %7996 = vmatprep.mubr.bf16.mxu0 %v9016_v43  ;;  %8041 = vmatpush3.bf16.msra.mxu0 %v9044_v29 }
  0x49   : > { %984 = vperm.xlu1 %8999, %v282_v48   ;;  %8042 = vmatprep.subr.bf16.mxu0 %v9046_v31 }
  0x4a   : > { %8298 = vmatprep.subr.bf16.mxu1 %v9047_v32 }
  0x4b   : > { %989 = vperm.xlu0 %8998, %v283_v50   ;;  %8299 = vmatpush3.bf16.msra.mxu1 %v9047_v32 }
  0x4c   : > { %8043 = vmatpush3.bf16.msra.mxu0 %v9046_v31  ;;  %8348 = vmatprep.subr.bf16.mxu1 %v9573_v36 }
  0x4d   : > { %994 = vperm.xlu1 %8999, %v284_v51   ;;  %8092 = vmatprep.subr.bf16.mxu0 %v9579_v41 }
  0x4f   : > { %7997 = vmatmul.mubr.bf16.gmra.mrb[16].mxu0 %v9017_v47  ;;  %999 = vperm.xlu0 %8998, %v285_v52   ;;  %v1378_v47 = vld [vmem:[#allocation2] sm:$0x8] }
  0x50   : > { %8000 = vmatprep.mubr.bf16.mxu0 %v9018_v49  ;;  %v6921_v49 = vcombine.low %v1380_v34, %v9590_v46  ;;  %v6920_v51 = vcombine.low %v1378_v47, %v1379_v33 }
  0x51   : > { %1004 = vperm.xlu1 %8999, %v286_v54  }
  0x52   : > { %v1914_v52 = vshrl.u32 %v6921_v49, 16 }
  0x53   : > { %1009 = vperm.xlu0 %8998, %v287_v56   ;;  %v1909_v56 = vshll.u32 %v6920_v51, 16 }
  0x55   : > { %1014 = vperm.xlu1 %8999, %v288_v57  }
  0x57   : > { %8001 = vmatmul.mubr.bf16.gmra.mrb[20].mxu0 %v9019_v53  ;;  %1019 = vperm.xlu0 %8998, %v289_v58   ;;  %v1917_v53 = vshll.u32 %v6921_v49, 16  ;;  %v1916_v58 = vrot.slane %v1914_v52, 3 }
  0x58   : > { %8004 = vmatprep.mubr.bf16.mxu0 %v9020_v55  ;;  %v1906_v55 = vshrl.u32 %v6920_v51, 16 }
  0x59   : > { %1024 = vperm.xlu1 %8999, %v290_v60  }
  0x5a   : > { %v1908_v60 = vrot.slane %v1906_v55, 3 }
  0x5b   : > { %1029 = vperm.xlu0 %8998, %v291_v62  }
  0x5d   : > { %1034 = vperm.xlu1 %8999, %v292_v63  }
  0x5f   : > { %8005 = vmatmul.mubr.bf16.gmra.mrb[24].mxu0 %v9021_v59  ;;  %1039 = vperm.xlu0 %8998, %v293_v0   ;;  %v1919_v59 = vrot.slane %v1917_v53, 4 }
  0x60   : > { %8008 = vmatprep.mubr.bf16.mxu0 %v9022_v61  ;;  %v1911_v61 = vrot.slane %v1909_v56, 4 }
  0x61   : > { %1044 = vperm.xlu1 %8999, %v294_v2   ;;  %v9603_v0 = vor.u32 %v1919_v59, %v1916_v58 }
  0x62   : > { %v1912_v63 = vor.u32 %v1911_v61, %v1908_v60 }
  0x63   : > { %1049 = vperm.xlu0 %8998, %v295_v6  }
  0x64   : > { %v9609_v2 = vsel %vm1904_vm0, %v1912_v63, %v9603_v0 }
  0x65   : > { %1054 = vperm.xlu1 %8999, %v296_v7  }
  0x67   : > { %8009 = vmatmul.mubr.bf16.gmra.mrb[28].mxu0 %v9023_v1  ;;  %1059 = vperm.xlu0 %8998, %v297_v10  }
  0x68   : > { %8012 = vmatprep.mubr.bf16.mxu0 %v9024_v5  ;;  %v9618_v5 = vld [vmem:[%s11585_s3] ss:$0 sm:$0xff] }
  0x69   : > { %1064 = vperm.xlu1 %8999, %v298_v12  }
  0x6b   : > { %1069 = vperm.xlu0 %8998, %v299_v16  }
  0x6d   : > { %1074 = vperm.xlu1 %8999, %v300_v17  }
  0x6f   : > { %8013 = vmatmul.mubr.bf16.gmra.mrb[32].mxu0 %v9025_v11 }
  0x70   : > { %8016 = vmatprep.mubr.bf16.mxu0 %v9026_v15 }
  0x77   : > { %8017 = vmatmul.mubr.bf16.gmra.mrb[36].mxu0 %v9027_v18 }
  0x78   : > { %8020 = vmatprep.mubr.bf16.mxu0 %v9028_v19 }
  0x7f   : > { %8021 = vmatmul.mubr.bf16.gmra.mrb[40].mxu0 %v9029_v20 }
  0x80   : > { %8024 = vmatprep.mubr.bf16.mxu0 %v9030_v21 }
  0x87   : > { %8025 = vmatmul.mubr.bf16.gmra.mrb[44].mxu0 %v9031_v23 }
  0x88   : > { %8044 = vmatprep.mubr.bf16.mxu0 %v9567_v35 }
  0x8e   : > { %v840_v37 = vpop.permute.xlu0 %839 }
  0x8f   : > { %v850_v38 = vpop.permute.xlu1 %849 }
  0x92   : > { %v845_v39 = vpop.permute.xlu0 %844 }
  0x94   : > { %v855_v40 = vpop.permute.xlu1 %854 }
  0x96   : > { %v9581_v42 = vpop.permute.xlu0 %859 }
  0x98   : > { %v9584_v43 = vpop.permute.xlu1 %864 }
  0x9a   : > { %v9586_v44 = vpop.permute.xlu0 %869 }
  0x9c   : > { %v9588_v45 = vpop.permute.xlu1 %874 }
  0x9e   : > { %v9592_v48 = vpop.permute.xlu0 %879 }
  0xa0   : > { %v9595_v50 = vpop.permute.xlu1 %884 }
  0xa2   : > { %v9597_v54 = vpop.permute.xlu0 %889 }
  0xa4   : > { %v9599_v57 = vpop.permute.xlu1 %894 }
  0xa6   : > { %v9601_v62 = vpop.permute.xlu0 %899 }
  0xa8   : > { %v9605_v1 = vpop.permute.xlu1 %904 }
  0xaa   : > { %v9611_v3 = vpop.permute.xlu0 %909 }
  0xac   : > { %v9613_v4 = vpop.permute.xlu1 %914 }
  0xae   : > { %v9621_v9 = vpop.permute.xlu0 %919 }
  0xb0   : > { %v9625_v15 = vpop.permute.xlu1 %924 }
  0xb2   : > { %v9628_v22 = vpop.permute.xlu0 %929 }
  0xb4   : > { %v9631_v29 = vpop.permute.xlu1 %934 }
  0xb6   : > { %v9636_v47 = vpop.permute.xlu0 %939 }
  0xb8   : > { %v9640_v53 = vpop.permute.xlu1 %944 }
 0x102   : > { %v7982_v6 = vpop.f32.mrb[0].mxu0 }
 0x103   : > { %v607_v7 = vadd.f32 %v7982_v6, %v9618_v5  ;;  %v598_v8 = vpop.f32.mrb[1].mxu0 }
 0x104   : > { %v599_v10 = vadd.f32 %v9618_v5, %v598_v8  ;;  %v7983_v11 = vpop.f32.mrb[2].mxu0 }
 0x105   : > { %v791_v12 = vmax.f32 %v607_v7, 0.0  ;;  %v610_v13 = vadd.f32 %v7983_v11, %v9618_v5  ;;  %v601_v14 = vpop.f32.mrb[3].mxu0 }
 0x106   : > { %v789_v16 = vmax.f32 %v599_v10, 0.0  ;;  %v602_v17 = vadd.f32 %v9618_v5, %v601_v14 }
 0x107   : > { %v792_v18 = vmax.f32 %v610_v13, 0.0  ;;  %v1079_v20 = vmul.f32 %v850_v38, %v791_v12  ;;  %v9647_v13 = vpop.permute.xlu0 %949 }
 0x108   : > { %v790_v19 = vmax.f32 %v602_v17, 0.0  ;;  %v1077_v23 = vmul.f32 %v840_v37, %v789_v16 }
 0x109   : > { %v1080_v21 = vmul.f32 %v855_v40, %v792_v18 }
 0x10a   : > { %v1078_v24 = vmul.f32 %v845_v39, %v790_v19  ;;  %v7986_v25 = vpop.f32.mrb[4].mxu0 }
 0x10b   : > { %v7377_v26 = vpack.c.bf16 %v1080_v21, %v1079_v20  ;;  %v623_v27 = vadd.f32 %v7986_v25, %v9618_v5  ;;  %v614_v28 = vpop.f32.mrb[5].mxu0  ;;  %v9129_v25 = vld [vmem:[%s11586_s4 + $0x8] sm:$0xff]  }
 0x10c   : > { %v7372_v30 = vpack.c.bf16 %v1078_v24, %v1077_v23  ;;  %v615_v31 = vadd.f32 %v9618_v5, %v614_v28  ;;  %v7987_v32 = vpop.f32.mrb[6].mxu0 }
 0x10d   : > { %7600 = vst [vmem:[#allocation2 + $0x18] sm:$0xff] %v7377_v26   ;;  %v795_v33 = vmax.f32 %v623_v27, 0.0  ;;  %v626_v34 = vadd.f32 %v7987_v32, %v9618_v5  ;;  %v617_v38 = vpop.f32.mrb[7].mxu0  ;;  %v9660_v26 = vpop.permute.xlu1 %954 }
 0x10e   : > { %7599 = vst [vmem:[#allocation2 + $0x10] sm:$0xff] %v7372_v30   ;;  %v793_v40 = vmax.f32 %v615_v31, 0.0  ;;  %v618_v37 = vadd.f32 %v9618_v5, %v617_v38 }
 0x10f   : > { %v796_v39 = vmax.f32 %v626_v34, 0.0  ;;  %v1083_v51 = vmul.f32 %v9586_v44, %v795_v33 }
 0x110   : > { %v794_v49 = vmax.f32 %v618_v37, 0.0  ;;  %v1081_v55 = vmul.f32 %v9581_v42, %v793_v40  ;;  %v9684_v37 = vpop.permute.xlu0 %959 }
 0x111   : > { %v1084_v52 = vmul.f32 %v9588_v45, %v796_v39 }
 0x112   : > { %v1082_v56 = vmul.f32 %v9584_v43, %v794_v49  ;;  %v7990_v58 = vpop.f32.mrb[8].mxu0 }
 0x113   : > { %v7387_v59 = vpack.c.bf16 %v1084_v52, %v1083_v51  ;;  %v639_v60 = vadd.f32 %v7990_v58, %v9618_v5  ;;  %v630_v61 = vpop.f32.mrb[9].mxu0  ;;  %v9692_v58 = vpop.permute.xlu1 %964 }
 0x114   : > { %v7382_v63 = vpack.c.bf16 %v1082_v56, %v1081_v55  ;;  %v631_v6 = vadd.f32 %v9618_v5, %v630_v61  ;;  %v7991_v7 = vpop.f32.mrb[10].mxu0  ;;  %v1384_v8 = vld [vmem:[#allocation2 + $0x18] sm:$0xf]  ;;  %v2988_v23 = vld [vmem:[#allocation2 + $0x1c] sm:$0xf] }
 0x115   : > { %7602 = vst [vmem:[#allocation2 + $0x28] sm:$0xff] %v7387_v59   ;;  %v799_v44 = vmax.f32 %v639_v60, 0.0  ;;  %v642_v45 = vadd.f32 %v7991_v7, %v9618_v5  ;;  %v633_v10 = vpop.f32.mrb[11].mxu0  ;;  %v1382_v11 = vld [vmem:[#allocation2 + $0x10] sm:$0xf] }
 0x116   : > { %v2985_v12 = vld [vmem:[#allocation2 + $0x10] sm:$0xf]  ;;  %v2987_v42 = vld [vmem:[#allocation2 + $0x18] sm:$0xf]  ;;  %7601 = vst [vmem:[#allocation2 + $0x20] sm:$0xff] %v7382_v63   ;;  %v797_v43 = vmax.f32 %v631_v6, 0.0  ;;  %v634_v14 = vadd.f32 %v9618_v5, %v633_v10  ;;  %v9651_v16 = vcombine.low %v9590_v46, %v1382_v11 }
 0x117   : > { %v2986_v17 = vld [vmem:[#allocation2 + $0x14] sm:$0xf]  ;;  %v800_v19 = vmax.f32 %v642_v45, 0.0  ;;  %v1385_v24 = vld [vmem:[#allocation2 + $0x1c] sm:$0xf]  ;;  %v1087_v27 = vmul.f32 %v9597_v54, %v799_v44  ;;  %v9673_v34 = vcombine.low %v2987_v42, %v2988_v23 }
 0x118   : > { %11710 = vst [vmem:[#allocation4_spill] sm:$0xff] %v9651_v16  ;;  %v1383_v18 = vld [vmem:[#allocation2 + $0x14] sm:$0xf]  ;;  %v9653_v20 = vcombine.low %v2985_v12, %v2986_v17  ;;  %v798_v28 = vmax.f32 %v634_v14, 0.0  ;;  %8045 = vmatmul.mubr.bf16.vlgmr.msra.gmra.mrb[48].mxu0 %v9651_v16  ;;  %v1085_v46 = vmul.f32 %v9592_v48, %v797_v43  ;;  %v9671_v33 = vcombine.low %v2986_v17, %v2987_v42  ;;  %v9067_v48 = vld [vmem:[%s11586_s4 + $0x148] sm:$0xff]   ;;  %v9140_v10 = vld [vmem:[%s11586_s4 + $0x18] sm:$0xff]  }
 0x119   : > { %v9655_v21 = vcombine.low %v1383_v18, %v1384_v8  ;;  %v1088_v30 = vmul.f32 %v9599_v57, %v800_v19  ;;  %v9668_v31 = vcombine.low %v1382_v11, %v1383_v18  ;;  %v9675_v38 = vcombine.low %v1384_v8, %v1385_v24  ;;  %8093 = vmatpush3.bf16.msra.mxu0 %v9579_v41  ;;  %v9080_v45 = vld [vmem:[%s11586_s4 + $0x150] sm:$0xff]  }
 0x11a   : > { %8300 = vmatprep.mubr.bf16.mxu1 %v9653_v20  ;;  %v1086_v32 = vmul.f32 %v9595_v50, %v798_v28  ;;  %11712 = vst [vmem:[#allocation6_spill] sm:$0xff] %v9671_v33  ;;  %v7994_v54 = vpop.f32.mrb[12].mxu0  ;;  %8094 = vmatprep.subr.bf16.mxu0 %v9129_v25  ;;  %v9132_v50 = vld [vmem:[%s11586_s4 + $0x10] sm:$0xff]  }
 0x11b   : > { %11711 = vst [vmem:[#allocation5_spill] sm:$0xff] %v9655_v21  ;;  %8048 = vmatprep.mubr.bf16.mxu0 %v9655_v21  ;;  %v7397_v57 = vpack.c.bf16 %v1088_v30, %v1087_v27  ;;  %v646_v40 = vpop.f32.mrb[13].mxu0  ;;  %8301 = vmatmul.mubr.bf16.vlgmr.msra.gmra.mrb[0].mxu1 %v9673_v34  ;;  %v655_v51 = vadd.f32 %v7994_v54, %v9618_v5 }
 0x11c   : > { %v7392_v39 = vpack.c.bf16 %v1086_v32, %v1085_v46  ;;  %v7995_v49 = vpop.f32.mrb[14].mxu0  ;;  %8349 = vmatpush3.bf16.msra.mxu1 %v9573_v36  ;;  %v647_v41 = vadd.f32 %v9618_v5, %v646_v40  ;;  %v9690_v56 = vld [vmem:[#allocation2 + $0x28] sm:$0xf]  ;;  %v2992_v17 = vld [vmem:[#allocation2 + $0x2c] sm:$0xf] }
 0x11d   : > { %7604 = vst [vmem:[#allocation2 + $0x38] sm:$0xff] %v7397_v57   ;;  %v649_v52 = vpop.f32.mrb[15].mxu0  ;;  %v1386_v55 = vld [vmem:[#allocation2 + $0x20] sm:$0xf]  ;;  %v658_v59 = vadd.f32 %v7995_v49, %v9618_v5  ;;  %v2990_v6 = vld [vmem:[#allocation2 + $0x24] sm:$0xf]  ;;  %8350 = vmatprep.subr.bf16.mxu1 %v9067_v48  ;;  %8095 = vmatpush3.bf16.msra.mxu0 %v9129_v25 }
 0x11e   : > { %7603 = vst [vmem:[#allocation2 + $0x30] sm:$0xff] %v7392_v39   ;;  %v650_v60 = vadd.f32 %v9618_v5, %v649_v52  ;;  %v9696_v61 = vcombine.low %v1385_v24, %v1386_v55  ;;  %v2989_v63 = vld [vmem:[#allocation2 + $0x20] sm:$0xf]  ;;  %v803_v36 = vmax.f32 %v655_v51, 0.0  ;;  %v801_v7 = vmax.f32 %v647_v41, 0.0  ;;  %8096 = vmatprep.subr.bf16.mxu0 %v9132_v50 }
 0x11f   : > { %v9698_v8 = vcombine.low %v2988_v23, %v2989_v63  ;;  %v1387_v44 = vld [vmem:[#allocation2 + $0x24] sm:$0xf]  ;;  %v804_v11 = vmax.f32 %v658_v59, 0.0  ;;  %v9707_v42 = vcombine.low %v2989_v63, %v2990_v6  ;;  %v2991_v14 = vld [vmem:[#allocation2 + $0x28] sm:$0xf]  ;;  %v9714_v23 = vpop.permute.xlu0 %969 }
 0x120   : > { %11713 = vst [vmem:[#allocation7_spill] sm:$0xff] %v9696_v61  ;;  %v802_v12 = vmax.f32 %v650_v60, 0.0  ;;  %8049 = vmatmul.mubr.bf16.gmra.mrb[52].mxu0 %v9696_v61  ;;  %v9710_v43 = vcombine.low %v1387_v44, %v9690_v56  ;;  %v1091_v18 = vmul.f32 %v9611_v3, %v803_v36  ;;  %v1089_v19 = vmul.f32 %v9601_v62, %v801_v7  ;;  %v9093_v62 = vld [vmem:[%s11586_s4 + $0x158] sm:$0xff]   ;;  %v9143_v57 = vld [vmem:[%s11586_s4 + $0x20] sm:$0xff]  }
 0x121   : > { %11714 = vst [vmem:[#allocation8_spill] sm:$0xff] %v9698_v8  ;;  %8351 = vmatpush3.bf16.msra.mxu1 %v9067_v48  ;;  %v1092_v24 = vmul.f32 %v9613_v4, %v804_v11  ;;  %8304 = vmatprep.mubr.bf16.mxu1 %v9707_v42  ;;  %v9720_v27 = vcombine.low %v1386_v55, %v1387_v44  ;;  %v9729_v4 = vpop.permute.xlu1 %974  ;;  %v1389_v48 = vld [vmem:[#allocation2 + $0x2c] sm:$0xf] }
 0x122   : > { %11715 = vst [vmem:[#allocation9_spill] sm:$0xff] %v9710_v43  ;;  %v1090_v25 = vmul.f32 %v9605_v1, %v802_v12  ;;  %8052 = vmatprep.mubr.bf16.mxu0 %v9710_v43  ;;  %v7998_v28 = vpop.f32.mrb[16].mxu0  ;;  %v9722_v46 = vcombine.low %v2990_v6, %v2991_v14  ;;  %v9724_v30 = vcombine.low %v2991_v14, %v2992_v17  ;;  %v9106_v12 = vld [vmem:[%s11586_s4 + $0x160] sm:$0xff]  }
 0x123   : > { %v662_v3 = vpop.f32.mrb[17].mxu0  ;;  %8352 = vmatprep.subr.bf16.mxu1 %v9080_v45  ;;  %8097 = vmatpush3.bf16.msra.mxu0 %v9132_v50  ;;  %v7407_v1 = vpack.c.bf16 %v1092_v24, %v1091_v18  ;;  %v671_v40 = vadd.f32 %v7998_v28, %v9618_v5  ;;  %v9742_v36 = vcombine.low %v9690_v56, %v1389_v48  ;;  %v9751_v14 = vpop.permute.xlu0 %979 }
 0x124   : > { %11716 = vst [vmem:[#allocation10_spill] sm:$0xff] %v9722_v46  ;;  %v7402_v32 = vpack.c.bf16 %v1090_v25, %v1089_v19  ;;  %v7999_v54 = vpop.f32.mrb[18].mxu0  ;;  %8098 = vmatprep.subr.bf16.mxu0 %v9140_v10  ;;  %8305 = vmatmul.mubr.bf16.gmra.mrb[4].mxu1 %v9724_v30  ;;  %v1392_v51 = vld [vmem:[#allocation2 + $0x38] sm:$0xf]  ;;  %v663_v50 = vadd.f32 %v9618_v5, %v662_v3  ;;  %v1393_v25 = vld [vmem:[#allocation2 + $0x3c] sm:$0xf] }
 0x125   : > { %v665_v39 = vpop.f32.mrb[19].mxu0  ;;  %v1390_v49 = vld [vmem:[#allocation2 + $0x30] sm:$0xf]  ;;  %7606 = vst [vmem:[#allocation2 + $0x48] sm:$0xff] %v7407_v1   ;;  %v674_v41 = vadd.f32 %v7999_v54, %v9618_v5  ;;  %v2994_v60 = vld [vmem:[#allocation2 + $0x34] sm:$0xf]  ;;  %8353 = vmatpush3.bf16.msra.mxu1 %v9080_v45  ;;  %v9761_v28 = vpop.permute.xlu1 %984 }
 0x126   : > { %7605 = vst [vmem:[#allocation2 + $0x40] sm:$0xff] %v7402_v32   ;;  %v666_v52 = vadd.f32 %v9618_v5, %v665_v39  ;;  %v9739_v55 = vcombine.low %v1389_v48, %v1390_v49  ;;  %v2993_v59 = vld [vmem:[#allocation2 + $0x30] sm:$0xf]  ;;  %v1391_v63 = vld [vmem:[#allocation2 + $0x34] sm:$0xf]  ;;  %v807_v6 = vmax.f32 %v671_v40, 0.0  ;;  %8354 = vmatprep.subr.bf16.mxu1 %v9093_v62 }
 0x127   : > { %v9744_v7 = vcombine.low %v2992_v17, %v2993_v59  ;;  %v9746_v44 = vcombine.low %v2993_v59, %v2994_v60  ;;  %v2995_v11 = vld [vmem:[#allocation2 + $0x38] sm:$0xf]  ;;  %8099 = vmatpush3.bf16.msra.mxu0 %v9140_v10  ;;  %v805_v18 = vmax.f32 %v663_v50, 0.0  ;;  %v808_v19 = vmax.f32 %v674_v41, 0.0  ;;  %v2996_v17 = vld [vmem:[#allocation2 + $0x3c] sm:$0xf] }
 0x128   : > { %11717 = vst [vmem:[#allocation11_spill] sm:$0xff] %v9739_v55  ;;  %v806_v45 = vmax.f32 %v666_v52, 0.0  ;;  %8053 = vmatmul.mubr.bf16.gmra.mrb[56].mxu0 %v9739_v55  ;;  %v9754_v56 = vcombine.low %v1391_v63, %v1392_v51  ;;  %8100 = vmatprep.subr.bf16.mxu0 %v9143_v57  ;;  %v1095_v24 = vmul.f32 %v9628_v22, %v807_v6  ;;  %v9151_v10 = vld [vmem:[%s11586_s4 + $0x28] sm:$0xff]   ;;  %v9155_v59 = vld [vmem:[%s11586_s4 + $0x30] sm:$0xff]  }
 0x129   : > { %11718 = vst [vmem:[#allocation12_spill] sm:$0xff] %v9744_v7  ;;  %8308 = vmatprep.mubr.bf16.mxu1 %v9746_v44  ;;  %v1093_v3 = vmul.f32 %v9621_v9, %v805_v18  ;;  %v1096_v1 = vmul.f32 %v9631_v29, %v808_v19  ;;  %8355 = vmatpush3.bf16.msra.mxu1 %v9093_v62  ;;  %v9119_v9 = vld [vmem:[%s11586_s4 + $0x168] sm:$0xff]  }
 0x12a   : > { %11719 = vst [vmem:[#allocation13_spill] sm:$0xff] %v9754_v56  ;;  %v1094_v32 = vmul.f32 %v9625_v15, %v806_v45  ;;  %8056 = vmatprep.mubr.bf16.mxu0 %v9754_v56  ;;  %v8002_v54 = vpop.f32.mrb[20].mxu0  ;;  %v9767_v22 = vcombine.low %v1390_v49, %v1391_v63  ;;  %v9769_v48 = vcombine.low %v2994_v60, %v2995_v11  ;;  %v9784_v60 = vpop.permute.xlu0 %989 }
 0x12b   : > { %v9771_v40 = vcombine.low %v2995_v11, %v2996_v17  ;;  %v687_v39 = vadd.f32 %v8002_v54, %v9618_v5  ;;  %v678_v50 = vpop.f32.mrb[21].mxu0  ;;  %8356 = vmatprep.subr.bf16.mxu1 %v9106_v12  ;;  %v7417_v29 = vpack.c.bf16 %v1096_v1, %v1095_v24  ;;  %v9778_v62 = vcombine.low %v1392_v51, %v1393_v25  ;;  %v9135_v1 = vld [vmem:[%s11586_s4 + $0x170] sm:$0xff]  }
 0x12c   : > { %11720 = vst [vmem:[#allocation14_spill] sm:$0xff] %v9769_v48  ;;  %v7412_v15 = vpack.c.bf16 %v1094_v32, %v1093_v3  ;;  %v679_v41 = vadd.f32 %v9618_v5, %v678_v50  ;;  %v8003_v52 = vpop.f32.mrb[22].mxu0  ;;  %8101 = vmatpush3.bf16.msra.mxu0 %v9143_v57  ;;  %v9795_v32 = vpop.permute.xlu1 %994 }
 0x12d   : > { %8309 = vmatmul.mubr.bf16.gmra.mrb[8].mxu1 %v9771_v40  ;;  %v681_v49 = vpop.f32.mrb[23].mxu0  ;;  %8102 = vmatprep.subr.bf16.mxu0 %v9151_v10  ;;  %7608 = vst [vmem:[#allocation2 + $0x58] sm:$0xff] %v7417_v29   ;;  %v811_v63 = vmax.f32 %v687_v39, 0.0  ;;  %v690_v11 = vadd.f32 %v8003_v52, %v9618_v5  ;;  %v1394_v18 = vld [vmem:[#allocation2 + $0x40] sm:$0xf] }
 0x12e   : > { %7607 = vst [vmem:[#allocation2 + $0x50] sm:$0xff] %v7412_v15   ;;  %v809_v6 = vmax.f32 %v679_v41, 0.0  ;;  %v682_v51 = vadd.f32 %v9618_v5, %v681_v49  ;;  %v2997_v57 = vld [vmem:[#allocation2 + $0x40] sm:$0xf]  ;;  %8357 = vmatpush3.bf16.msra.mxu1 %v9106_v12  ;;  %v9788_v19 = vcombine.low %v1393_v25, %v1394_v18  ;;  %v2998_v45 = vld [vmem:[#allocation2 + $0x44] sm:$0xf] }
 0x12f   : > { %v9790_v24 = vcombine.low %v2996_v17, %v2997_v57  ;;  %v1395_v3 = vld [vmem:[#allocation2 + $0x44] sm:$0xf]  ;;  %8358 = vmatprep.subr.bf16.mxu1 %v9119_v9  ;;  %v1099_v54 = vmul.f32 %v9647_v13, %v811_v63  ;;  %v812_v39 = vmax.f32 %v690_v11, 0.0  ;;  %v1396_v29 = vld [vmem:[#allocation2 + $0x48] sm:$0xf]  ;;  %v9800_v17 = vcombine.low %v2997_v57, %v2998_v45  ;;  %v9161_v13 = vld [vmem:[%s11586_s4 + $0x38] sm:$0xff]  }
 0x130   : > { %11721 = vst [vmem:[#allocation15_spill] sm:$0xff] %v9788_v19  ;;  %v810_v50 = vmax.f32 %v682_v51, 0.0  ;;  %v2999_v15 = vld [vmem:[#allocation2 + $0x48] sm:$0xf]  ;;  %8103 = vmatpush3.bf16.msra.mxu0 %v9151_v10  ;;  %v1097_v12 = vmul.f32 %v9636_v47, %v809_v6  ;;  %v9802_v25 = vcombine.low %v1395_v3, %v1396_v29  ;;  %v3000_v41 = vld [vmem:[#allocation2 + $0x4c] sm:$0xf]  ;;  %v9809_v10 = vcombine.low %v1394_v18, %v1395_v3 }
 0x131   : > { %11722 = vst [vmem:[#allocation16_spill] sm:$0xff] %v9790_v24  ;;  %8057 = vmatmul.mubr.bf16.gmra.mrb[60].mxu0 %v9788_v19  ;;  %v1397_v52 = vld [vmem:[#allocation2 + $0x4c] sm:$0xf]  ;;  %8104 = vmatprep.subr.bf16.mxu0 %v9155_v59  ;;  %v1100_v49 = vmul.f32 %v9660_v26, %v812_v39  ;;  %v9811_v47 = vcombine.low %v2998_v45, %v2999_v15  ;;  %v9823_v26 = vpop.permute.xlu0 %999 }
 0x132   : > { %11723 = vst [vmem:[#allocation17_spill] sm:$0xff] %v9802_v25  ;;  %v1098_v63 = vmul.f32 %v9640_v53, %v810_v50  ;;  %v8006_v6 = vpop.f32.mrb[24].mxu0  ;;  %8359 = vmatpush3.bf16.msra.mxu1 %v9119_v9  ;;  %8312 = vmatprep.mubr.bf16.mxu1 %v9800_v17  ;;  %v9815_v11 = vcombine.low %v2999_v15, %v3000_v41  ;;  %v9152_v53 = vld [vmem:[%s11586_s4 + $0x178] sm:$0xff]  }
 0x133   : > { %11724 = vst [vmem:[#allocation18_spill] sm:$0xff] %v9811_v47  ;;  %8060 = vmatprep.mubr.bf16.mxu0 %v9802_v25  ;;  %v703_v51 = vadd.f32 %v8006_v6, %v9618_v5  ;;  %v694_v57 = vpop.f32.mrb[25].mxu0  ;;  %v9818_v19 = vcombine.low %v1396_v29, %v1397_v52  ;;  %v7427_v18 = vpack.c.bf16 %v1100_v49, %v1099_v54  ;;  %v9827_v29 = vpop.permute.xlu1 %1004 }
 0x134   : > { %v7422_v45 = vpack.c.bf16 %v1098_v63, %v1097_v12  ;;  %v8007_v9 = vpop.f32.mrb[26].mxu0  ;;  %8360 = vmatprep.subr.bf16.mxu1 %v9135_v1  ;;  %8105 = vmatpush3.bf16.msra.mxu0 %v9155_v59  ;;  %v695_v39 = vadd.f32 %v9618_v5, %v694_v57  ;;  %v1400_v25 = vld [vmem:[#allocation2 + $0x58] sm:$0xf]  ;;  %v3004_v55 = vld [vmem:[#allocation2 + $0x5c] sm:$0xf] }
 0x135   : > { %8313 = vmatmul.mubr.bf16.gmra.mrb[12].mxu1 %v9815_v11  ;;  %v815_v3 = vmax.f32 %v703_v51, 0.0  ;;  %v697_v50 = vpop.f32.mrb[27].mxu0  ;;  %v1398_v15 = vld [vmem:[#allocation2 + $0x50] sm:$0xf]  ;;  %8106 = vmatprep.subr.bf16.mxu0 %v9161_v13  ;;  %7610 = vst [vmem:[#allocation2 + $0x68] sm:$0xff] %v7427_v18   ;;  %v706_v6 = vadd.f32 %v8007_v9, %v9618_v5  ;;  %v9838_v18 = vld [vmem:[%s11586_s4 + $0x180] sm:$0xff]  }
 0x136   : > { %7609 = vst [vmem:[#allocation2 + $0x60] sm:$0xff] %v7422_v45   ;;  %v698_v54 = vadd.f32 %v9618_v5, %v697_v50  ;;  %v9831_v12 = vcombine.low %v1397_v52, %v1398_v15  ;;  %v3001_v49 = vld [vmem:[#allocation2 + $0x50] sm:$0xf]  ;;  %v3002_v59 = vld [vmem:[#allocation2 + $0x54] sm:$0xf]  ;;  %8361 = vmatpush3.bf16.msra.mxu1 %v9135_v1  ;;  %v813_v63 = vmax.f32 %v695_v39, 0.0 }
 0x137   : > { %v9833_v51 = vcombine.low %v3000_v41, %v3001_v49  ;;  %v1399_v57 = vld [vmem:[#allocation2 + $0x54] sm:$0xf]  ;;  %8362 = vmatprep.subr.bf16.mxu1 %v9152_v53  ;;  %v816_v45 = vmax.f32 %v706_v6, 0.0  ;;  %v9840_v56 = vcombine.low %v3001_v49, %v3002_v59  ;;  %v3003_v50 = vld [vmem:[#allocation2 + $0x58] sm:$0xf]  ;;  %v1103_v1 = vmul.f32 %v9714_v23, %v815_v3  ;;  %v9852_v6 = vld [vmem:[%s11586_s4 + $0x80] sm:$0xff]  }
 0x138   : > { %11725 = vst [vmem:[#allocation19_spill] sm:$0xff] %v9831_v12  ;;  %v814_v9 = vmax.f32 %v698_v54, 0.0  ;;  %v9842_v52 = vcombine.low %v1399_v57, %v1400_v25  ;;  %8107 = vmatpush3.bf16.msra.mxu0 %v9161_v13  ;;  %v1101_v41 = vmul.f32 %v9684_v37, %v813_v63  ;;  %v9847_v39 = vcombine.low %v1398_v15, %v1399_v57  ;;  %v9854_v54 = vpop.permute.xlu0 %1009  ;;  %v1401_v13 = vld [vmem:[#allocation2 + $0x5c] sm:$0xf]  ;;  %v9866_v57 = vpop.permute.xlu1 %1014 }
 0x139   : > { %11726 = vst [vmem:[#allocation20_spill] sm:$0xff] %v9833_v51  ;;  %8061 = vmatmul.mubr.bf16.gmra.mrb[64].mxu0 %v9831_v12  ;;  %v1104_v49 = vmul.f32 %v9729_v4, %v816_v45  ;;  %8316 = vmatprep.mubr.bf16.mxu1 %v9840_v56  ;;  %v9860_v37 = vcombine.low %v3002_v59, %v3003_v50 }
 0x13a   : > { %11727 = vst [vmem:[#allocation21_spill] sm:$0xff] %v9842_v52  ;;  %v1102_v43 = vmul.f32 %v9692_v58, %v814_v9  ;;  %8064 = vmatprep.mubr.bf16.mxu0 %v9842_v52  ;;  %v8010_v23 = vpop.f32.mrb[28].mxu0  ;;  %v9862_v3 = vcombine.low %v3003_v50, %v3004_v55  ;;  %8363 = vmatpush3.bf16.msra.mxu1 %v9152_v53 }
 0x13b   : > { %11728 = vst [vmem:[#allocation22_spill] sm:$0xff] %v9860_v37  ;;  %v719_v15 = vadd.f32 %v8010_v23, %v9618_v5  ;;  %v710_v63 = vpop.f32.mrb[29].mxu0  ;;  %8156 = vmatprep.subr.bf16.mxu0 %v9852_v6  ;;  %v7437_v4 = vpack.c.bf16 %v1104_v49, %v1103_v1  ;;  %8412 = vmatprep.subr.bf16.mxu1 %v9838_v18 }
 0x13c   : > { %v7432_v45 = vpack.c.bf16 %v1102_v43, %v1101_v41  ;;  %v8011_v9 = vpop.f32.mrb[30].mxu0  ;;  %v711_v50 = vadd.f32 %v9618_v5, %v710_v63  ;;  %v9873_v12 = vcombine.low %v1400_v25, %v1401_v13  ;;  %v1923_v63 = vshrl.u32 %v9668_v31, 16  ;;  %v3007_v25 = vld [vmem:[#allocation2 + $0x68] sm:$0xf]  ;;  %v9882_v51 = vpop.permute.xlu0 %1019 }
 0x13d   : > { %8317 = vmatmul.mubr.bf16.gmra.mrb[16].mxu1 %v9862_v3  ;;  %v819_v59 = vmax.f32 %v719_v15, 0.0  ;;  %v722_v23 = vadd.f32 %v8011_v9, %v9618_v5  ;;  %v713_v52 = vpop.f32.mrb[31].mxu0  ;;  %v1402_v53 = vld [vmem:[#allocation2 + $0x60] sm:$0xf]  ;;  %7612 = vst [vmem:[#allocation2 + $0x78] sm:$0xff] %v7437_v4   ;;  %v1926_v9 = vshll.u32 %v9668_v31, 16  ;;  %v9894_v24 = vpop.permute.xlu1 %1024 }
 0x13e   : > { %v3005_v61 = vld [vmem:[#allocation2 + $0x60] sm:$0xf]  ;;  %7611 = vst [vmem:[#allocation2 + $0x70] sm:$0xff] %v7432_v45   ;;  %v714_v1 = vadd.f32 %v9618_v5, %v713_v52  ;;  %v9876_v43 = vcombine.low %v1401_v13, %v1402_v53  ;;  %v3006_v41 = vld [vmem:[#allocation2 + $0x64] sm:$0xf]  ;;  %v817_v16 = vmax.f32 %v711_v50, 0.0 }
 0x13f   : > { %v9878_v49 = vcombine.low %v3004_v55, %v3005_v61  ;;  %v1403_v58 = vld [vmem:[#allocation2 + $0x64] sm:$0xf]  ;;  %v1404_v15 = vld [vmem:[#allocation2 + $0x68] sm:$0xf]  ;;  %v820_v37 = vmax.f32 %v722_v23, 0.0  ;;  %v4165_v52 = vshll.u32 %v9707_v42, 16  ;;  %v1107_v13 = vmul.f32 %v9784_v60, %v819_v59 }
 0x140   : > { %11729 = vst [vmem:[#allocation23_spill] sm:$0xff] %v9876_v43  ;;  %v818_v45 = vmax.f32 %v714_v1, 0.0  ;;  %v3008_v55 = vld [vmem:[#allocation2 + $0x6c] sm:$0xf]  ;;  %v9890_v31 = vcombine.low %v3005_v61, %v3006_v41  ;;  %v9892_v50 = vcombine.low %v1403_v58, %v1404_v15  ;;  %v9897_v48 = vcombine.low %v1402_v53, %v1403_v58 }
 0x141   : > { %11730 = vst [vmem:[#allocation24_spill] sm:$0xff] %v9878_v49  ;;  %v1105_v49 = vmul.f32 %v9751_v14, %v817_v16  ;;  %v1108_v47 = vmul.f32 %v9795_v32, %v820_v37  ;;  %8065 = vmatmul.mubr.bf16.gmra.mrb[68].mxu0 %v9876_v43  ;;  %v1405_v23 = vld [vmem:[#allocation2 + $0x6c] sm:$0xf]  ;;  %v9899_v60 = vcombine.low %v3006_v41, %v3007_v25  ;;  %v9903_v14 = vrot.slane %v1923_v63, 3 }
 0x142   : > { %11731 = vst [vmem:[#allocation25_spill] sm:$0xff] %v9892_v50  ;;  %v1106_v4 = vmul.f32 %v9761_v28, %v818_v45  ;;  %v9901_v59 = vcombine.low %v3007_v25, %v3008_v55  ;;  %v8014_v16 = vpop.f32.mrb[32].mxu0  ;;  %8320 = vmatprep.mubr.bf16.mxu1 %v9890_v31  ;;  %8068 = vmatprep.mubr.bf16.mxu0 %v9892_v50  ;;  %v9910_v28 = vrot.slane %v1926_v9, 4  ;;  %v9914_v63 = vrot.slane %v4165_v52, 1  ;;  %v9919_v9 = vpop.permute.xlu0 %1029 }
 0x143   : > { %11732 = vst [vmem:[#allocation26_spill] sm:$0xff] %v9899_v60  ;;  %v7447_v32 = vpack.c.bf16 %v1108_v47, %v1107_v13  ;;  %v735_v61 = vadd.f32 %v8014_v16, %v9618_v5  ;;  %v726_v37 = vpop.f32.mrb[33].mxu0  ;;  %v9908_v1 = vcombine.low %v1404_v15, %v1405_v23  ;;  %v1035_v60 = vpop.permute.xlu1 %1034 }
 0x144   : > { %11733 = vst [vmem:[#allocation27_spill] sm:$0xff] %v9901_v59  ;;  %v7442_v41 = vpack.c.bf16 %v1106_v4, %v1105_v49  ;;  %v8015_v25 = vpop.f32.mrb[34].mxu0  ;;  %v727_v13 = vadd.f32 %v9618_v5, %v726_v37  ;;  %v1408_v43 = vld [vmem:[#allocation2 + $0x78] sm:$0xf] }
 0x145   : > { %7614 = vst [vmem:[#allocation2 + $0x88] sm:$0xff] %v7447_v32   ;;  %8321 = vmatmul.mubr.bf16.gmra.mrb[20].mxu1 %v9901_v59  ;;  %v823_v47 = vmax.f32 %v735_v61, 0.0  ;;  %v738_v45 = vadd.f32 %v8015_v25, %v9618_v5  ;;  %v729_v15 = vpop.f32.mrb[35].mxu0  ;;  %v1406_v16 = vld [vmem:[#allocation2 + $0x70] sm:$0xf] }
 0x146   : > { %7613 = vst [vmem:[#allocation2 + $0x80] sm:$0xff] %v7442_v41   ;;  %v730_v49 = vadd.f32 %v9618_v5, %v729_v15  ;;  %v9924_v4 = vcombine.low %v1405_v23, %v1406_v16  ;;  %v3009_v52 = vld [vmem:[#allocation2 + $0x70] sm:$0xf]  ;;  %v3010_v32 = vld [vmem:[#allocation2 + $0x74] sm:$0xf]  ;;  %v821_v61 = vmax.f32 %v727_v13, 0.0 }
 0x147   : > { %v824_v50 = vmax.f32 %v738_v45, 0.0  ;;  %v9926_v37 = vcombine.low %v3008_v55, %v3009_v52  ;;  %v1407_v25 = vld [vmem:[#allocation2 + $0x74] sm:$0xf]  ;;  %v9928_v46 = vcombine.low %v3009_v52, %v3010_v32  ;;  %v3011_v41 = vld [vmem:[#allocation2 + $0x78] sm:$0xf]  ;;  %v1111_v13 = vmul.f32 %v9854_v54, %v823_v47 }
 0x148   : > { %11734 = vst [vmem:[#allocation28_spill] sm:$0xff] %v9924_v4  ;;  %v822_v7 = vmax.f32 %v730_v49, 0.0  ;;  %v9930_v58 = vcombine.low %v1407_v25, %v1408_v43  ;;  %v9932_v53 = vcombine.low %v1406_v16, %v1407_v25  ;;  %v3012_v15 = vld [vmem:[#allocation2 + $0x7c] sm:$0xf]  ;;  %v1109_v52 = vmul.f32 %v9823_v26, %v821_v61  ;;  %v9951_v49 = vpop.permute.xlu0 %1039 }
 0x149   : > { %11735 = vst [vmem:[#allocation29_spill] sm:$0xff] %v9926_v37  ;;  %11736 = vst [vmem:[#allocation30_spill] sm:$0xff] %v9928_v46  ;;  %v1112_v55 = vmul.f32 %v9866_v57, %v824_v50  ;;  %8069 = vmatmul.mubr.bf16.gmra.mrb[72].mxu0 %v9924_v4  ;;  %v1409_v45 = vld [vmem:[#allocation2 + $0x7c] sm:$0xf]  ;;  %8324 = vmatprep.mubr.bf16.mxu1 %v9928_v46  ;;  %v9944_v25 = vcombine.low %v3010_v32, %v3011_v41  ;;  %v4150_v61 = vshrl.u32 %v9653_v20, 16  ;;  %v9959_v4 = vpop.permute.xlu1 %1044 }
 0x14a   : > { %11737 = vst [vmem:[#allocation31_spill] sm:$0xff] %v9930_v58  ;;  %v1110_v16 = vmul.f32 %v9827_v29, %v822_v7  ;;  %8072 = vmatprep.mubr.bf16.mxu0 %v9930_v58  ;;  %v8018_v33 = vpop.f32.mrb[36].mxu0  ;;  %v9946_v54 = vcombine.low %v3011_v41, %v3012_v15  ;;  %v9949_v47 = vcombine.low %v1408_v43, %v1409_v45  ;;  %v11740_v32 = vshll.u32 %v9653_v20, 16 }
 0x14b   : > { %11738 = vst [vmem:[#allocation32_spill] sm:$0xff] %v9944_v25  ;;  %v7457_v23 = vpack.c.bf16 %v1112_v55, %v1111_v13  ;;  %v751_v57 = vadd.f32 %v8018_v33, %v9618_v5  ;;  %v742_v50 = vpop.f32.mrb[37].mxu0 }
 0x14c   : > { %11739 = vst [vmem:[#allocation33_spill] sm:$0xff] %v9946_v54  ;;  %v7452_v26 = vpack.c.bf16 %v1110_v16, %v1109_v52  ;;  %v743_v7 = vadd.f32 %v9618_v5, %v742_v50  ;;  %v8019_v29 = vpop.f32.mrb[38].mxu0  ;;  %v4154_v58 = vrot.slane %v11740_v32, 1  ;;  %v1412_v55 = vld [vmem:[#allocation2 + $0x88] sm:$0xf] }
 0x14d   : > { %7616 = vst [vmem:[#allocation2 + $0x98] sm:$0xff] %v7457_v23   ;;  %8325 = vmatmul.mubr.bf16.gmra.mrb[24].mxu1 %v9946_v54  ;;  %v827_v41 = vmax.f32 %v751_v57, 0.0  ;;  %v754_v33 = vadd.f32 %v8019_v29, %v9618_v5  ;;  %v745_v43 = vpop.f32.mrb[39].mxu0  ;;  %v1410_v13 = vld [vmem:[#allocation2 + $0x80] sm:$0xf]  ;;  %v4157_v23 = vshll.u32 %v9673_v34, 16  ;;  %v1055_v54 = vpop.permute.xlu1 %1054 }
 0x14e   : > { %7615 = vst [vmem:[#allocation2 + $0x90] sm:$0xff] %v7452_v26   ;;  %v825_v52 = vmax.f32 %v743_v7, 0.0  ;;  %v746_v16 = vadd.f32 %v9618_v5, %v745_v43  ;;  %v9962_v50 = vcombine.low %v1409_v45, %v1410_v13  ;;  %v3013_v25 = vld [vmem:[#allocation2 + $0x80] sm:$0xf]  ;;  %v3014_v20 = vld [vmem:[#allocation2 + $0x84] sm:$0xf]  ;;  %v4155_v43 = vor.u32 %v4154_v58, %v4150_v61 }
 0x14f   : > { %v828_v57 = vmax.f32 %v754_v33, 0.0  ;;  %v9966_v37 = vcombine.low %v3012_v15, %v3013_v25  ;;  %v9968_v29 = vcombine.low %v3013_v25, %v3014_v20  ;;  %v1411_v8 = vld [vmem:[#allocation2 + $0x84] sm:$0xf]  ;;  %v3015_v21 = vld [vmem:[#allocation2 + $0x88] sm:$0xf]  ;;  %v1115_v46 = vmul.f32 %v9919_v9, %v827_v41  ;;  %v1050_v33 = vpop.permute.xlu0 %1049 }
 0x150   : > { %11741 = vst [vmem:[#allocation34_spill] sm:$0xff] %v9962_v50  ;;  %v826_v35 = vmax.f32 %v746_v16, 0.0  ;;  %v9970_v26 = vcombine.low %v1411_v8, %v1412_v55  ;;  %v9972_v7 = vcombine.low %v1410_v13, %v1411_v8  ;;  %v3016_v45 = vld [vmem:[#allocation2 + $0x8c] sm:$0xf]  ;;  %v9978_v15 = vcombine.low %v3014_v20, %v3015_v21 }
 0x151   : > { %11742 = vst [vmem:[#allocation35_spill] sm:$0xff] %v9966_v37  ;;  %v1116_v59 = vmul.f32 %v1035_v60, %v828_v57  ;;  %8073 = vmatmul.mubr.bf16.gmra.mrb[76].mxu0 %v9962_v50  ;;  %8328 = vmatprep.mubr.bf16.mxu1 %v9968_v29  ;;  %v1413_v25 = vld [vmem:[#allocation2 + $0x8c] sm:$0xf]  ;;  %v1113_v8 = vmul.f32 %v9882_v51, %v825_v52  ;;  %v9984_v61 = vrot.slane %v4157_v23, 1 }
 0x152   : > { %11743 = vst [vmem:[#allocation36_spill] sm:$0xff] %v9970_v26  ;;  %11744 = vst [vmem:[#allocation37_spill] sm:$0xff] %v9978_v15  ;;  %v1114_v13 = vmul.f32 %v9894_v24, %v826_v35  ;;  %8076 = vmatprep.mubr.bf16.mxu0 %v9970_v26  ;;  %v8022_v58 = vpop.f32.mrb[40].mxu0  ;;  %v9987_v41 = vcombine.low %v3015_v21, %v3016_v45  ;;  %v9991_v52 = vcombine.low %v1412_v55, %v1413_v25 }
 0x153   : > { %v7467_v9 = vpack.c.bf16 %v1116_v59, %v1115_v46  ;;  %v767_v20 = vadd.f32 %v8022_v58, %v9618_v5  ;;  %v758_v57 = vpop.f32.mrb[41].mxu0  ;;  %v9995_v24 = vsel %vm2447_vm1, %v4155_v43, %v9984_v61  ;;  %v10007_v15 = vpop.permute.xlu0 %1059 }
 0x154   : > { %11745 = vst [vmem:[#allocation38_spill] sm:$0xff] %v9987_v41  ;;  %v7462_v32 = vpack.c.bf16 %v1114_v13, %v1113_v8  ;;  %v759_v16 = vadd.f32 %v9618_v5, %v758_v57  ;;  %v8023_v51 = vpop.f32.mrb[42].mxu0  ;;  %v1416_v35 = vld [vmem:[#allocation2 + $0x98] sm:$0xf] }
 0x155   : > { %7618 = vst [vmem:[#allocation2 + $0xa8] sm:$0xff] %v7467_v9   ;;  %8329 = vmatmul.mubr.bf16.gmra.mrb[28].mxu1 %v9987_v41  ;;  %v831_v21 = vmax.f32 %v767_v20, 0.0  ;;  %v770_v46 = vadd.f32 %v8023_v51, %v9618_v5  ;;  %v761_v59 = vpop.f32.mrb[43].mxu0  ;;  %v1414_v23 = vld [vmem:[#allocation2 + $0x90] sm:$0xf] }
 0x156   : > { %v3017_v58 = vld [vmem:[#allocation2 + $0x90] sm:$0xf]  ;;  %7617 = vst [vmem:[#allocation2 + $0xa0] sm:$0xff] %v7462_v32   ;;  %v829_v13 = vmax.f32 %v759_v16, 0.0  ;;  %v762_v55 = vadd.f32 %v9618_v5, %v761_v59  ;;  %v10001_v57 = vcombine.low %v1413_v25, %v1414_v23  ;;  %v3018_v60 = vld [vmem:[#allocation2 + $0x94] sm:$0xf] }
 0x157   : > { %v1415_v43 = vld [vmem:[#allocation2 + $0x94] sm:$0xf]  ;;  %v832_v20 = vmax.f32 %v770_v46, 0.0  ;;  %v10005_v50 = vcombine.low %v3016_v45, %v3017_v58  ;;  %v3019_v51 = vld [vmem:[#allocation2 + $0x98] sm:$0xf]  ;;  %v10010_v16 = vcombine.low %v3017_v58, %v3018_v60  ;;  %v1119_v37 = vmul.f32 %v1050_v33, %v831_v21  ;;  %v1065_v46 = vpop.permute.xlu1 %1064 }
 0x158   : > { %11746 = vst [vmem:[#allocation39_spill] sm:$0xff] %v10001_v57  ;;  %v830_v32 = vmax.f32 %v762_v55, 0.0  ;;  %v10012_v59 = vcombine.low %v1415_v43, %v1416_v35  ;;  %v3020_v25 = vld [vmem:[#allocation2 + $0x9c] sm:$0xf]  ;;  %v10015_v9 = vcombine.low %v1414_v23, %v1415_v43  ;;  %v10019_v45 = vor.u32 %v9910_v28, %v9903_v14 }
 0x159   : > { %11747 = vst [vmem:[#allocation40_spill] sm:$0xff] %v10005_v50  ;;  %v1120_v41 = vmul.f32 %v1055_v54, %v832_v20  ;;  %8077 = vmatmul.mubr.bf16.gmra.mrb[80].mxu0 %v10001_v57  ;;  %v1117_v55 = vmul.f32 %v9951_v49, %v829_v13  ;;  %8332 = vmatprep.mubr.bf16.mxu1 %v10010_v16  ;;  %v1417_v21 = vld [vmem:[#allocation2 + $0x9c] sm:$0xf] }
 0x15a   : > { %11748 = vst [vmem:[#allocation41_spill] sm:$0xff] %v10012_v59  ;;  %v1118_v58 = vmul.f32 %v9959_v4, %v830_v32  ;;  %8080 = vmatprep.mubr.bf16.mxu0 %v10012_v59  ;;  %v10026_v54 = vcombine.low %v3018_v60, %v3019_v51  ;;  %v8026_v33 = vpop.f32.mrb[44].mxu0  ;;  %v10029_v14 = vcombine.low %v3019_v51, %v3020_v25  ;;  %v9252_v60 = vld [vmem:[%s11585_s3] ss:$0 sm:$0xff] }
 0x15b   : > { %v7477_v43 = vpack.c.bf16 %v1120_v41, %v1119_v37  ;;  %v783_v28 = vadd.f32 %v8026_v33, %v9618_v5  ;;  %v774_v20 = vpop.f32.mrb[45].mxu0  ;;  %v10038_v33 = vcombine.low %v1416_v35, %v1417_v21 }
 0x15c   : > { %11749 = vst [vmem:[#allocation42_spill] sm:$0xff] %v10026_v54  ;;  %11750 = vst [vmem:[#allocation43_spill] sm:$0xff] %v10029_v14  ;;  %v7472_v13 = vpack.c.bf16 %v1118_v58, %v1117_v55  ;;  %v775_v32 = vadd.f32 %v9252_v60, %v774_v20  ;;  %v8027_v26 = vpop.f32.mrb[46].mxu0  ;;  %v1420_v8 = vld [vmem:[#allocation2 + $0xa8] sm:$0xf]  ;;  %v10043_v55 = vsel %vm1904_vm0, %v9603_v0, %v10019_v45  ;;  %v1070_v58 = vpop.permute.xlu0 %1069 }
 0x15d   : > { %7620 = vst [vmem:[#allocation2 + $0xb8] sm:$0xff] %v7477_v43   ;;  %8333 = vmatmul.mubr.bf16.gmra.mrb[32].mxu1 %v10029_v14  ;;  %v835_v37 = vmax.f32 %v783_v28, 0.0  ;;  %v786_v41 = vadd.f32 %v9252_v60, %v8027_v26  ;;  %v777_v51 = vpop.f32.mrb[47].mxu0  ;;  %v1418_v5 = vld [vmem:[#allocation2 + $0xa0] sm:$0xf]  ;;  %v1075_v14 = vpop.permute.xlu1 %1074 }
 0x15e   : > { %v3021_v49 = vld [vmem:[#allocation2 + $0xa0] sm:$0xf]  ;;  %7619 = vst [vmem:[#allocation2 + $0xb0] sm:$0xff] %v7472_v13   ;;  %v833_v20 = vmax.f32 %v775_v32, 0.0  ;;  %v778_v4 = vadd.f32 %v9252_v60, %v777_v51  ;;  %v10045_v23 = vcombine.low %v1417_v21, %v1418_v5  ;;  %v3022_v43 = vld [vmem:[#allocation2 + $0xa4] sm:$0xf] }
 0x15f   : > { %v10047_v59 = vcombine.low %v3020_v25, %v3021_v49  ;;  %v1419_v26 = vld [vmem:[#allocation2 + $0xa4] sm:$0xf]  ;;  %v1123_v57 = vmul.f32 %v1070_v58, %v835_v37  ;;  %v836_v54 = vmax.f32 %v786_v41, 0.0  ;;  %v3023_v50 = vld [vmem:[#allocation2 + $0xa8] sm:$0xf]  ;;  %v11753_v21 = vshrl.u32 %v9675_v38, 16 }
 0x160   : > { %11751 = vst [vmem:[#allocation44_spill] sm:$0xff] %v10045_v23  ;;  %v834_v32 = vmax.f32 %v778_v4, 0.0  ;;  %v3024_v60 = vld [vmem:[#allocation2 + $0xac] sm:$0xf]  ;;  %v10056_v28 = vcombine.low %v3021_v49, %v3022_v43  ;;  %v10058_v35 = vcombine.low %v1419_v26, %v1420_v8  ;;  %v1121_v41 = vmul.f32 %v10007_v15, %v833_v20 }
 0x161   : > { %11752 = vst [vmem:[#allocation45_spill] sm:$0xff] %v10047_v59  ;;  %v1934_v51 = vrot.slane %v11753_v21, 3  ;;  %v7319_v25 = vpack.c.bf16 %v1123_v57, %v1123_v57  ;;  %v1124_v59 = vmul.f32 %v1075_v14, %v836_v54  ;;  %8081 = vmatmul.mubr.bf16.gmra.mrb[84].mxu0 %v10045_v23  ;;  %v1421_v37 = vld [vmem:[#allocation2 + $0xac] sm:$0xf]  ;;  %v10061_v0 = vcombine.low %v1418_v5, %v1419_v26 }
 0x162   : > { %11754 = vst [vmem:[#allocation46_spill] sm:$0xff] %v10058_v35  ;;  %v1122_v58 = vmul.f32 %v1065_v46, %v834_v32  ;;  %v10063_v13 = vcombine.low %v3022_v43, %v3023_v50  ;;  %8336 = vmatprep.mubr.bf16.mxu1 %v10056_v28  ;;  %8084 = vmatprep.mubr.bf16.mxu0 %v10058_v35  ;;  %v11756_v14 = vshll.u32 %v9675_v38, 16  ;;  %v11765_v46 = vshll.u32 %v9720_v27, 16 }
 0x163   : > { %1376 = vst [vmem:[#allocation2 + $0xc8] sm:$0xf] %v7319_v25  ;;  %v7320_v4 = vpack.c.bf16 %v1124_v59, %v1124_v59  ;;  %v10067_v57 = vcombine.low %v3023_v50, %v3024_v60  ;;  %v10069_v54 = vcombine.low %v1420_v8, %v1421_v37 }
 0x164   : > { %11755 = vst [vmem:[#allocation47_spill] sm:$0xff] %v10063_v13  ;;  %v1937_v49 = vrot.slane %v11756_v14, 4  ;;  %v7482_v20 = vpack.c.bf16 %v1122_v58, %v1121_v41  ;;  %v1424_v43 = vld [vmem:[#allocation2 + $0xb8] sm:$0xf]  ;;  %v11758_v41 = vshrl.u32 %v9673_v34, 16 }
 0x165   : > { %1377 = vst [vmem:[#allocation2 + $0xcc] sm:$0x7] %v7320_v4  ;;  %8337 = vmatmul.mubr.bf16.gmra.mrb[36].mxu1 %v10067_v57  ;;  %v1422_v8 = vld [vmem:[#allocation2 + $0xb0] sm:$0xf]  ;;  %v3026_v25 = vld [vmem:[#allocation2 + $0xb4] sm:$0xf] }
 0x166   : > { %v10080_v38 = vor.u32 %v1937_v49, %v1934_v51  ;;  %7621 = vst [vmem:[#allocation2 + $0xc0] sm:$0xff] %v7482_v20   ;;  %v10082_v32 = vcombine.low %v1421_v37, %v1422_v8  ;;  %v3025_v21 = vld [vmem:[#allocation2 + $0xb0] sm:$0xf]  ;;  %v1423_v14 = vld [vmem:[#allocation2 + $0xb4] sm:$0xf]  ;;  %v4163_v58 = vor.u32 %v11758_v41, %v9984_v61  ;;  %v11764_v20 = vshrl.u32 %v9720_v27, 16 }
 0x167   : > { %v10087_v59 = vcombine.low %v3024_v60, %v3025_v21  ;;  %v10089_v26 = vcombine.low %v3025_v21, %v3026_v25  ;;  %v10091_v4 = vcombine.low %v1423_v14, %v1424_v43  ;;  %v10093_v50 = vcombine.low %v1422_v8, %v1423_v14  ;;  %v3027_v51 = vld [vmem:[#allocation2 + $0xb8] sm:$0xf]  ;;  %v3028_v49 = vld [vmem:[#allocation2 + $0xbc] sm:$0xf] }
 0x168   : > { %11757 = vst [vmem:[#allocation48_spill] sm:$0xff] %v10082_v32  ;;  %v10097_v5 = vcombine.low %v3026_v25, %v3027_v51  ;;  %v10102_v34 = vsel %vm1904_vm0, %v10019_v45, %v10080_v38  ;;  %v1425_v14 = vld [vmem:[#allocation2 + $0xbc] sm:$0xf]  ;;  %v10114_v61 = vcombine.low %v3027_v51, %v3028_v49  ;;  %v4169_v8 = vshrl.u32 %v9707_v42, 16 }
 0x169   : > { %11759 = vst [vmem:[#allocation49_spill] sm:$0xff] %v10087_v59  ;;  %11760 = vst [vmem:[#allocation50_spill] sm:$0xff] %v10089_v26  ;;  %8085 = vmatmul.mubr.bf16.gmra.mrb[88].mxu0 %v10082_v32  ;;  %8340 = vmatprep.mubr.bf16.mxu1 %v10089_v26  ;;  %v4173_v21 = vshll.u32 %v9724_v30, 16  ;;  %v1943_v37 = vrot.slane %v11764_v20, 3  ;;  %v1946_v25 = vrot.slane %v11765_v46, 4  ;;  %v10124_v15 = vcombine.low %v1424_v43, %v1425_v14 }
 0x16a   : > { %11761 = vst [vmem:[#allocation51_spill] sm:$0xff] %v10091_v4  ;;  %11762 = vst [vmem:[#allocation52_spill] sm:$0xff] %v10097_v5  ;;  %8088 = vmatprep.mubr.bf16.mxu0 %v10091_v4  ;;  %v10116_v60 = vld [vmem:[#allocation2 + $0xc8] sm:$0xf]  ;;  %v11766_v45 = vshrl.u32 %v9742_v36, 16  ;;  %v11767_v4 = vshll.u32 %v9742_v36, 16  ;;  %v10136_v27 = vsel %vm2447_vm1, %v4163_v58, %v9914_v63  ;;  %v4171_v46 = vor.u32 %v4169_v8, %v9914_v63 }
 0x16b   : > { %11763 = vst [vmem:[#allocation53_spill] sm:$0xff] %v10114_v61  ;;  %v4181_v42 = vshll.u32 %v9746_v44, 16  ;;  %v1947_v43 = vor.u32 %v1946_v25, %v1943_v37  ;;  %v4175_v26 = vrot.slane %v4173_v21, 1  ;;  %v11770_v37 = vshrl.u32 %v9767_v22, 16 }
 0x16c   : > { %v10126_v41 = vld [vmem:[#allocation2 + $0xcc] sm:$0x7]  ;;  %v1952_v51 = vrot.slane %v11766_v45, 3  ;;  %v1955_v32 = vrot.slane %v11767_v4, 4  ;;  %v2103_v4 = vshrl.u32 %v10093_v50, 16  ;;  %v11771_v63 = vshll.u32 %v9767_v22, 16 }
 0x16d   : > { %8341 = vmatmul.mubr.bf16.gmra.mrb[40].mxu1 %v10114_v61  ;;  %v1426_v35 = vld [vmem:[#allocation2 + $0xc0] sm:$0x7]  ;;  %v3030_v20 = vld [vmem:[#allocation2 + $0xc4] sm:$0xf]  ;;  %v10161_v21 = vsel %vm1904_vm0, %v10080_v38, %v1947_v43  ;;  %v1961_v8 = vrot.slane %v11770_v37, 3  ;;  %v4197_v22 = vshll.u32 %v9800_v17, 16 }
 0x16e   : > { %v3029_v23 = vld [vmem:[#allocation2 + $0xc0] sm:$0xf]  ;;  %v6911_v5 = vcombine.low %v1425_v14, %v1426_v35  ;;  %v10139_v59 = vcombine.low %v1426_v35, %v1426_v35  ;;  %v10144_v36 = vcombine.low %v3030_v20, %v10116_v60  ;;  %v7066_v35 = vcombine.low %v10116_v60, %v10126_v41 }
 0x16f   : > { %v10141_v45 = vcombine.low %v3028_v49, %v3029_v23  ;;  %v10148_v61 = vcombine.low %v3029_v23, %v3030_v20  ;;  %v4177_v49 = vshrl.u32 %v9724_v30, 16  ;;  %v4176_v23 = vsel %vm2447_vm1, %v4171_v46, %v4175_v26 }
 0x170   : > { %11769 = vst [vmem:[#allocation55_spill] sm:$0xff] %v10144_v36  ;;  %v1956_v14 = vor.u32 %v1955_v32, %v1952_v51  ;;  %v4183_v20 = vrot.slane %v4181_v42, 1  ;;  %v4185_v30 = vshrl.u32 %v9746_v44, 16  ;;  %v1964_v58 = vrot.slane %v11771_v63, 4 }
 0x171   : > { %11768 = vst [vmem:[#allocation54_spill] sm:$0xff] %v10141_v45  ;;  %8089 = vmatmul.mubr.bf16.gmra.mrb[92].mxu0 %v6911_v5  ;;  %8344 = vmatprep.mubr.bf16.mxu1 %v10148_v61  ;;  %v4179_v25 = vor.u32 %v4177_v49, %v4175_v26  ;;  %v4189_v5 = vshll.u32 %v9771_v40, 16  ;;  %v11772_v46 = vshrl.u32 %v9778_v62, 16  ;;  %v11773_v44 = vshll.u32 %v9778_v62, 16 }
 0x172   : > { %8108 = vmatprep.mubr.bf16.mxu0 %v9609_v2  ;;  %v10173_v38 = vsel %vm1904_vm0, %v1947_v43, %v1956_v14  ;;  %v4187_v26 = vor.u32 %v4185_v30, %v4183_v20  ;;  %v1965_v42 = vor.u32 %v1964_v58, %v1961_v8  ;;  %v4193_v49 = vshrl.u32 %v9771_v40, 16 }
 0x173   : > { %v1970_v13 = vrot.slane %v11772_v46, 3  ;;  %v10176_v2 = vsel %vm2447_vm1, %v4179_v25, %v4183_v20  ;;  %v1973_v32 = vrot.slane %v11773_v44, 4  ;;  %v4191_v51 = vrot.slane %v4189_v5, 1 }
 0x174   : > { %v4201_v43 = vshrl.u32 %v9800_v17, 16  ;;  %v4205_v37 = vshll.u32 %v9815_v11, 16  ;;  %v11774_v25 = vshrl.u32 %v9809_v10, 16  ;;  %v4199_v40 = vrot.slane %v4197_v22, 1 }
 0x175   : > { %8345 = vmatmul.mubr.bf16.gmra.mrb[44].mxu1 %v7066_v35  ;;  %v1974_v63 = vor.u32 %v1973_v32, %v1970_v13  ;;  %v10188_v62 = vsel %vm2447_vm1, %v4187_v26, %v4191_v51  ;;  %v10191_v35 = vsel %vm1904_vm0, %v1956_v14, %v1965_v42  ;;  %v4195_v58 = vor.u32 %v4193_v49, %v4191_v51 }
 0x176   : > { %8364 = vmatprep.mubr.bf16.mxu1 %v9995_v24  ;;  %v1979_v20 = vrot.slane %v11774_v25, 3  ;;  %v9169_v24 = vld [vmem:[%s11586_s4 + $0x88] sm:$0xff]   ;;  %v4207_v17 = vrot.slane %v4205_v37, 1  ;;  %v11775_v8 = vshll.u32 %v9809_v10, 16  ;;  %v11776_v5 = vshrl.u32 %v9818_v19, 16 }
 0x177   : > { %v10197_v13 = vsel %vm1904_vm0, %v1965_v42, %v1974_v63  ;;  %v10205_v14 = vsel %vm2447_vm1, %v4195_v58, %v4199_v40  ;;  %v4203_v26 = vor.u32 %v4201_v43, %v4199_v40  ;;  %v11777_v44 = vshll.u32 %v9818_v19, 16  ;;  %v9170_v40 = vld [vmem:[%s11586_s4 + $0x90] sm:$0xff]  }
 0x178   : > { %v1982_v30 = vrot.slane %v11775_v8, 4  ;;  %v1988_v46 = vrot.slane %v11776_v5, 3  ;;  %v4209_v51 = vshrl.u32 %v9815_v11, 16  ;;  %v4213_v10 = vshll.u32 %v9840_v56, 16 }
 0x179   : > { %8109 = vmatmul.mubr.bf16.vlgmr.msra.gmra.mrb[48].mxu0 %v10043_v55  ;;  %v1991_v32 = vrot.slane %v11777_v44, 4  ;;  %v4217_v49 = vshrl.u32 %v9840_v56, 16  ;;  %v4221_v22 = vshll.u32 %v9862_v3, 16  ;;  %v9163_v55 = vld [vmem:[%s11586_s4 + $0x188] sm:$0xff]   ;;  %v10219_v19 = vsel %vm2447_vm1, %v4203_v26, %v4207_v17 }
 0x17a   : > { %8112 = vmatprep.mubr.bf16.mxu0 %v10102_v34  ;;  %v1983_v42 = vor.u32 %v1982_v30, %v1979_v20  ;;  %8157 = vmatpush3.bf16.msra.mxu0 %v9852_v6  ;;  %v4211_v11 = vor.u32 %v4209_v51, %v4207_v17  ;;  %v11778_v34 = vshrl.u32 %v9847_v39, 16  ;;  %v4215_v56 = vrot.slane %v4213_v10, 1 }
 0x17b   : > { %v1992_v43 = vor.u32 %v1991_v32, %v1988_v46  ;;  %8158 = vmatprep.subr.bf16.mxu0 %v9169_v24  ;;  %v4223_v20 = vrot.slane %v4221_v22, 1  ;;  %v11779_v6 = vshll.u32 %v9847_v39, 16  ;;  %v11780_v8 = vshrl.u32 %v9873_v12, 16  ;;  %v9164_v32 = vld [vmem:[%s11586_s4 + $0x190] sm:$0xff]  }
 0x17c   : > { %v1997_v37 = vrot.slane %v11778_v34, 3  ;;  %v10224_v25 = vsel %vm1904_vm0, %v1974_v63, %v1983_v42  ;;  %v11781_v63 = vshll.u32 %v9873_v12, 16  ;;  %v4225_v46 = vshrl.u32 %v9862_v3, 16  ;;  %v11782_v3 = vld [vmem:[#allocation27_spill] sm:$0xff] }
 0x17d   : > { %v2000_v58 = vrot.slane %v11779_v6, 4  ;;  %8365 = vmatmul.mubr.bf16.vlgmr.msra.gmra.mrb[0].mxu1 %v10136_v27  ;;  %v10233_v17 = vsel %vm1904_vm0, %v1983_v42, %v1992_v43  ;;  %v2006_v30 = vrot.slane %v11780_v8, 3  ;;  %v10242_v39 = vsel %vm2447_vm1, %v4211_v11, %v4215_v56  ;;  %v9172_v34 = vld [vmem:[%s11586_s4 + $0x98] sm:$0xff]  }
 0x17e   : > { %v2009_v5 = vrot.slane %v11781_v63, 4  ;;  %8413 = vmatpush3.bf16.msra.mxu1 %v9838_v18  ;;  %8368 = vmatprep.mubr.bf16.mxu1 %v4176_v23  ;;  %v4219_v26 = vor.u32 %v4217_v49, %v4215_v56  ;;  %v4229_v27 = vshll.u32 %v9890_v31, 16  ;;  %v4227_v12 = vor.u32 %v4225_v46, %v4223_v20 }
 0x17f   : > { %v2001_v44 = vor.u32 %v2000_v58, %v1997_v37  ;;  %8414 = vmatprep.subr.bf16.mxu1 %v9163_v55  ;;  %v4233_v42 = vshrl.u32 %v9890_v31, 16  ;;  %v4237_v10 = vshll.u32 %v11782_v3, 16  ;;  %8159 = vmatpush3.bf16.msra.mxu0 %v9169_v24  ;;  %v11783_v22 = vshrl.u32 %v9897_v48, 16 }
 0x180   : > { %v2010_v51 = vor.u32 %v2009_v5, %v2006_v30  ;;  %v10251_v18 = vsel %vm2447_vm1, %v4219_v26, %v4223_v20  ;;  %v4231_v49 = vrot.slane %v4229_v27, 1  ;;  %8160 = vmatprep.subr.bf16.mxu0 %v9170_v40  ;;  %v11784_v37 = vshll.u32 %v9897_v48, 16  ;;  %v9165_v48 = vld [vmem:[%s11586_s4 + $0x198] sm:$0xff]  }
 0x181   : > { %v10254_v23 = vsel %vm1904_vm0, %v1992_v43, %v2001_v44  ;;  %v2015_v11 = vrot.slane %v11783_v22, 3  ;;  %8113 = vmatmul.mubr.bf16.gmra.mrb[52].mxu0 %v10161_v21  ;;  %v4239_v24 = vrot.slane %v4237_v10, 1  ;;  %v11785_v43 = vshrl.u32 %v9908_v1, 16  ;;  %v11787_v5 = vld [vmem:[#allocation30_spill] sm:$0xff] }
 0x182   : > { %v10263_v31 = vsel %vm1904_vm0, %v2001_v44, %v2010_v51  ;;  %v2018_v56 = vrot.slane %v11784_v37, 4  ;;  %8116 = vmatprep.mubr.bf16.mxu0 %v10173_v38  ;;  %8415 = vmatpush3.bf16.msra.mxu1 %v9163_v55  ;;  %v10271_v6 = vsel %vm2447_vm1, %v4227_v12, %v4231_v49  ;;  %v4235_v58 = vor.u32 %v4233_v42, %v4231_v49  ;;  %v11788_v55 = vld [vmem:[#allocation33_spill] sm:$0xff] }
 0x183   : > { %v2024_v20 = vrot.slane %v11785_v43, 3  ;;  %v11786_v8 = vshll.u32 %v9908_v1, 16  ;;  %v4241_v30 = vshrl.u32 %v11782_v3, 16  ;;  %8416 = vmatprep.subr.bf16.mxu1 %v9164_v32  ;;  %v4245_v46 = vshll.u32 %v11787_v5, 16  ;;  %8161 = vmatpush3.bf16.msra.mxu0 %v9170_v40  ;;  %v9173_v3 = vld [vmem:[%s11586_s4 + $0xa0] sm:$0xff]  }
 0x184   : > { %v2019_v63 = vor.u32 %v2018_v56, %v2015_v11  ;;  %v4249_v38 = vshrl.u32 %v11787_v5, 16  ;;  %v4253_v26 = vshll.u32 %v11788_v55, 16  ;;  %v10283_v44 = vsel %vm2447_vm1, %v4235_v58, %v4239_v24  ;;  %8162 = vmatprep.subr.bf16.mxu0 %v9172_v34  ;;  %v9175_v5 = vld [vmem:[%s11586_s4 + $0xa8] sm:$0xff]  }
 0x185   : > { %v2027_v21 = vrot.slane %v11786_v8, 4  ;;  %v4243_v27 = vor.u32 %v4241_v30, %v4239_v24  ;;  %v11789_v12 = vshrl.u32 %v9932_v53, 16  ;;  %8369 = vmatmul.mubr.bf16.gmra.mrb[4].mxu1 %v10176_v2  ;;  %v4247_v49 = vrot.slane %v4245_v46, 1  ;;  %v11793_v30 = vld [vmem:[#allocation38_spill] sm:$0xff] }
 0x186   : > { %v10292_v10 = vsel %vm1904_vm0, %v2010_v51, %v2019_v63  ;;  %v4255_v40 = vrot.slane %v4253_v26, 1  ;;  %v11790_v22 = vshll.u32 %v9932_v53, 16  ;;  %8372 = vmatprep.mubr.bf16.mxu1 %v10188_v62  ;;  %8417 = vmatpush3.bf16.msra.mxu1 %v9164_v32  ;;  %v11791_v37 = vshrl.u32 %v9949_v47, 16  ;;  %v9166_v62 = vld [vmem:[%s11586_s4 + $0x1a0] sm:$0xff]  }
 0x187   : > { %v2028_v1 = vor.u32 %v2027_v21, %v2024_v20  ;;  %v2033_v42 = vrot.slane %v11789_v12, 3  ;;  %v11792_v43 = vshll.u32 %v9949_v47, 16  ;;  %v4257_v51 = vshrl.u32 %v11788_v55, 16  ;;  %8418 = vmatprep.subr.bf16.mxu1 %v9165_v48  ;;  %8163 = vmatpush3.bf16.msra.mxu0 %v9172_v34 }
 0x188   : > { %v2036_v11 = vrot.slane %v11790_v22, 4  ;;  %v2042_v56 = vrot.slane %v11791_v37, 3  ;;  %v10306_v20 = vsel %vm2447_vm1, %v4243_v27, %v4247_v49  ;;  %v4251_v53 = vor.u32 %v4249_v38, %v4247_v49  ;;  %8164 = vmatprep.subr.bf16.mxu0 %v9173_v3 }
 0x189   : > { %v10298_v24 = vsel %vm1904_vm0, %v2019_v63, %v2028_v1  ;;  %v2045_v2 = vrot.slane %v11792_v43, 4  ;;  %v4261_v32 = vshll.u32 %v9968_v29, 16  ;;  %v4259_v21 = vor.u32 %v4257_v51, %v4255_v40  ;;  %8117 = vmatmul.mubr.bf16.gmra.mrb[56].mxu0 %v10191_v35  ;;  %v11798_v43 = vld [vmem:[#allocation43_spill] sm:$0xff] }
 0x18a   : > { %v2037_v58 = vor.u32 %v2036_v11, %v2033_v42  ;;  %v4265_v47 = vshrl.u32 %v9968_v29, 16  ;;  %v4269_v63 = vshll.u32 %v11793_v30, 16  ;;  %v10319_v46 = vsel %vm2447_vm1, %v4251_v53, %v4255_v40  ;;  %8120 = vmatprep.mubr.bf16.mxu0 %v10197_v13  ;;  %8419 = vmatpush3.bf16.msra.mxu1 %v9165_v48  ;;  %v9167_v48 = vld [vmem:[%s11586_s4 + $0x1a8] sm:$0xff]  }
 0x18b   : > { %v2046_v8 = vor.u32 %v2045_v2, %v2042_v56  ;;  %v4263_v34 = vrot.slane %v4261_v32, 1  ;;  %v11794_v55 = vshrl.u32 %v9972_v7, 16  ;;  %v11795_v12 = vshll.u32 %v9972_v7, 16  ;;  %8420 = vmatprep.subr.bf16.mxu1 %v9166_v62  ;;  %8165 = vmatpush3.bf16.msra.mxu0 %v9173_v3 }
 0x18c   : > { %v10322_v38 = vsel %vm1904_vm0, %v2028_v1, %v2037_v58  ;;  %v4271_v27 = vrot.slane %v4269_v63, 1  ;;  %v11796_v42 = vshrl.u32 %v9991_v52, 16  ;;  %v11797_v22 = vshll.u32 %v9991_v52, 16  ;;  %8166 = vmatprep.subr.bf16.mxu0 %v9175_v5  ;;  %v9177_v52 = vld [vmem:[%s11586_s4 + $0xb0] sm:$0xff]  }
 0x18d   : > { %v2051_v26 = vrot.slane %v11794_v55, 3  ;;  %v10328_v29 = vsel %vm1904_vm0, %v2037_v58, %v2046_v8  ;;  %v2054_v35 = vrot.slane %v11795_v12, 4  ;;  %v10335_v1 = vsel %vm2447_vm1, %v4259_v21, %v4263_v34  ;;  %8373 = vmatmul.mubr.bf16.gmra.mrb[8].mxu1 %v10205_v14 }
 0x18e   : > { %v2060_v49 = vrot.slane %v11796_v42, 3  ;;  %v4267_v40 = vor.u32 %v4265_v47, %v4263_v34  ;;  %v2063_v11 = vrot.slane %v11797_v22, 4  ;;  %v4273_v13 = vshrl.u32 %v11793_v30, 16  ;;  %8376 = vmatprep.mubr.bf16.mxu1 %v10219_v19  ;;  %8421 = vmatpush3.bf16.msra.mxu1 %v9166_v62  ;;  %v9171_v62 = vld [vmem:[%s11586_s4 + $0x1b0] sm:$0xff]  }
 0x18f   : > { %v2055_v7 = vor.u32 %v2054_v35, %v2051_v26  ;;  %v4277_v37 = vshll.u32 %v10010_v16, 16  ;;  %v4281_v56 = vshrl.u32 %v10010_v16, 16  ;;  %v4285_v2 = vshll.u32 %v11798_v43, 16  ;;  %8422 = vmatprep.subr.bf16.mxu1 %v9167_v48  ;;  %8167 = vmatpush3.bf16.msra.mxu0 %v9175_v5 }
 0x190   : > { %v10351_v51 = vsel %vm2447_vm1, %v4267_v40, %v4271_v27  ;;  %v2064_v53 = vor.u32 %v2063_v11, %v2060_v49  ;;  %v4275_v58 = vor.u32 %v4273_v13, %v4271_v27  ;;  %v11799_v3 = vshrl.u32 %v10015_v9, 16  ;;  %8168 = vmatprep.subr.bf16.mxu0 %v9177_v52 }
 0x191   : > { %v10357_v16 = vsel %vm1904_vm0, %v2046_v8, %v2055_v7  ;;  %v4279_v21 = vrot.slane %v4277_v37, 1  ;;  %v4287_v47 = vrot.slane %v4285_v2, 1  ;;  %v11800_v30 = vshll.u32 %v10015_v9, 16  ;;  %8121 = vmatmul.mubr.bf16.gmra.mrb[60].mxu0 %v10224_v25 }
 0x192   : > { %v2069_v32 = vrot.slane %v11799_v3, 3  ;;  %v10362_v14 = vsel %vm1904_vm0, %v2055_v7, %v2064_v53  ;;  %v11801_v34 = vshrl.u32 %v10038_v33, 16  ;;  %v11802_v26 = vshll.u32 %v10038_v33, 16  ;;  %v9180_v33 = vld [vmem:[%s11586_s4 + $0xb8] sm:$0xff]   ;;  %8124 = vmatprep.mubr.bf16.mxu0 %v10233_v17  ;;  %8423 = vmatpush3.bf16.msra.mxu1 %v9167_v48 }
 0x193   : > { %v2072_v63 = vrot.slane %v11800_v30, 4  ;;  %v4289_v19 = vshrl.u32 %v11798_v43, 16  ;;  %v10373_v9 = vsel %vm2447_vm1, %v4275_v58, %v4279_v21  ;;  %v4283_v8 = vor.u32 %v4281_v56, %v4279_v21  ;;  %8424 = vmatprep.subr.bf16.mxu1 %v9171_v62  ;;  %v9176_v48 = vld [vmem:[%s11586_s4 + $0x1b8] sm:$0xff]   ;;  %8169 = vmatpush3.bf16.msra.mxu0 %v9177_v52 }
 0x194   : > { %v2078_v55 = vrot.slane %v11801_v34, 3  ;;  %v2081_v27 = vrot.slane %v11802_v26, 4  ;;  %v4293_v35 = vshll.u32 %v10056_v28, 16  ;;  %v4297_v40 = vshrl.u32 %v10056_v28, 16  ;;  %8170 = vmatprep.subr.bf16.mxu0 %v9180_v33  ;;  %v11808_v34 = vld [vmem:[#allocation53_spill] sm:$0xff] }
 0x195   : > { %v2073_v12 = vor.u32 %v2072_v63, %v2069_v32  ;;  %v4291_v49 = vor.u32 %v4289_v19, %v4287_v47  ;;  %v4301_v5 = vshll.u32 %v10067_v57, 16  ;;  %v10384_v22 = vsel %vm2447_vm1, %v4283_v8, %v4287_v47  ;;  %8377 = vmatmul.mubr.bf16.gmra.mrb[12].mxu1 %v10242_v39  ;;  %v11807_v47 = vld [vmem:[#allocation50_spill] sm:$0xff] }
 0x196   : > { %v2082_v42 = vor.u32 %v2081_v27, %v2078_v55  ;;  %v4295_v13 = vrot.slane %v4293_v35, 1  ;;  %v11803_v7 = vshrl.u32 %v10061_v0, 16  ;;  %v11804_v28 = vshll.u32 %v10061_v0, 16  ;;  %8380 = vmatprep.mubr.bf16.mxu1 %v10251_v18  ;;  %8425 = vmatpush3.bf16.msra.mxu1 %v9171_v62  ;;  %v4128_v35 = vld [vmem:[#allocation2 + $0xcc] sm:$0xf]  ;;  %v10425_v18 = vld [vmem:[%s11586_s4 + $0x1c0] sm:$0xff]  }
 0x197   : > { %v10387_v11 = vsel %vm1904_vm0, %v2064_v53, %v2073_v12  ;;  %v4303_v56 = vrot.slane %v4301_v5, 1  ;;  %v11805_v17 = vshrl.u32 %v10069_v54, 16  ;;  %v11806_v3 = vshll.u32 %v10069_v54, 16  ;;  %8426 = vmatprep.subr.bf16.mxu1 %v9176_v48  ;;  %8171 = vmatpush3.bf16.msra.mxu0 %v9180_v33 }
 0x198   : > { %v2087_v37 = vrot.slane %v11803_v7, 3  ;;  %v10392_v25 = vsel %vm1904_vm0, %v2073_v12, %v2082_v42  ;;  %v2090_v43 = vrot.slane %v11804_v28, 4  ;;  %v10402_v53 = vsel %vm2447_vm1, %v4291_v49, %v4295_v13 }
 0x199   : > { %v2096_v2 = vrot.slane %v11805_v17, 3  ;;  %v4299_v58 = vor.u32 %v4297_v40, %v4295_v13  ;;  %v2099_v32 = vrot.slane %v11806_v3, 4  ;;  %v4305_v21 = vshrl.u32 %v10067_v57, 16  ;;  %8125 = vmatmul.mubr.bf16.gmra.mrb[64].mxu0 %v10254_v23 }
 0x19a   : > { %v2091_v0 = vor.u32 %v2090_v43, %v2087_v37  ;;  %v4309_v30 = vshll.u32 %v11807_v47, 16  ;;  %v4313_v63 = vshrl.u32 %v11807_v47, 16  ;;  %v4317_v55 = vshll.u32 %v11808_v34, 16  ;;  %v10443_v37 = vld [vmem:[%s11586_s4 + $0xc0] sm:$0xff]   ;;  %8128 = vmatprep.mubr.bf16.mxu0 %v10263_v31  ;;  %8427 = vmatpush3.bf16.msra.mxu1 %v9176_v48 }
 0x19b   : > { %v10413_v52 = vsel %vm2447_vm1, %v4299_v58, %v4303_v56  ;;  %v2100_v26 = vor.u32 %v2099_v32, %v2096_v2  ;;  %v4307_v54 = vor.u32 %v4305_v21, %v4303_v56  ;;  %v2105_v57 = vrot.slane %v2103_v4, 3  ;;  %8476 = vmatprep.subr.bf16.mxu1 %v10425_v18  ;;  %8220 = vmatprep.subr.bf16.mxu0 %v10443_v37 }
 0x19c   : > { %v10418_v39 = vsel %vm1904_vm0, %v2082_v42, %v2091_v0  ;;  %v4311_v27 = vrot.slane %v4309_v30, 1  ;;  %v4319_v19 = vrot.slane %v4317_v55, 1  ;;  %v11809_v8 = vshll.u32 %v10093_v50, 16 }
 0x19d   : > { %v10428_v62 = vsel %vm1904_vm0, %v2091_v0, %v2100_v26  ;;  %v11810_v4 = vshrl.u32 %v10124_v15, 16  ;;  %v11811_v49 = vshll.u32 %v10124_v15, 16  ;;  %v4321_v50 = vshrl.u32 %v11808_v34, 16  ;;  %8381 = vmatmul.mubr.bf16.gmra.mrb[16].mxu1 %v10271_v6  ;;  %v9253_v34 = vld [vmem:[#allocation2 + $0x10] sm:$0xf] }
 0x19e   : > { %v2108_v12 = vrot.slane %v11809_v8, 4  ;;  %v10437_v33 = vsel %vm2447_vm1, %v4307_v54, %v4311_v27  ;;  %v4315_v5 = vor.u32 %v4313_v63, %v4311_v27  ;;  %v4325_v7 = vshll.u32 %v10148_v61, 16  ;;  %8384 = vmatprep.mubr.bf16.mxu1 %v10283_v44  ;;  %v2984_v44 = vld [vmem:[#allocation2 + $0xc] sm:$0x8]  ;;  %v11817_v8 = vld [vmem:[#allocation6_spill] sm:$0xff] }
 0x19f   : > { %v2114_v42 = vrot.slane %v11810_v4, 3  ;;  %v2117_v40 = vrot.slane %v11811_v49, 4  ;;  %v4323_v56 = vor.u32 %v4321_v50, %v4319_v19  ;;  %v10447_v28 = vcombine.low %v10116_v60, %v4128_v35  ;;  %v11818_v49 = vld [vmem:[#allocation10_spill] sm:$0xff]  ;;  %v11819_v50 = vld [vmem:[#allocation12_spill] sm:$0xff] }
 0x1a0   : > { %v2109_v13 = vor.u32 %v2108_v12, %v2105_v57  ;;  %v4329_v23 = vshrl.u32 %v10148_v61, 16  ;;  %v10451_v43 = vsel %vm2447_vm1, %v4315_v5, %v4319_v19  ;;  %v4327_v2 = vrot.slane %v4325_v7, 1 }
 0x1a1   : > { %v2118_v15 = vor.u32 %v2117_v40, %v2114_v42  ;;  %v11812_v58 = vshrl.u32 %v10139_v59, 16  ;;  %v4333_v61 = vshll.u32 %v10447_v28, 16  ;;  %v11813_v31 = vshll.u32 %v10139_v59, 16  ;;  %8129 = vmatmul.mubr.bf16.gmra.mrb[68].mxu0 %v10292_v10  ;;  %v11814_v59 = vld [vmem:[#allocation3_spill] sm:$0xff]  ;;  %v11815_v10 = vld [vmem:[#allocation5_spill] sm:$0xff]  ;;  %v11835_v40 = vld [vmem:[#allocation4_spill] sm:$0xff] }
 0x1a2   : > { %v10454_v17 = vsel %vm1904_vm0, %v2100_v26, %v2109_v13  ;;  %v10468_v32 = vsel %vm2447_vm1, %v4323_v56, %v4327_v2  ;;  %v4331_v21 = vor.u32 %v4329_v23, %v4327_v2  ;;  %8132 = vmatprep.mubr.bf16.mxu0 %v10298_v24  ;;  %v2451_v6 = vshll.u32 %v11814_v59, 16  ;;  %v11816_v24 = vld [vmem:[#allocation8_spill] sm:$0xff] }
 0x1a3   : > { %v2123_v3 = vrot.slane %v11812_v58, 3  ;;  %v10461_v60 = vsel %vm1904_vm0, %v2109_v13, %v2118_v15  ;;  %v2126_v48 = vrot.slane %v11813_v31, 4  ;;  %v10471_v0 = vrot.slane %v4333_v61, 1  ;;  %v11820_v13 = vld [vmem:[#allocation14_spill] sm:$0xff]  ;;  %v11821_v56 = vld [vmem:[#allocation16_spill] sm:$0xff] }
 0x1a4   : > { %v10486_v55 = vcombine.low %v2984_v44, %v9253_v34  ;;  %v2449_v26 = vshrl.u32 %v11814_v59, 16  ;;  %v2453_v54 = vrot.slane %v2451_v6, 1  ;;  %v2464_v57 = vshll.u32 %v11815_v10, 16  ;;  %v11822_v58 = vld [vmem:[#allocation18_spill] sm:$0xff]  ;;  %v11823_v31 = vld [vmem:[#allocation20_spill] sm:$0xff]  ;;  %v11843_v6 = vld [vmem:[#allocation7_spill] sm:$0xff] }
 0x1a5   : > { %v2127_v47 = vor.u32 %v2126_v48, %v2123_v3  ;;  %v10475_v30 = vsel %vm2447_vm1, %v4331_v21, %v10471_v0  ;;  %8385 = vmatmul.mubr.bf16.gmra.mrb[20].mxu1 %v10306_v20  ;;  %v3191_v27 = vshrl.u32 %v11816_v24, 16  ;;  %v3194_v20 = vshll.u32 %v11816_v24, 16  ;;  %v4687_v61 = vld [vmem:[#allocation2 + $0x20] sm:$0xf]  ;;  %v4689_v23 = vld [vmem:[#allocation2 + $0x28] sm:$0xf] }
 0x1a6   : > { %8388 = vmatprep.mubr.bf16.mxu1 %v10319_v46  ;;  %v10497_v19 = vor.u32 %v2453_v54, %v2449_v26  ;;  %v4685_v26 = vld [vmem:[#allocation2 + $0x18] sm:$0x8]  ;;  %v4690_v21 = vld [vmem:[#allocation2 + $0x2c] sm:$0xf]  ;;  %v4691_v54 = vld [vmem:[#allocation2 + $0x30] sm:$0xf] }
 0x1a7   : > { %v10478_v63 = vsel %vm1904_vm0, %v2118_v15, %v2127_v47  ;;  %v10503_v4 = vrot.slane %v3191_v27, 3  ;;  %v10505_v42 = vrot.slane %v3194_v20, 4  ;;  %v11824_v47 = vld [vmem:[#allocation22_spill] sm:$0xff]  ;;  %v2456_v7 = vshll.u32 %v11835_v40, 16  ;;  %v10568_v46 = vld [vmem:[#allocation2 + $0x40] sm:$0xf] }
 0x1a8   : > { %v7118_v12 = vcombine.low %v4689_v23, %v4690_v21  ;;  %v10564_v23 = vld [vmem:[#allocation2 + $0x3c] sm:$0xf]  ;;  %11842 = vst [vmem:[#allocation43_spill] sm:$0xff] %v10568_v46  ;;  %v2460_v21 = vshrl.u32 %v11835_v40, 16  ;;  %v2468_v45 = vshrl.u32 %v11815_v10, 16 }
 0x1a9   : > { %8133 = vmatmul.mubr.bf16.gmra.mrb[72].mxu0 %v10322_v38  ;;  %11841 = vst [vmem:[#allocation38_spill] sm:$0xff] %v10564_v23  ;;  %v2472_v38 = vshll.u32 %v11843_v6, 16 }
 0x1aa   : > { %8136 = vmatprep.mubr.bf16.mxu0 %v10328_v29  ;;  %v10499_v29 = vrot.slane %v2464_v57, 1 }
 0x1ad   : > { %8389 = vmatmul.mubr.bf16.gmra.mrb[24].mxu1 %v10335_v1 }
 0x1ae   : > { %8392 = vmatprep.mubr.bf16.mxu1 %v10351_v51  ;;  %v2458_v51 = vrot.slane %v2456_v7, 1  ;;  %v4337_v7 = vshrl.u32 %v10447_v28, 16  ;;  %v2474_v28 = vrot.slane %v2472_v38, 1 }
 0x1b1   : > { %8137 = vmatmul.mubr.bf16.gmra.mrb[76].mxu0 %v10357_v16  ;;  %v4686_v16 = vld [vmem:[#allocation2 + $0x1c] sm:$0xf] }
 0x1b2   : > { %8140 = vmatprep.mubr.bf16.mxu0 %v10362_v14  ;;  %v4688_v14 = vld [vmem:[#allocation2 + $0x24] sm:$0xf]  ;;  %v7116_v1 = vcombine.low %v4685_v26, %v4686_v16 }
 0x1b3   : > { %v7117_v34 = vcombine.low %v4687_v61, %v4688_v14  ;;  %v10562_v61 = vld [vmem:[#allocation2 + $0x38] sm:$0xf]  ;;  %v4895_v14 = vshll.u32 %v7118_v12, 16 }
 0x1b4   : > { %11840 = vst [vmem:[#allocation33_spill] sm:$0xff] %v10562_v61  ;;  %v4875_v27 = vshrl.u32 %v7116_v1, 16  ;;  %v7120_v59 = vcombine.low %v10562_v61, %v10564_v23  ;;  %v2476_v23 = vshrl.u32 %v11843_v6, 16 }
 0x1b5   : > { %8393 = vmatmul.mubr.bf16.gmra.mrb[28].mxu1 %v10373_v9  ;;  %v10543_v9 = vcombine.low %v10126_v41, %v10126_v41  ;;  %v4883_v16 = vshrl.u32 %v7117_v34, 16  ;;  %v4886_v26 = vshll.u32 %v7117_v34, 16  ;;  %v11844_v41 = vld [vmem:[#allocation9_spill] sm:$0xff] }
 0x1b6   : > { %8396 = vmatprep.mubr.bf16.mxu1 %v10384_v22  ;;  %v10548_v22 = vld [vmem:[#allocation2 + $0x34] sm:$0xf]  ;;  %v4877_v34 = vrot.slane %v4875_v27, 3  ;;  %v2480_v35 = vshll.u32 %v11844_v41, 16  ;;  %v2462_v27 = vor.u32 %v2460_v21, %v2458_v51  ;;  %v2478_v6 = vor.u32 %v2476_v23, %v2474_v28 }
 0x1b7   : > { %11833 = vst [vmem:[#allocation27_spill] sm:$0xff] %v10543_v9  ;;  %11836 = vst [vmem:[#allocation30_spill] sm:$0xff] %v10548_v22  ;;  %v4892_v9 = vshrl.u32 %v7118_v12, 16  ;;  %v4885_v12 = vrot.slane %v4883_v16, 3  ;;  %v4888_v36 = vrot.slane %v4886_v26, 4 }
 0x1b8   : > { %v10589_v26 = vld [vmem:[#allocation2 + $0x4c] sm:$0xf]  ;;  %v2482_v21 = vrot.slane %v2480_v35, 1  ;;  %v10608_v35 = vsel %vm2447_vm1, %v2462_v27, %v10499_v29  ;;  %v10623_v27 = vld [vmem:[#allocation2 + $0x5c] sm:$0xf] }
 0x1b9   : > { %8141 = vmatmul.mubr.bf16.gmra.mrb[80].mxu0 %v10387_v11  ;;  %v7119_v11 = vcombine.low %v4691_v54, %v10548_v22  ;;  %v4696_v54 = vld [vmem:[#allocation2 + $0x44] sm:$0xf]  ;;  %v4894_v10 = vrot.slane %v4892_v9, 3  ;;  %v4889_v9 = vor.u32 %v4888_v36, %v4885_v12  ;;  %v4701_v12 = vld [vmem:[#allocation2 + $0x58] sm:$0xf] }
 0x1ba   : > { %8144 = vmatprep.mubr.bf16.mxu0 %v10392_v25  ;;  %v4878_v25 = vshll.u32 %v7116_v1, 16  ;;  %v10579_v1 = vsel %vm2447_vm1, %v10497_v19, %v2458_v51  ;;  %v11845_v19 = vld [vmem:[#allocation11_spill] sm:$0xff]  ;;  %v2470_v51 = vor.u32 %v2468_v45, %v10499_v29  ;;  %v10617_v23 = vsel %vm2447_vm1, %v2478_v6, %v2482_v21 }
 0x1bb   : > { %v4901_v15 = vshrl.u32 %v7119_v11, 16  ;;  %v2488_v5 = vshll.u32 %v11845_v19, 16  ;;  %v2492_v2 = vshrl.u32 %v11845_v19, 16 }
 0x1bc   : > { %v4880_v40 = vrot.slane %v4878_v25, 4 }
 0x1bd   : > { %8397 = vmatmul.mubr.bf16.gmra.mrb[32].mxu1 %v10402_v53  ;;  %v4904_v53 = vshll.u32 %v7119_v11, 16  ;;  %v4897_v11 = vrot.slane %v4895_v14, 4  ;;  %v4903_v48 = vrot.slane %v4901_v15, 3  ;;  %v2490_v14 = vrot.slane %v2488_v5, 1  ;;  %v11847_v5 = vld [vmem:[#allocation15_spill] sm:$0xff] }
 0x1be   : > { %8400 = vmatprep.mubr.bf16.mxu1 %v10413_v52  ;;  %v7121_v52 = vcombine.low %v10568_v46, %v4696_v54  ;;  %v4697_v54 = vld [vmem:[#allocation2 + $0x48] sm:$0xf]  ;;  %v4910_v46 = vshrl.u32 %v7120_v59, 16  ;;  %v4881_v38 = vor.u32 %v4880_v40, %v4877_v34 }
 0x1bf   : > { %v4906_v24 = vrot.slane %v4904_v53, 4  ;;  %v4898_v15 = vor.u32 %v4897_v11, %v4894_v10  ;;  %v4700_v53 = vld [vmem:[#allocation2 + $0x54] sm:$0xf]  ;;  %v2494_v40 = vor.u32 %v2492_v2, %v2490_v14  ;;  %v10632_v2 = vld [vmem:[#allocation2 + $0x68] sm:$0xf] }
 0x1c0   : > { %v4919_v25 = vshrl.u32 %v7121_v52, 16  ;;  %v4922_v16 = vshll.u32 %v7121_v52, 16  ;;  %11849 = vst [vmem:[#allocation53_spill] sm:$0xff] %v10632_v2 }
 0x1c1   : > { %8145 = vmatmul.mubr.bf16.gmra.mrb[84].mxu0 %v10418_v39  ;;  %v4913_v39 = vshll.u32 %v7120_v59, 16  ;;  %v10597_v59 = vld [vmem:[#allocation2 + $0x50] sm:$0xf]  ;;  %v4907_v52 = vor.u32 %v4906_v24, %v4903_v48  ;;  %v2504_v48 = vshll.u32 %v11847_v5, 16  ;;  %v10621_v10 = vsel %vm1904_vm0, %v4889_v9, %v4898_v15 }
 0x1c2   : > { %8148 = vmatprep.mubr.bf16.mxu0 %v10428_v62  ;;  %v10593_v62 = vor.u32 %v4337_v7, %v10471_v0  ;;  %v7122_v0 = vcombine.low %v4697_v54, %v10589_v26  ;;  %v4912_v7 = vrot.slane %v4910_v46, 3  ;;  %v4921_v34 = vrot.slane %v4919_v25, 3  ;;  %v10628_v25 = vld [vmem:[#allocation2 + $0x60] sm:$0xf] }
 0x1c3   : > { %v4915_v36 = vrot.slane %v4913_v39, 4  ;;  %v4924_v45 = vrot.slane %v4922_v16, 4  ;;  %v7123_v24 = vcombine.low %v10597_v59, %v4700_v53  ;;  %v10614_v46 = vsel %vm2447_vm1, %v2470_v51, %v2474_v28  ;;  %v10630_v16 = vld [vmem:[#allocation2 + $0x64] sm:$0xf]  ;;  %v10636_v51 = vld [vmem:[#allocation2 + $0x6c] sm:$0xf] }
 0x1c4   : > { %v4928_v11 = vshrl.u32 %v7122_v0, 16  ;;  %v4931_v19 = vshll.u32 %v7122_v0, 16  ;;  %11848 = vst [vmem:[#allocation50_spill] sm:$0xff] %v10630_v16  ;;  %11850 = vst [vmem:[#allocation3_spill] sm:$0xff] %v10636_v51  ;;  %v7124_v53 = vcombine.low %v4701_v12, %v10623_v27 }
 0x1c5   : > { %8401 = vmatmul.mubr.bf16.gmra.mrb[36].mxu1 %v10437_v33  ;;  %v11846_v33 = vld [vmem:[#allocation13_spill] sm:$0xff]  ;;  %v4916_v54 = vor.u32 %v4915_v36, %v4912_v7  ;;  %v4925_v39 = vor.u32 %v4924_v45, %v4921_v34 }
 0x1c6   : > { %8404 = vmatprep.mubr.bf16.mxu1 %v10451_v43  ;;  %v2496_v22 = vshll.u32 %v11846_v33, 16  ;;  %v10604_v43 = vsel %vm1904_vm0, %v4881_v38, %v4889_v9  ;;  %v4937_v38 = vshrl.u32 %v7123_v24, 16  ;;  %v4940_v9 = vshll.u32 %v7123_v24, 16  ;;  %v11853_v34 = vld [vmem:[#allocation17_spill] sm:$0xff] }
 0x1c7   : > { %v4930_v7 = vrot.slane %v4928_v11, 3  ;;  %v4933_v36 = vrot.slane %v4931_v19, 4  ;;  %v2512_v45 = vshll.u32 %v11853_v34, 16  ;;  %v4946_v19 = vshrl.u32 %v7124_v53, 16 }
 0x1c8   : > { %v2498_v29 = vrot.slane %v2496_v22, 1  ;;  %v2500_v22 = vshrl.u32 %v11846_v33, 16  ;;  %v10649_v33 = vld [vmem:[#allocation2 + $0x74] sm:$0xf]  ;;  %v2516_v61 = vshrl.u32 %v11853_v34, 16 }
 0x1c9   : > { %8149 = vmatmul.mubr.bf16.gmra.mrb[88].mxu0 %v10454_v17  ;;  %v2484_v17 = vshrl.u32 %v11844_v41, 16  ;;  %v2506_v41 = vrot.slane %v2504_v48, 1  ;;  %11852 = vst [vmem:[#allocation8_spill] sm:$0xff] %v10649_v33  ;;  %v7126_v48 = vcombine.low %v10632_v2, %v10636_v51 }
 0x1ca   : > { %8152 = vmatprep.mubr.bf16.mxu0 %v10461_v60  ;;  %v10626_v60 = vsel %vm1904_vm0, %v4898_v15, %v4907_v52  ;;  %v10643_v6 = vsel %vm2447_vm1, %v2494_v40, %v2498_v29  ;;  %v2502_v0 = vor.u32 %v2500_v22, %v2498_v29  ;;  %v4942_v40 = vrot.slane %v4940_v9, 4  ;;  %v11854_v29 = vld [vmem:[#allocation19_spill] sm:$0xff] }
 0x1cb   : > { %v2486_v28 = vor.u32 %v2484_v17, %v2482_v21  ;;  %v2508_v21 = vshrl.u32 %v11847_v5, 16  ;;  %v7125_v5 = vcombine.low %v10628_v25, %v10630_v16  ;;  %v4939_v17 = vrot.slane %v4937_v38, 3  ;;  %v11855_v38 = vld [vmem:[#allocation23_spill] sm:$0xff]  ;;  %v11859_v16 = vld [vmem:[#allocation28_spill] sm:$0xff] }
 0x1cc   : > { %v10664_v24 = vsel %vm2447_vm1, %v2502_v0, %v2506_v41  ;;  %v2520_v11 = vshll.u32 %v11854_v29, 16  ;;  %v2514_v22 = vrot.slane %v2512_v45, 1  ;;  %v2536_v9 = vshll.u32 %v11855_v38, 16  ;;  %v11856_v45 = vld [vmem:[#allocation21_spill] sm:$0xff] }
 0x1cd   : > { %8405 = vmatmul.mubr.bf16.gmra.mrb[40].mxu1 %v10468_v32  ;;  %v10640_v15 = vsel %vm2447_vm1, %v2486_v28, %v2490_v14  ;;  %v10647_v32 = vld [vmem:[#allocation2 + $0x70] sm:$0xf]  ;;  %v10656_v14 = vsel %vm1904_vm0, %v4916_v54, %v4925_v39  ;;  %v2510_v12 = vor.u32 %v2508_v21, %v2506_v41  ;;  %v4949_v28 = vshll.u32 %v7124_v53, 16 }
 0x1ce   : > { %8408 = vmatprep.mubr.bf16.mxu1 %v10475_v30  ;;  %11851 = vst [vmem:[#allocation5_spill] sm:$0xff] %v10647_v32  ;;  %v10653_v30 = vsel %vm1904_vm0, %v4907_v52, %v4916_v54  ;;  %v7127_v52 = vcombine.low %v10647_v32, %v10649_v33  ;;  %v4934_v54 = vor.u32 %v4933_v36, %v4930_v7  ;;  %v4955_v0 = vshrl.u32 %v7125_v5, 16  ;;  %v10676_v32 = vld [vmem:[#allocation2 + $0x78] sm:$0xf] }
 0x1cf   : > { %v4958_v3 = vshll.u32 %v7125_v5, 16  ;;  %v4964_v51 = vshrl.u32 %v7126_v48, 16  ;;  %v4943_v33 = vor.u32 %v4942_v40, %v4939_v17  ;;  %v2522_v53 = vrot.slane %v2520_v11, 1  ;;  %v11858_v17 = vld [vmem:[#allocation25_spill] sm:$0xff]  ;;  %v10685_v40 = vld [vmem:[#allocation2 + $0x7c] sm:$0xf] }
 0x1d0   : > { %v4973_v41 = vshrl.u32 %v7127_v52, 16  ;;  %v4976_v21 = vshll.u32 %v7127_v52, 16  ;;  %v4948_v7 = vrot.slane %v4946_v19, 3  ;;  %v4951_v36 = vrot.slane %v4949_v28, 4  ;;  %v10687_v52 = vld [vmem:[#allocation2 + $0x80] sm:$0xf] }
 0x1d1   : > { %8153 = vmatmul.mubr.bf16.gmra.mrb[92].mxu0 %v10478_v63  ;;  %v2524_v63 = vshrl.u32 %v11854_v29, 16  ;;  %v2528_v34 = vshll.u32 %v11856_v45, 16  ;;  %v10679_v5 = vsel %vm1904_vm0, %v4925_v39, %v4934_v54  ;;  %v10682_v29 = vsel %vm2447_vm1, %v2510_v12, %v2514_v22  ;;  %v10692_v39 = vld [vmem:[#allocation2 + $0x84] sm:$0xf] }
 0x1d2   : > { %8172 = vmatprep.mubr.bf16.mxu0 %v10579_v1  ;;  %v4967_v1 = vshll.u32 %v7126_v48, 16  ;;  %11857 = vst [vmem:[#allocation6_spill] sm:$0xff] %v10682_v29  ;;  %v2544_v48 = vshll.u32 %v11858_v17, 16  ;;  %v4957_v11 = vrot.slane %v4955_v0, 3  ;;  %v4960_v19 = vrot.slane %v4958_v3, 4 }
 0x1d3   : > { %v2538_v28 = vrot.slane %v2536_v9, 1  ;;  %v4966_v20 = vrot.slane %v4964_v51, 3  ;;  %v2552_v2 = vshll.u32 %v11859_v16, 16  ;;  %v4952_v57 = vor.u32 %v4951_v36, %v4948_v7 }
 0x1d4   : > { %v4969_v12 = vrot.slane %v4967_v1, 4  ;;  %v2530_v29 = vrot.slane %v2528_v34, 1  ;;  %v2540_v44 = vshrl.u32 %v11855_v38, 16  ;;  %v7128_v3 = vcombine.low %v10676_v32, %v10685_v40 }
 0x1d5   : > { %8409 = vmatmul.mubr.bf16.gmra.mrb[44].mxu1 %v10593_v62  ;;  %v2518_v62 = vor.u32 %v2516_v61, %v2514_v22  ;;  %v4975_v61 = vrot.slane %v4973_v41, 3  ;;  %v4978_v22 = vrot.slane %v4976_v21, 4  ;;  %v10705_v51 = vsel %vm1904_vm0, %v4934_v54, %v4943_v33  ;;  %v9207_v21 = vld [vmem:[%s11586_s4 + $0xd0] sm:$0xff]  }
 0x1d6   : > { %8428 = vmatprep.mubr.bf16.mxu1 %v10604_v43  ;;  %v9206_v43 = vld [vmem:[%s11586_s4 + $0xc8] sm:$0xff]   ;;  %v2526_v0 = vor.u32 %v2524_v63, %v2522_v53  ;;  %v2546_v9 = vrot.slane %v2544_v48, 1  ;;  %v4961_v1 = vor.u32 %v4960_v19, %v4957_v11  ;;  %v2532_v41 = vshrl.u32 %v11856_v45, 16  ;;  %v9211_v48 = vld [vmem:[%s11586_s4 + $0xd8] sm:$0xff]  }
 0x1d7   : > { %v10710_v38 = vsel %vm2447_vm1, %v2518_v62, %v2522_v53  ;;  %v4970_v54 = vor.u32 %v4969_v12, %v4966_v20  ;;  %v10717_v63 = vor.u32 %v4978_v22, %v4975_v61  ;;  %v2548_v7 = vshrl.u32 %v11858_v17, 16  ;;  %v9189_v20 = vld [vmem:[%s11586_s4 + $0x1d0] sm:$0xff]   ;;  %v10757_v12 = vld [vmem:[#allocation2 + $0x88] sm:$0xf]  ;;  %v10759_v61 = vld [vmem:[#allocation2 + $0x8c] sm:$0xf] }
 0x1d8   : > { %v2554_v36 = vrot.slane %v2552_v2, 1  ;;  %v10723_v53 = vsel %vm1904_vm0, %v4943_v33, %v4952_v57  ;;  %v4982_v45 = vshrl.u32 %v7128_v3, 16  ;;  %v4985_v34 = vshll.u32 %v7128_v3, 16  ;;  %v10762_v3 = vld [vmem:[#allocation2 + $0x90] sm:$0xf] }
 0x1d9   : > { %8173 = vmatmul.mubr.bf16.vlgmr.msra.gmra.mrb[48].mxu0 %v10608_v35  ;;  %v9186_v35 = vld [vmem:[%s11586_s4 + $0x1c8] sm:$0xff]   ;;  %v2550_v62 = vor.u32 %v2548_v7, %v2546_v9  ;;  %v10772_v7 = vld [vmem:[#allocation2 + $0x94] sm:$0xf] }
 0x1da   : > { %8176 = vmatprep.mubr.bf16.mxu0 %v10614_v46  ;;  %8221 = vmatpush3.bf16.msra.mxu0 %v10443_v37  ;;  %v7129_v46 = vcombine.low %v10687_v52, %v10692_v39  ;;  %v2542_v37 = vor.u32 %v2540_v44, %v2538_v28  ;;  %v2534_v44 = vor.u32 %v2532_v41, %v2530_v29  ;;  %v4987_v22 = vrot.slane %v4985_v34, 4 }
 0x1db   : > { %8222 = vmatprep.subr.bf16.mxu0 %v9206_v43  ;;  %v10754_v19 = vsel %vm2447_vm1, %v2550_v62, %v2554_v36  ;;  %v11864_v34 = vshll.u32 %v11817_v8, 16 }
 0x1dc   : > { %v4991_v2 = vshrl.u32 %v7129_v46, 16  ;;  %v4994_v17 = vshll.u32 %v7129_v46, 16  ;;  %v10738_v33 = vsel %vm2447_vm1, %v2542_v37, %v2546_v9  ;;  %v11862_v46 = vshrl.u32 %v11817_v8, 16 }
 0x1dd   : > { %8429 = vmatmul.mubr.bf16.vlgmr.msra.gmra.mrb[0].mxu1 %v10621_v10  ;;  %v10729_v10 = vsel %vm2447_vm1, %v2526_v0, %v2530_v29  ;;  %v11860_v29 = vshrl.u32 %v10486_v55, 16  ;;  %v11861_v0 = vshll.u32 %v10486_v55, 16  ;;  %v9212_v55 = vld [vmem:[%s11586_s4 + $0xe0] sm:$0xff]   ;;  %v3187_v62 = vrot.slane %v11864_v34, 4 }
 0x1de   : > { %8477 = vmatpush3.bf16.msra.mxu1 %v10425_v18  ;;  %8432 = vmatprep.mubr.bf16.mxu1 %v10626_v60  ;;  %v10732_v18 = vsel %vm1904_vm0, %v4952_v57, %v4961_v1  ;;  %v10735_v60 = vsel %vm2447_vm1, %v2534_v44, %v2538_v28  ;;  %v10751_v57 = vsel %vm1904_vm0, %v4970_v54, %v10717_v63  ;;  %v2556_v28 = vshrl.u32 %v11859_v16, 16  ;;  %v9194_v16 = vld [vmem:[%s11586_s4 + $0x1d8] sm:$0xff]   ;;  %v9197_v34 = vld [vmem:[%s11586_s4 + $0x1e0] sm:$0xff]  }
 0x1df   : > { %8478 = vmatprep.subr.bf16.mxu1 %v9186_v35  ;;  %8223 = vmatpush3.bf16.msra.mxu0 %v9206_v43  ;;  %v3176_v11 = vrot.slane %v11860_v29, 3  ;;  %v10747_v43 = vsel %vm1904_vm0, %v4961_v1, %v4970_v54  ;;  %v3179_v9 = vrot.slane %v11861_v0, 4  ;;  %v3184_v1 = vrot.slane %v11862_v46, 3 }
 0x1e0   : > { %8224 = vmatprep.subr.bf16.mxu0 %v9207_v21  ;;  %v4993_v41 = vrot.slane %v4991_v2, 3  ;;  %v4996_v37 = vrot.slane %v4994_v17, 4  ;;  %v2558_v54 = vor.u32 %v2556_v28, %v2554_v36  ;;  %v1135_v2 = vld [vmem:[#allocation2 + $0xd8] sm:$0xf]  ;;  %v3197_v29 = vor.u32 %v10505_v42, %v10503_v4 }
 0x1e1   : > { %8177 = vmatmul.mubr.bf16.gmra.mrb[52].mxu0 %v10617_v23  ;;  %v4984_v23 = vrot.slane %v4982_v45, 3  ;;  %v3180_v45 = vor.u32 %v3179_v9, %v3176_v11  ;;  %v11865_v36 = vld [vmem:[#allocation34_spill] sm:$0xff]  ;;  %v3188_v8 = vor.u32 %v3187_v62, %v3184_v1  ;;  %v11866_v28 = vshrl.u32 %v11818_v49, 16 }
 0x1e2   : > { %8180 = vmatprep.mubr.bf16.mxu0 %v10640_v15  ;;  %8479 = vmatpush3.bf16.msra.mxu1 %v9186_v35  ;;  %v11863_v15 = vld [vmem:[#allocation31_spill] sm:$0xff]  ;;  %v2568_v17 = vshll.u32 %v11865_v36, 16  ;;  %v11867_v0 = vshll.u32 %v11818_v49, 16  ;;  %v10800_v4 = vcombine.low %v10762_v3, %v10772_v7  ;;  %v9216_v49 = vld [vmem:[%s11586_s4 + $0xe8] sm:$0xff]   ;;  %v11870_v62 = vshrl.u32 %v11820_v13, 16 }
 0x1e3   : > { %8480 = vmatprep.subr.bf16.mxu1 %v9189_v20  ;;  %v2560_v35 = vshll.u32 %v11863_v15, 16  ;;  %8225 = vmatpush3.bf16.msra.mxu0 %v9207_v21  ;;  %v2564_v44 = vshrl.u32 %v11863_v15, 16  ;;  %v10784_v21 = vcombine.low %v10757_v12, %v10759_v61  ;;  %v10789_v11 = vor.u32 %v4987_v22, %v4984_v23  ;;  %v11916_v15 = vld [vmem:[#allocation42_spill] sm:$0xff] }
 0x1e4   : > { %8226 = vmatprep.subr.bf16.mxu0 %v9211_v48  ;;  %v3205_v9 = vrot.slane %v11867_v0, 4  ;;  %v10809_v23 = vsel %vm1904_vm0, %v3180_v45, %v3188_v8  ;;  %v10812_v22 = vsel %vm1904_vm0, %v3188_v8, %v3197_v29  ;;  %v10824_v8 = vrot.slane %v2568_v17, 1 }
 0x1e5   : > { %8433 = vmatmul.mubr.bf16.gmra.mrb[4].mxu1 %v10653_v30  ;;  %v3202_v30 = vrot.slane %v11866_v28, 3  ;;  %v2562_v46 = vrot.slane %v2560_v35, 1  ;;  %v11871_v28 = vshll.u32 %v11820_v13, 16  ;;  %v11873_v17 = vshll.u32 %v11821_v56, 16 }
 0x1e6   : > { %8436 = vmatprep.mubr.bf16.mxu1 %v10656_v14  ;;  %8481 = vmatpush3.bf16.msra.mxu1 %v9189_v20  ;;  %v1136_v14 = vsel %vm1134_vm4, 0, %v1135_v2  ;;  %v10803_v20 = vor.u32 %v4996_v37, %v4993_v41  ;;  %v11869_v41 = vshll.u32 %v11819_v50, 16  ;;  %v3220_v2 = vrot.slane %v11870_v62, 3 }
 0x1e7   : > { %8482 = vmatprep.subr.bf16.mxu1 %v9194_v16  ;;  %8227 = vmatpush3.bf16.msra.mxu0 %v9211_v48  ;;  %1137 = vst [vmem:[#allocation2 + $0xd8] sm:$0xf] %v1136_v14  ;;  %v3206_v1 = vor.u32 %v3205_v9, %v3202_v30  ;;  %v11868_v48 = vshrl.u32 %v11819_v50, 16  ;;  %v3223_v45 = vrot.slane %v11871_v28, 4  ;;  %v5000_v30 = vshrl.u32 %v10784_v21, 16  ;;  %v9202_v50 = vld [vmem:[%s11586_s4 + $0x1e8] sm:$0xff]  }
 0x1e8   : > { %8228 = vmatprep.subr.bf16.mxu0 %v9212_v55  ;;  %v3214_v37 = vrot.slane %v11869_v41, 4  ;;  %v3232_v14 = vrot.slane %v11873_v17, 4  ;;  %v11875_v41 = vshll.u32 %v11822_v58, 16  ;;  %v10862_v62 = vcombine.low %v10589_v26, %v10597_v59  ;;  %v9208_v26 = vld [vmem:[%s11586_s4 + $0x1f0] sm:$0xff]  }
 0x1e9   : > { %8181 = vmatmul.mubr.bf16.gmra.mrb[56].mxu0 %v10643_v6  ;;  %v3211_v35 = vrot.slane %v11868_v48, 3  ;;  %v5003_v6 = vshll.u32 %v10784_v21, 16  ;;  %v10829_v0 = vsel %vm1904_vm0, %v3197_v29, %v3206_v1  ;;  %v3224_v9 = vor.u32 %v3223_v45, %v3220_v2 }
 0x1ea   : > { %8184 = vmatprep.mubr.bf16.mxu0 %v10664_v24  ;;  %8483 = vmatpush3.bf16.msra.mxu1 %v9194_v16  ;;  %v11872_v24 = vshrl.u32 %v11821_v56, 16  ;;  %v10841_v21 = vsel %vm1904_vm0, %v10717_v63, %v10789_v11  ;;  %v10844_v29 = vsel %vm2447_vm1, %v2558_v54, %v2562_v46  ;;  %v11874_v48 = vshrl.u32 %v11822_v58, 16 }
 0x1eb   : > { %8484 = vmatprep.subr.bf16.mxu1 %v9197_v34  ;;  %8229 = vmatpush3.bf16.msra.mxu0 %v9212_v55  ;;  %v3215_v13 = vor.u32 %v3214_v37, %v3211_v35  ;;  %v9218_v55 = vld [vmem:[%s11586_s4 + $0xf0] sm:$0xff]   ;;  %v3241_v56 = vrot.slane %v11875_v41, 4  ;;  %v11876_v58 = vshrl.u32 %v11823_v31, 16 }
 0x1ec   : > { %v3229_v16 = vrot.slane %v11872_v24, 3  ;;  %8230 = vmatprep.subr.bf16.mxu0 %v9216_v49  ;;  %v3238_v35 = vrot.slane %v11874_v48, 3  ;;  %v11884_v41 = vld [vmem:[#allocation26_spill] sm:$0xff] }
 0x1ed   : > { %8437 = vmatmul.mubr.bf16.gmra.mrb[8].mxu1 %v10679_v5  ;;  %v10855_v37 = vsel %vm1904_vm0, %v3206_v1, %v3215_v13  ;;  %v10858_v63 = vsel %vm1904_vm0, %v3215_v13, %v3224_v9  ;;  %v3247_v28 = vrot.slane %v11876_v58, 3  ;;  %v11877_v5 = vshll.u32 %v11823_v31, 16 }
 0x1ee   : > { %v3233_v54 = vor.u32 %v3232_v14, %v3229_v16  ;;  %8440 = vmatprep.mubr.bf16.mxu1 %v10705_v51  ;;  %8485 = vmatpush3.bf16.msra.mxu1 %v9197_v34  ;;  %v3242_v2 = vor.u32 %v3241_v56, %v3238_v35  ;;  %v11878_v1 = vshrl.u32 %v11824_v47, 16  ;;  %v10873_v13 = vor.u32 %v2564_v44, %v2562_v46  ;;  %v10888_v44 = vld [vmem:[#allocation2 + $0x98] sm:$0xf]  ;;  %v11880_v16 = vld [vmem:[#allocation24_spill] sm:$0xff] }
 0x1ef   : > { %v3250_v45 = vrot.slane %v11877_v5, 4  ;;  %8486 = vmatprep.subr.bf16.mxu1 %v9202_v50  ;;  %8231 = vmatpush3.bf16.msra.mxu0 %v9216_v49  ;;  %v11879_v51 = vshll.u32 %v11824_v47, 16  ;;  %v10885_v34 = vcombine.low %v10623_v27, %v10628_v25  ;;  %v9221_v46 = vld [vmem:[%s11586_s4 + $0xf8] sm:$0xff]   ;;  %v11881_v47 = vshrl.u32 %v11880_v16, 16 }
 0x1f0   : > { %v3256_v24 = vrot.slane %v11878_v1, 3  ;;  %v10879_v59 = vsel %vm1904_vm0, %v3224_v9, %v3233_v54  ;;  %8232 = vmatprep.subr.bf16.mxu0 %v9218_v55  ;;  %v10894_v49 = vsel %vm1904_vm0, %v3233_v54, %v3242_v2  ;;  %v11882_v14 = vld [vmem:[#allocation6_spill] sm:$0xff]  ;;  %v10899_v27 = vld [vmem:[#allocation2 + $0x9c] sm:$0xf]  ;;  %v11883_v48 = vshll.u32 %v11880_v16, 16 }
 0x1f1   : > { %v3259_v31 = vrot.slane %v11879_v51, 4  ;;  %v3251_v9 = vor.u32 %v3250_v45, %v3247_v28  ;;  %v3265_v17 = vrot.slane %v11881_v47, 3  ;;  %8185 = vmatmul.mubr.bf16.gmra.mrb[60].mxu0 %v11882_v14  ;;  %v11885_v56 = vshrl.u32 %v11884_v41, 16  ;;  %v11888_v51 = vld [vmem:[#allocation50_spill] sm:$0xff]  ;;  %v11889_v47 = vld [vmem:[#allocation29_spill] sm:$0xff] }
 0x1f2   : > { %v3268_v35 = vrot.slane %v11883_v48, 4  ;;  %v11886_v5 = vshll.u32 %v11884_v41, 16  ;;  %8188 = vmatprep.mubr.bf16.mxu0 %v10710_v38  ;;  %v10908_v54 = vrot.slane %v5000_v30, 3  ;;  %v10910_v28 = vrot.slane %v5003_v6, 4  ;;  %8487 = vmatpush3.bf16.msra.mxu1 %v9202_v50  ;;  %v9217_v16 = vld [vmem:[%s11586_s4 + $0x1f8] sm:$0xff]   ;;  %v11891_v41 = vld [vmem:[#allocation5_spill] sm:$0xff] }
 0x1f3   : > { %v3260_v25 = vor.u32 %v3259_v31, %v3256_v24  ;;  %v3274_v58 = vrot.slane %v11885_v56, 3  ;;  %v10913_v45 = vsel %vm1904_vm0, %v3242_v2, %v3251_v9  ;;  %v11887_v24 = vld [vmem:[#allocation53_spill] sm:$0xff]  ;;  %8488 = vmatprep.subr.bf16.mxu1 %v9208_v26  ;;  %8233 = vmatpush3.bf16.msra.mxu0 %v9218_v55  ;;  %v11890_v50 = vshrl.u32 %v11889_v47, 16  ;;  %v11892_v56 = vld [vmem:[#allocation3_spill] sm:$0xff] }
 0x1f4   : > { %v3277_v1 = vrot.slane %v11886_v5, 4  ;;  %v10917_v31 = vcombine.low %v11888_v51, %v11887_v24  ;;  %v3269_v30 = vor.u32 %v3268_v35, %v3265_v17  ;;  %v10930_v48 = vcombine.low %v10888_v44, %v10899_v27  ;;  %8234 = vmatprep.subr.bf16.mxu0 %v9221_v46 }
 0x1f5   : > { %v10923_v38 = vsel %vm1904_vm0, %v3251_v9, %v3260_v25  ;;  %v3283_v14 = vrot.slane %v11890_v50, 3  ;;  %v10934_v5 = vcombine.low %v11892_v56, %v11891_v41  ;;  %v11893_v55 = vshll.u32 %v11889_v47, 16  ;;  %8441 = vmatmul.mubr.bf16.gmra.mrb[12].mxu1 %v10723_v53  ;;  %v11897_v41 = vld [vmem:[#allocation33_spill] sm:$0xff]  ;;  %v11898_v47 = vld [vmem:[#allocation30_spill] sm:$0xff] }
 0x1f6   : > { %v3278_v6 = vor.u32 %v3277_v1, %v3274_v58  ;;  %v10940_v17 = vsel %vm1904_vm0, %v3260_v25, %v3269_v30  ;;  %v11894_v58 = vld [vmem:[#allocation32_spill] sm:$0xff]  ;;  %8444 = vmatprep.mubr.bf16.mxu1 %v10732_v18  ;;  %8489 = vmatpush3.bf16.msra.mxu1 %v9208_v26  ;;  %v10952_v56 = vcombine.low %v11898_v47, %v11897_v41  ;;  %v10973_v41 = vld [vmem:[#allocation2 + $0xa0] sm:$0xf] }
 0x1f7   : > { %v3286_v9 = vrot.slane %v11893_v55, 4  ;;  %v11895_v1 = vshrl.u32 %v11894_v58, 16  ;;  %v11896_v51 = vshll.u32 %v11894_v58, 16  ;;  %v11899_v25 = vld [vmem:[#allocation8_spill] sm:$0xff]  ;;  %8490 = vmatprep.subr.bf16.mxu1 %v9217_v16  ;;  %8235 = vmatpush3.bf16.msra.mxu0 %v9221_v46  ;;  %v10967_v26 = vcombine.low %v10685_v40, %v10687_v52  ;;  %v11908_v46 = vld [vmem:[#allocation38_spill] sm:$0xff] }
 0x1f8   : > { %v10943_v35 = vsel %vm1904_vm0, %v3269_v30, %v3278_v6  ;;  %v10956_v55 = vcombine.low %v11899_v25, %v10676_v32  ;;  %v11901_v30 = vld [vmem:[#allocation35_spill] sm:$0xff]  ;;  %v11905_v32 = vld [vmem:[#allocation37_spill] sm:$0xff]  ;;  %v10986_v40 = vcombine.low %v10692_v39, %v10757_v12  ;;  %v10989_v52 = vld [vmem:[#allocation2 + $0xa4] sm:$0xf] }
 0x1f9   : > { %v3292_v24 = vrot.slane %v11895_v1, 3  ;;  %v3295_v50 = vrot.slane %v11896_v51, 4  ;;  %v3287_v53 = vor.u32 %v3286_v9, %v3283_v14  ;;  %v11902_v42 = vshrl.u32 %v11901_v30, 16  ;;  %v10963_v58 = vld [vmem:[%s11586_s4 + $0x200] sm:$0xff]   ;;  %11903 = vst [vmem:[#allocation12_spill] sm:$0xff] %v10967_v26  ;;  %8189 = vmatmul.mubr.bf16.gmra.mrb[64].mxu0 %v10729_v10 }
 0x1fa   : > { %11900 = vst [vmem:[#allocation10_spill] sm:$0xff] %v10956_v55  ;;  %v11904_v14 = vshll.u32 %v11901_v30, 16  ;;  %v11906_v1 = vshrl.u32 %v11905_v32, 16  ;;  %11910 = vst [vmem:[#allocation14_spill] sm:$0xff] %v10986_v40  ;;  %v10991_v30 = vld [vmem:[#allocation2 + $0xa8] sm:$0xf]  ;;  %8192 = vmatprep.mubr.bf16.mxu0 %v10735_v60  ;;  %8491 = vmatpush3.bf16.msra.mxu1 %v9217_v16  ;;  %v11019_v60 = vcombine.low %v10772_v7, %v10888_v44 }
 0x1fb   : > { %v3301_v2 = vrot.slane %v11902_v42, 3  ;;  %v3296_v18 = vor.u32 %v3295_v50, %v3292_v24  ;;  %v11907_v42 = vld [vmem:[#allocation43_spill] sm:$0xff]  ;;  %v10980_v25 = vsel %vm1904_vm0, %v3278_v6, %v3287_v53  ;;  %v11909_v24 = vshll.u32 %v11905_v32, 16  ;;  %v11913_v32 = vld [vmem:[#allocation40_spill] sm:$0xff]  ;;  %v11003_v39 = vld [vmem:[#allocation2 + $0xb0] sm:$0xf]  ;;  %8540 = vmatprep.subr.bf16.mxu1 %v10963_v58 }
 0x1fc   : > { %v3304_v9 = vrot.slane %v11904_v14, 4  ;;  %v3310_v51 = vrot.slane %v11906_v1, 3  ;;  %v10977_v47 = vcombine.low %v11908_v46, %v11907_v42  ;;  %v10998_v6 = vcombine.low %v10759_v61, %v10762_v3  ;;  %v11011_v61 = vld [vmem:[#allocation2 + $0xac] sm:$0xf]  ;;  %11920 = vst [vmem:[#allocation22_spill] sm:$0xff] %v11019_v60 }
 0x1fd   : > { %v3313_v50 = vrot.slane %v11909_v24, 4  ;;  %v10994_v14 = vsel %vm1904_vm0, %v3287_v53, %v3296_v18  ;;  %v11914_v42 = vshrl.u32 %v11913_v32, 16  ;;  %v11915_v12 = vshll.u32 %v11913_v32, 16  ;;  %8445 = vmatmul.mubr.bf16.gmra.mrb[16].mxu1 %v10747_v43  ;;  %v11037_v44 = vld [vmem:[#allocation2 + $0xbc] sm:$0xf] }
 0x1fe   : > { %11911 = vst [vmem:[#allocation16_spill] sm:$0xff] %v10994_v14  ;;  %v3305_v1 = vor.u32 %v3304_v9, %v3301_v2  ;;  %11912 = vst [vmem:[#allocation18_spill] sm:$0xff] %v10998_v6  ;;  %v11917_v53 = vshrl.u32 %v11916_v15, 16  ;;  %v11918_v2 = vshll.u32 %v11916_v15, 16  ;;  %v11023_v16 = vcombine.low %v10899_v27, %v10973_v41  ;;  %v11027_v15 = vld [vmem:[#allocation2 + $0xb4] sm:$0xf]  ;;  %8448 = vmatprep.mubr.bf16.mxu1 %v10751_v57 }
 0x1ff   : > { %v3319_v46 = vrot.slane %v11914_v42, 3  ;;  %v3314_v10 = vor.u32 %v3313_v50, %v3310_v51  ;;  %v3322_v24 = vrot.slane %v11915_v12, 4  ;;  %v11922_v51 = vld [vmem:[#allocation45_spill] sm:$0xff]  ;;  %v11029_v42 = vld [vmem:[#allocation2 + $0xb8] sm:$0xf] }
 0x200   : > { %v3328_v40 = vrot.slane %v11917_v53, 3  ;;  %v3331_v9 = vrot.slane %v11918_v2, 4  ;;  %v11015_v3 = vsel %vm1904_vm0, %v3296_v18, %v3305_v1  ;;  %11921 = vst [vmem:[#allocation4_spill] sm:$0xff] %v11023_v16  ;;  %v11923_v50 = vshrl.u32 %v11922_v51, 16  ;;  %v11039_v27 = vld [vmem:[#allocation2 + $0xc0] sm:$0xf] }
 0x201   : > { %11919 = vst [vmem:[#allocation20_spill] sm:$0xff] %v11015_v3  ;;  %v11032_v12 = vsel %vm1904_vm0, %v3305_v1, %v3314_v10  ;;  %v3323_v18 = vor.u32 %v3322_v24, %v3319_v46  ;;  %v11925_v2 = vshll.u32 %v11922_v51, 16  ;;  %v11926_v16 = vld [vmem:[#allocation47_spill] sm:$0xff]  ;;  %v11047_v1 = vcombine.low %v10989_v52, %v10991_v30  ;;  %v11054_v43 = vld [vmem:[#allocation2 + $0xcc] sm:$0xf]  ;;  %8193 = vmatmul.mubr.bf16.gmra.mrb[68].mxu0 %v10738_v33 }
 0x202   : > { %v3337_v32 = vrot.slane %v11923_v50, 3  ;;  %11924 = vst [vmem:[#allocation7_spill] sm:$0xff] %v11032_v12  ;;  %v3332_v53 = vor.u32 %v3331_v9, %v3328_v40  ;;  %v11927_v50 = vshrl.u32 %v11926_v16, 16  ;;  %v11928_v6 = vshll.u32 %v11926_v16, 16  ;;  %v11056_v46 = vld [vmem:[#allocation2 + $0xd0] sm:$0xf]  ;;  %8196 = vmatprep.mubr.bf16.mxu0 %v10754_v19 }
 0x203   : > { %v3340_v7 = vrot.slane %v11925_v2, 4  ;;  %11929 = vst [vmem:[#allocation9_spill] sm:$0xff] %v11047_v1  ;;  %v11051_v40 = vcombine.low %v11011_v61, %v11003_v39  ;;  %v11059_v24 = vsel %vm1904_vm0, %v3314_v10, %v3323_v18  ;;  %v11932_v16 = vld [vmem:[#allocation49_spill] sm:$0xff]  ;;  %v11935_v12 = vld [vmem:[#allocation52_spill] sm:$0xff] }
 0x204   : > { %v3346_v60 = vrot.slane %v11927_v50, 3  ;;  %v3349_v3 = vrot.slane %v11928_v6, 4  ;;  %11931 = vst [vmem:[#allocation13_spill] sm:$0xff] %v11059_v24  ;;  %v11062_v9 = vsel %vm1904_vm0, %v3323_v18, %v3332_v53  ;;  %v11933_v51 = vshrl.u32 %v11932_v16, 16  ;;  %v11066_v50 = vld [vmem:[#allocation2 + $0xc4] sm:$0xf] }
 0x205   : > { %11930 = vst [vmem:[#allocation11_spill] sm:$0xff] %v11051_v40  ;;  %v3341_v6 = vor.u32 %v3340_v7, %v3337_v32  ;;  %v11934_v40 = vshll.u32 %v11932_v16, 16  ;;  %v11936_v26 = vshrl.u32 %v11935_v12, 16  ;;  %v11937_v14 = vshll.u32 %v11935_v12, 16  ;;  %8449 = vmatmul.mubr.bf16.gmra.mrb[20].mxu1 %v10841_v21 }
 0x206   : > { %v3355_v2 = vrot.slane %v11933_v51, 3  ;;  %v3350_v1 = vor.u32 %v3349_v3, %v3346_v60  ;;  %v11079_v32 = vcombine.low %v11027_v15, %v11029_v42  ;;  %v11083_v18 = vcombine.low %v11037_v44, %v11039_v27  ;;  %v11941_v3 = vld [vmem:[#allocation54_spill] sm:$0xff]  ;;  %v11944_v51 = vld [vmem:[#allocation55_spill] sm:$0xff] }
 0x207   : > { %v3358_v57 = vrot.slane %v11934_v40, 4  ;;  %v3364_v55 = vrot.slane %v11936_v26, 3  ;;  %v3367_v10 = vrot.slane %v11937_v14, 4  ;;  %v11075_v24 = vsel %vm1904_vm0, %v3332_v53, %v3341_v6  ;;  %v11088_v26 = vld [vmem:[#allocation2 + $0xc8] sm:$0xf] }
 0x208   : > { %11938 = vst [vmem:[#allocation15_spill] sm:$0xff] %v11075_v24  ;;  %11939 = vst [vmem:[#allocation17_spill] sm:$0xff] %v11079_v32  ;;  %v11942_v60 = vshrl.u32 %v11941_v3, 16  ;;  %v11091_v14 = vsel %vm1904_vm0, %v3341_v6, %v3350_v1  ;;  %v11943_v40 = vshll.u32 %v11941_v3, 16  ;;  %v11945_v32 = vshrl.u32 %v11944_v51, 16 }
 0x209   : > { %11940 = vst [vmem:[#allocation19_spill] sm:$0xff] %v11083_v18  ;;  %v3359_v12 = vor.u32 %v3358_v57, %v3355_v2  ;;  %v3368_v53 = vor.u32 %v3367_v10, %v3364_v55  ;;  %v11946_v24 = vshll.u32 %v11944_v51, 16  ;;  %v11102_v33 = vcombine.low %v11066_v50, %v11088_v26  ;;  %v11949_v57 = vld [vmem:[#allocation27_spill] sm:$0xff]  ;;  %8197 = vmatmul.mubr.bf16.gmra.mrb[72].mxu0 %v10844_v29 }
 0x20a   : > { %v3373_v7 = vrot.slane %v11942_v60, 3  ;;  %v3376_v16 = vrot.slane %v11943_v40, 4  ;;  %v3382_v18 = vrot.slane %v11945_v32, 3  ;;  %v11106_v6 = vcombine.low %v11054_v43, %v11056_v46 }
 0x20b   : > { %v3385_v60 = vrot.slane %v11946_v24, 4  ;;  %11947 = vst [vmem:[#allocation23_spill] sm:$0xff] %v11102_v33  ;;  %v11109_v55 = vsel %vm1904_vm0, %v3350_v1, %v3359_v12  ;;  %v11112_v2 = vsel %vm1904_vm0, %v3359_v12, %v3368_v53  ;;  %v11950_v10 = vshrl.u32 %v11949_v57, 16 }
 0x20c   : > { %11948 = vst [vmem:[#allocation21_spill] sm:$0xff] %v11106_v6  ;;  %v3377_v19 = vor.u32 %v3376_v16, %v3373_v7  ;;  %v4998_v24 = vsel %vm1904_vm0, %v10789_v11, %v10803_v20  ;;  %v2571_v3 = vsel %vm2447_vm1, %v10873_v13, %v10824_v8  ;;  %v11951_v51 = vshll.u32 %v11949_v57, 16  ;;  %v11954_v13 = vld [vmem:[#allocation36_spill] sm:$0xff] }
 0x20d   : > { %v3391_v32 = vrot.slane %v11950_v10, 3  ;;  %v3386_v40 = vor.u32 %v3385_v60, %v3382_v18  ;;  %v11952_v12 = vshrl.u32 %v10800_v4, 16  ;;  %v11953_v16 = vshll.u32 %v10800_v4, 16  ;;  %8452 = vmatprep.mubr.bf16.mxu1 %v4998_v24  ;;  %v11956_v4 = vld [vmem:[#allocation39_spill] sm:$0xff]  ;;  %8200 = vmatprep.mubr.bf16.mxu0 %v2571_v3 }
 0x20e   : > { %v3394_v1 = vrot.slane %v11951_v51, 4  ;;  %v7133_v6 = vcombine.low %v10973_v41, %v10989_v52  ;;  %v11132_v11 = vsel %vm1904_vm0, %v3368_v53, %v3377_v19  ;;  %v2576_v18 = vshll.u32 %v11954_v13, 16 }
 0x20f   : > { %v5011_v7 = vrot.slane %v11952_v12, 3  ;;  %v5014_v10 = vrot.slane %v11953_v16, 4  ;;  %v11136_v60 = vsel %vm1904_vm0, %v3377_v19, %v3386_v40  ;;  %v5874_v21 = vshll.u32 %v10952_v56, 16 }
 0x210   : > { %11955 = vst [vmem:[#allocation25_spill] sm:$0xff] %v11136_v60  ;;  %v3395_v57 = vor.u32 %v3394_v1, %v3391_v32  ;;  %v5006_v51 = vor.u32 %v10910_v28, %v10908_v54  ;;  %v2584_v12 = vshll.u32 %v11956_v4, 16  ;;  %v5018_v16 = vshrl.u32 %v10930_v48, 16 }
 0x211   : > { %v5882_v41 = vshll.u32 %v10977_v47, 16  ;;  %v5021_v52 = vshll.u32 %v10930_v48, 16  ;;  %v11148_v24 = vrot.slane %v5874_v21, 1  ;;  %v5878_v19 = vshrl.u32 %v10952_v56, 16 }
 0x212   : > { %v11146_v53 = vsel %vm1904_vm0, %v3386_v40, %v3395_v57  ;;  %v5015_v32 = vor.u32 %v5014_v10, %v5011_v7  ;;  %v5027_v1 = vshrl.u32 %v7133_v6, 16  ;;  %v5030_v54 = vshll.u32 %v7133_v6, 16 }
 0x213   : > { %v11152_v28 = vrot.slane %v5882_v41, 1  ;;  %v11957_v33 = vshrl.u32 %v11865_v36, 16  ;;  %v5880_v48 = vor.u32 %v5878_v19, %v11148_v24  ;;  %v5007_v40 = vsel %vm1904_vm0, %v10803_v20, %v5006_v51 }
 0x214   : > { %v2578_v57 = vrot.slane %v2576_v18, 1  ;;  %v2580_v21 = vshrl.u32 %v11954_v13, 16  ;;  %v7134_v29 = vcombine.low %v10991_v30, %v11011_v61  ;;  %v5020_v7 = vrot.slane %v5018_v16, 3  ;;  %8453 = vmatmul.mubr.bf16.gmra.mrb[24].mxu1 %v5007_v40  ;;  %v11959_v18 = vld [vmem:[#allocation41_spill] sm:$0xff] }
 0x215   : > { %v2574_v60 = vor.u32 %v11957_v33, %v10824_v8  ;;  %v5023_v6 = vrot.slane %v5021_v52, 4  ;;  %v7135_v3 = vcombine.low %v11003_v39, %v11027_v15  ;;  %v11167_v36 = vsel %vm2447_vm1, %v5880_v48, %v11152_v28 }
 0x216   : > { %11958 = vst [vmem:[#allocation28_spill] sm:$0xff] %v11167_v36  ;;  %v5016_v8 = vsel %vm1904_vm0, %v5006_v51, %v5015_v32  ;;  %v2586_v33 = vrot.slane %v2584_v12, 1  ;;  %v5029_v20 = vrot.slane %v5027_v1, 3  ;;  %v5032_v10 = vrot.slane %v5030_v54, 4  ;;  %v11960_v12 = vld [vmem:[#allocation44_spill] sm:$0xff] }
 0x217   : > { %8456 = vmatprep.mubr.bf16.mxu1 %v5016_v8  ;;  %v2582_v13 = vor.u32 %v2580_v21, %v2578_v57  ;;  %v2592_v41 = vshll.u32 %v11959_v18, 16  ;;  %v5036_v30 = vshrl.u32 %v7134_v29, 16  ;;  %v5039_v61 = vshll.u32 %v7134_v29, 16 }
 0x218   : > { %v2579_v16 = vsel %vm2447_vm1, %v2574_v60, %v2578_v57  ;;  %v5024_v52 = vor.u32 %v5023_v6, %v5020_v7  ;;  %v5045_v39 = vshrl.u32 %v7135_v3, 16  ;;  %v5048_v15 = vshll.u32 %v7135_v3, 16 }
 0x219   : > { %8201 = vmatmul.mubr.bf16.gmra.mrb[76].mxu0 %v2579_v16  ;;  %v2587_v19 = vsel %vm2447_vm1, %v2582_v13, %v2586_v33  ;;  %v5033_v48 = vor.u32 %v5032_v10, %v5029_v20  ;;  %v2588_v51 = vshrl.u32 %v11956_v4, 16  ;;  %v2600_v1 = vshll.u32 %v11960_v12, 16 }
 0x21a   : > { %8204 = vmatprep.mubr.bf16.mxu0 %v2587_v19  ;;  %v2594_v40 = vrot.slane %v2592_v41, 1  ;;  %v5038_v21 = vrot.slane %v5036_v30, 3  ;;  %v5041_v8 = vrot.slane %v5039_v61, 4  ;;  %v5025_v29 = vsel %vm1904_vm0, %v5015_v32, %v5024_v52  ;;  %v11962_v32 = vld [vmem:[#allocation48_spill] sm:$0xff] }
 0x21b   : > { %v2590_v54 = vor.u32 %v2588_v51, %v2586_v33  ;;  %v5047_v36 = vrot.slane %v5045_v39, 3  ;;  %v5050_v60 = vrot.slane %v5048_v15, 4  ;;  %v7136_v57 = vcombine.low %v11029_v42, %v11037_v44  ;;  %v11961_v33 = vld [vmem:[#allocation46_spill] sm:$0xff] }
 0x21c   : > { %8457 = vmatmul.mubr.bf16.gmra.mrb[28].mxu1 %v5025_v29  ;;  %v5034_v7 = vsel %vm1904_vm0, %v5024_v52, %v5033_v48  ;;  %v2596_v6 = vshrl.u32 %v11959_v18, 16  ;;  %v2602_v4 = vrot.slane %v2600_v1, 1  ;;  %v7137_v3 = vcombine.low %v11039_v27, %v11066_v50  ;;  %v2426_v50 = vld [vmem:[#allocation2 + $0xc0] sm:$0xf]  ;;  %v11187_v15 = vld [vmem:[#allocation2 + $0xd4] sm:$0xf] }
 0x21d   : > { %8460 = vmatprep.mubr.bf16.mxu1 %v5034_v7  ;;  %v2608_v20 = vshll.u32 %v11961_v33, 16  ;;  %v5042_v13 = vor.u32 %v5041_v8, %v5038_v21  ;;  %v2616_v41 = vshll.u32 %v11962_v32, 16  ;;  %v2595_v30 = vsel %vm2447_vm1, %v2590_v54, %v2594_v40 }
 0x21e   : > { %v2598_v10 = vor.u32 %v2596_v6, %v2594_v40  ;;  %v5051_v61 = vor.u32 %v5050_v60, %v5047_v36  ;;  %v5054_v42 = vshrl.u32 %v7136_v57, 16  ;;  %v5057_v44 = vshll.u32 %v7136_v57, 16  ;;  %v9254_v60 = vld [vmem:[#allocation2 + $0xbc] sm:$0xf] }
 0x21f   : > { %v2604_v18 = vshrl.u32 %v11960_v12, 16  ;;  %v5063_v52 = vshrl.u32 %v7137_v3, 16  ;;  %v5066_v39 = vshll.u32 %v7137_v3, 16  ;;  %v2610_v27 = vrot.slane %v2608_v20, 1  ;;  %v11963_v3 = vld [vmem:[#allocation51_spill] sm:$0xff] }
 0x220   : > { %v2603_v16 = vsel %vm2447_vm1, %v2598_v10, %v2602_v4  ;;  %v5043_v19 = vsel %vm1904_vm0, %v5033_v48, %v5042_v13  ;;  %v2612_v1 = vshrl.u32 %v11961_v33, 16  ;;  %v2618_v36 = vrot.slane %v2616_v41, 1  ;;  %v11199_v20 = vld [vmem:[#allocation2 + $0xd8] sm:$0x7] }
 0x221   : > { %8205 = vmatmul.mubr.bf16.gmra.mrb[80].mxu0 %v2595_v30  ;;  %v2606_v51 = vor.u32 %v2604_v18, %v2602_v4  ;;  %v5052_v54 = vsel %vm1904_vm0, %v5042_v13, %v5051_v61  ;;  %v5056_v40 = vrot.slane %v5054_v42, 3  ;;  %v5059_v21 = vrot.slane %v5057_v44, 4 }
 0x222   : > { %8208 = vmatprep.mubr.bf16.mxu0 %v2603_v16  ;;  %v7138_v12 = vcombine.low %v11088_v26, %v11054_v43  ;;  %v5065_v8 = vrot.slane %v5063_v52, 3  ;;  %v5068_v29 = vrot.slane %v5066_v39, 4  ;;  %v6969_v57 = vcombine.low %v9254_v60, %v2426_v50 }
 0x223   : > { %v7139_v7 = vcombine.low %v11056_v46, %v11187_v15  ;;  %v2614_v48 = vor.u32 %v2612_v1, %v2610_v27  ;;  %v2611_v6 = vsel %vm2447_vm1, %v2606_v51, %v2610_v27  ;;  %v2620_v4 = vshrl.u32 %v11962_v32, 16 }
 0x224   : > { %8461 = vmatmul.mubr.bf16.gmra.mrb[32].mxu1 %v5043_v19  ;;  %v2624_v33 = vshll.u32 %v11963_v3, 16  ;;  %v5060_v26 = vor.u32 %v5059_v21, %v5056_v40  ;;  %v5072_v10 = vshrl.u32 %v7138_v12, 16  ;;  %v5075_v13 = vshll.u32 %v7138_v12, 16 }
 0x225   : > { %8464 = vmatprep.mubr.bf16.mxu1 %v5052_v54  ;;  %v2619_v43 = vsel %vm2447_vm1, %v2614_v48, %v2618_v36  ;;  %v5069_v41 = vor.u32 %v5068_v29, %v5065_v8  ;;  %v2632_v30 = vshll.u32 %v6969_v57, 16  ;;  %v5081_v42 = vshrl.u32 %v7139_v7, 16 }
 0x226   : > { %v5084_v46 = vshll.u32 %v7139_v7, 16  ;;  %v7140_v44 = vcombine.low %v11199_v20, %v11199_v20  ;;  %v2622_v16 = vor.u32 %v2620_v4, %v2618_v36  ;;  %v2626_v32 = vrot.slane %v2624_v33, 1 }
 0x227   : > { %v5061_v18 = vsel %vm1904_vm0, %v5051_v61, %v5060_v26  ;;  %v2628_v52 = vshrl.u32 %v11963_v3, 16  ;;  %v5074_v39 = vrot.slane %v5072_v10, 3  ;;  %v5077_v27 = vrot.slane %v5075_v13, 4  ;;  %v9258_v13 = vld [vmem:[#allocation2 + $0x28] sm:$0xf] }
 0x228   : > { %v5070_v50 = vsel %vm1904_vm0, %v5060_v26, %v5069_v41  ;;  %v2634_v19 = vrot.slane %v2632_v30, 1  ;;  %v5083_v51 = vrot.slane %v5081_v42, 3  ;;  %v5086_v1 = vrot.slane %v5084_v46, 4  ;;  %v9256_v26 = vld [vmem:[#allocation2 + $0x20] sm:$0xf] }
 0x229   : > { %8209 = vmatmul.mubr.bf16.gmra.mrb[84].mxu0 %v2611_v6  ;;  %v5090_v54 = vshrl.u32 %v7140_v44, 16  ;;  %v5093_v40 = vshll.u32 %v7140_v44, 16  ;;  %v2630_v21 = vor.u32 %v2628_v52, %v2626_v32  ;;  %v2627_v12 = vsel %vm2447_vm1, %v2622_v16, %v2626_v32  ;;  %v9259_v30 = vld [vmem:[#allocation2 + $0x2c] sm:$0xf]  ;;  %v9260_v42 = vld [vmem:[#allocation2 + $0x30] sm:$0xf] }
 0x22a   : > { %8212 = vmatprep.mubr.bf16.mxu0 %v2619_v43  ;;  %v5078_v36 = vor.u32 %v5077_v27, %v5074_v39  ;;  %v5087_v8 = vor.u32 %v5086_v1, %v5083_v51  ;;  %v2636_v6 = vshrl.u32 %v6969_v57, 16  ;;  %v9255_v43 = vld [vmem:[#allocation2 + $0x1c] sm:$0xf]  ;;  %v9257_v57 = vld [vmem:[#allocation2 + $0x24] sm:$0xf]  ;;  %v11223_v46 = vcombine.low %v9259_v30, %v9260_v42  ;;  %v11975_v1 = vld [vmem:[#allocation9_spill] sm:$0xff] }
 0x22b   : > { %v2635_v61 = vsel %vm2447_vm1, %v2630_v21, %v2634_v19  ;;  %v5092_v29 = vrot.slane %v5090_v54, 3  ;;  %v5095_v60 = vrot.slane %v5093_v40, 4  ;;  %v11213_v10 = vcombine.low %v9255_v43, %v9256_v26  ;;  %v9264_v16 = vld [vmem:[#allocation2 + $0x58] sm:$0xf]  ;;  %v11966_v52 = vld [vmem:[#allocation12_spill] sm:$0xff]  ;;  %v11968_v27 = vld [vmem:[#allocation7_spill] sm:$0xff] }
 0x22c   : > { %8465 = vmatmul.mubr.bf16.gmra.mrb[36].mxu1 %v5061_v18  ;;  %v5079_v7 = vsel %vm1904_vm0, %v5069_v41, %v5078_v36  ;;  %v5088_v48 = vsel %vm1904_vm0, %v5078_v36, %v5087_v8  ;;  %v2638_v3 = vor.u32 %v2636_v6, %v2634_v19  ;;  %v11218_v41 = vcombine.low %v9257_v57, %v9258_v13  ;;  %v9251_v18 = vld [vmem:[%s11586_s4 + $0x238] sm:$0xff]   ;;  %v11967_v39 = vld [vmem:[#allocation20_spill] sm:$0xff]  ;;  %v11977_v40 = vld [vmem:[#allocation17_spill] sm:$0xff] }
 0x22d   : > { %8468 = vmatprep.mubr.bf16.mxu1 %v5070_v50  ;;  %v5096_v4 = vor.u32 %v5095_v60, %v5092_v29  ;;  %v11971_v50 = vld [vmem:[#allocation13_spill] sm:$0xff]  ;;  %v11972_v19 = vld [vmem:[#allocation22_spill] sm:$0xff]  ;;  %v11974_v51 = vld [vmem:[#allocation15_spill] sm:$0xff]  ;;  %v7188_v29 = vcombine.low %v11187_v15, %v11199_v20  ;;  %v5870_v6 = vshrl.u32 %v11223_v46, 16  ;;  %v5886_v20 = vshrl.u32 %v10977_v47, 16 }
 0x22e   : > { %v11976_v54 = vld [vmem:[#allocation11_spill] sm:$0xff]  ;;  %v5898_v57 = vshll.u32 %v10862_v62, 16  ;;  %v5902_v42 = vshrl.u32 %v10862_v62, 16 }
 0x22f   : > { %v5097_v33 = vsel %vm1904_vm0, %v5087_v8, %v5096_v4  ;;  %v11978_v21 = vld [vmem:[#allocation19_spill] sm:$0xff]  ;;  %v5851_v8 = vshrl.u32 %v11213_v10, 16  ;;  %v5862_v4 = vshrl.u32 %v11218_v41, 16 }
 0x230   : > { %v11980_v36 = vld [vmem:[#allocation23_spill] sm:$0xff]  ;;  %v5900_v30 = vrot.slane %v5898_v57, 1 }
 0x231   : > { %8213 = vmatmul.mubr.bf16.gmra.mrb[88].mxu0 %v2627_v12  ;;  %v11979_v12 = vld [vmem:[#allocation25_spill] sm:$0xff] }
 0x232   : > { %8216 = vmatprep.mubr.bf16.mxu0 %v2635_v61  ;;  %v11981_v61 = vld [vmem:[#allocation21_spill] sm:$0xff] }
 0x234   : > { %8469 = vmatmul.mubr.bf16.gmra.mrb[40].mxu1 %v5079_v7 }
 0x235   : > { %8472 = vmatprep.mubr.bf16.mxu1 %v5088_v48 }
 0x239   : > { %8217 = vmatmul.mubr.bf16.gmra.mrb[92].mxu0 %v2638_v3 }
 0x23a   : > { %8236 = vmatprep.mubr.bf16.mxu0 %v10809_v23  ;;  %v9227_v23 = vld [vmem:[%s11586_s4 + $0x208] sm:$0xff]  }
 0x23c   : > { %8473 = vmatmul.mubr.bf16.gmra.mrb[44].mxu1 %v5097_v33 }
 0x23d   : > { %8492 = vmatprep.mubr.bf16.mxu1 %v11213_v10 }
 0x241   : > { %8237 = vmatmul.mubr.bf16.vlgmr.msra.gmra.mrb[48].mxu0 %v10812_v22  ;;  %v9230_v22 = vld [vmem:[%s11586_s4 + $0x210] sm:$0xff]  }
 0x242   : > { %8240 = vmatprep.mubr.bf16.mxu0 %v10829_v0  ;;  %v9235_v0 = vld [vmem:[%s11586_s4 + $0x218] sm:$0xff]  }
 0x244   : > { %8493 = vmatmul.mubr.bf16.vlgmr.msra.gmra.mrb[0].mxu1 %v11218_v41 }
 0x245   : > { %8541 = vmatpush3.bf16.msra.mxu1 %v10963_v58  ;;  %8496 = vmatprep.mubr.bf16.mxu1 %v11223_v46  ;;  %v9238_v58 = vld [vmem:[%s11586_s4 + $0x220] sm:$0xff]  }
 0x246   : > { %8542 = vmatprep.subr.bf16.mxu1 %v9227_v23 }
 0x249   : > { %8241 = vmatmul.mubr.bf16.gmra.mrb[52].mxu0 %v10855_v37  ;;  %8543 = vmatpush3.bf16.msra.mxu1 %v9227_v23  ;;  %v9261_v37 = vld [vmem:[#allocation2 + $0x44] sm:$0xf] }
 0x24a   : > { %8244 = vmatprep.mubr.bf16.mxu0 %v10858_v63  ;;  %8544 = vmatprep.subr.bf16.mxu1 %v9230_v22  ;;  %v9262_v63 = vld [vmem:[#allocation2 + $0x48] sm:$0xf] }
 0x24b   : > { %v11243_v44 = vcombine.low %v9261_v37, %v9262_v63  ;;  %v11982_v23 = vld [vmem:[#allocation28_spill] sm:$0xff] }
 0x24c   : > { %8497 = vmatmul.mubr.bf16.gmra.mrb[4].mxu1 %v10952_v56  ;;  %v9243_v56 = vld [vmem:[%s11586_s4 + $0x228] sm:$0xff]  }
 0x24d   : > { %8500 = vmatprep.mubr.bf16.mxu1 %v10977_v47  ;;  %8545 = vmatpush3.bf16.msra.mxu1 %v9230_v22  ;;  %v5890_v26 = vshll.u32 %v11243_v44, 16  ;;  %v5904_v47 = vor.u32 %v5902_v42, %v5900_v30  ;;  %v5914_v22 = vshll.u32 %v10885_v34, 16 }
 0x24e   : > { %8546 = vmatprep.subr.bf16.mxu1 %v9235_v0 }
 0x24f   : > { %v5892_v13 = vrot.slane %v5890_v26, 1  ;;  %v5916_v63 = vrot.slane %v5914_v22, 1 }
 0x251   : > { %8245 = vmatmul.mubr.bf16.gmra.mrb[56].mxu0 %v10879_v59  ;;  %8547 = vmatpush3.bf16.msra.mxu1 %v9235_v0  ;;  %v9246_v59 = vld [vmem:[%s11586_s4 + $0x230] sm:$0xff]  }
 0x252   : > { %8248 = vmatprep.mubr.bf16.mxu0 %v10894_v49  ;;  %8548 = vmatprep.subr.bf16.mxu1 %v9238_v58  ;;  %v9263_v49 = vld [vmem:[#allocation2 + $0x54] sm:$0xf] }
 0x253   : > { %v11255_v32 = vcombine.low %v9263_v49, %v9264_v16 }
 0x254   : > { %8501 = vmatmul.mubr.bf16.gmra.mrb[8].mxu1 %v11243_v44 }
 0x255   : > { %8504 = vmatprep.mubr.bf16.mxu1 %v10862_v62  ;;  %8549 = vmatpush3.bf16.msra.mxu1 %v9238_v58  ;;  %v5922_v62 = vshll.u32 %v10917_v31, 16 }
 0x256   : > { %8550 = vmatprep.subr.bf16.mxu1 %v9243_v56 }
 0x259   : > { %8249 = vmatmul.mubr.bf16.gmra.mrb[60].mxu0 %v10913_v45  ;;  %8551 = vmatpush3.bf16.msra.mxu1 %v9243_v56  ;;  %v11964_v45 = vld [vmem:[#allocation16_spill] sm:$0xff]  ;;  %v5918_v56 = vshrl.u32 %v10885_v34, 16 }
 0x25a   : > { %8252 = vmatprep.mubr.bf16.mxu0 %v10923_v38  ;;  %8552 = vmatprep.subr.bf16.mxu1 %v9246_v59  ;;  %v11965_v38 = vld [vmem:[#allocation10_spill] sm:$0xff] }
 0x25b   : > { %v5920_v49 = vor.u32 %v5918_v56, %v5916_v63 }
 0x25c   : > { %8505 = vmatmul.mubr.bf16.gmra.mrb[12].mxu1 %v11255_v32 }
 0x25d   : > { %8508 = vmatprep.mubr.bf16.mxu1 %v10885_v34  ;;  %8553 = vmatpush3.bf16.msra.mxu1 %v9246_v59  ;;  %v5910_v59 = vshrl.u32 %v11255_v32, 16  ;;  %v5938_v34 = vshll.u32 %v11965_v38, 16 }
 0x25e   : > { %8554 = vmatprep.subr.bf16.mxu1 %v9251_v18 }
 0x261   : > { %8253 = vmatmul.mubr.bf16.gmra.mrb[64].mxu0 %v10940_v17  ;;  %8555 = vmatpush3.bf16.msra.mxu1 %v9251_v18  ;;  %v11969_v17 = vld [vmem:[#allocation14_spill] sm:$0xff]  ;;  %v5924_v18 = vrot.slane %v5922_v62, 1 }
 0x262   : > { %8256 = vmatprep.mubr.bf16.mxu0 %v10943_v35  ;;  %v11970_v35 = vld [vmem:[#allocation18_spill] sm:$0xff] }
 0x264   : > { %8509 = vmatmul.mubr.bf16.gmra.mrb[16].mxu1 %v10917_v31 }
 0x265   : > { %8512 = vmatprep.mubr.bf16.mxu1 %v10934_v5 }
 0x269   : > { %8257 = vmatmul.mubr.bf16.gmra.mrb[68].mxu0 %v10980_v25  ;;  %v11973_v25 = vld [vmem:[#allocation4_spill] sm:$0xff] }
 0x26a   : > { %8260 = vmatprep.mubr.bf16.mxu0 %v11964_v45 }
 0x26c   : > { %8513 = vmatmul.mubr.bf16.gmra.mrb[20].mxu1 %v11965_v38 }
 0x26d   : > { %8516 = vmatprep.mubr.bf16.mxu1 %v11966_v52 }
 0x271   : > { %8261 = vmatmul.mubr.bf16.gmra.mrb[72].mxu0 %v11967_v39  ;;  %v5925_v39 = vsel %vm2447_vm1, %v5920_v49, %v5924_v18  ;;  %v5829_v49 = vld [vmem:[#allocation2 + $0xd8] sm:$0xf] }
 0x272   : > { %8264 = vmatprep.mubr.bf16.mxu0 %v11968_v27 }
 0x274   : > { %8517 = vmatmul.mubr.bf16.gmra.mrb[24].mxu1 %v11969_v17 }
 0x275   : > { %8520 = vmatprep.mubr.bf16.mxu1 %v11970_v35 }
 0x279   : > { %8265 = vmatmul.mubr.bf16.gmra.mrb[76].mxu0 %v11971_v50  ;;  %v5934_v50 = vshrl.u32 %v10934_v5, 16 }
 0x27a   : > { %8268 = vmatprep.mubr.bf16.mxu0 %v11062_v9  ;;  %v5853_v9 = vshll.u32 %v11213_v10, 16  ;;  %v5888_v10 = vor.u32 %v5886_v20, %v11152_v28 }
 0x27c   : > { %8521 = vmatmul.mubr.bf16.gmra.mrb[28].mxu1 %v11972_v19 }
 0x27d   : > { %8524 = vmatprep.mubr.bf16.mxu1 %v11973_v25 }
 0x281   : > { %8269 = vmatmul.mubr.bf16.gmra.mrb[80].mxu0 %v11974_v51  ;;  %v5926_v51 = vshrl.u32 %v10917_v31, 16  ;;  %v5962_v31 = vshll.u32 %v11970_v35, 16 }
 0x282   : > { %8272 = vmatprep.mubr.bf16.mxu0 %v11091_v14  ;;  %v5855_v14 = vrot.slane %v5853_v9, 1 }
 0x284   : > { %8525 = vmatmul.mubr.bf16.gmra.mrb[32].mxu1 %v11975_v1  ;;  %v5856_v60 = vor.u32 %v5855_v14, %v5851_v8  ;;  %v5940_v14 = vrot.slane %v5938_v34, 1 }
 0x285   : > { %8528 = vmatprep.mubr.bf16.mxu1 %v11976_v54 }
 0x289   : > { %8273 = vmatmul.mubr.bf16.gmra.mrb[84].mxu0 %v11109_v55  ;;  %v5858_v55 = vshll.u32 %v11218_v41, 16  ;;  %v5893_v41 = vsel %vm2447_vm1, %v5888_v10, %v5892_v13 }
 0x28a   : > { %8276 = vmatprep.mubr.bf16.mxu0 %v11112_v2  ;;  %v5866_v2 = vshll.u32 %v11223_v46, 16  ;;  %v5894_v46 = vshrl.u32 %v11243_v44, 16  ;;  %v5930_v44 = vshll.u32 %v10934_v5, 16  ;;  %v5954_v5 = vshll.u32 %v11969_v17, 16 }
 0x28c   : > { %8529 = vmatmul.mubr.bf16.gmra.mrb[36].mxu1 %v11977_v40  ;;  %v5868_v7 = vrot.slane %v5866_v2, 1  ;;  %v5896_v0 = vor.u32 %v5894_v46, %v5892_v13  ;;  %v5932_v27 = vrot.slane %v5930_v44, 1  ;;  %v6014_v44 = vshrl.u32 %v11978_v21, 16 }
 0x28d   : > { %8532 = vmatprep.mubr.bf16.mxu1 %v11978_v21 }
 0x28e   : > { %v5872_v3 = vor.u32 %v5870_v6, %v5868_v7  ;;  %v5901_v58 = vsel %vm2447_vm1, %v5896_v0, %v5900_v30  ;;  %v5936_v9 = vor.u32 %v5934_v50, %v5932_v27  ;;  %v5998_v0 = vshrl.u32 %v11976_v54, 16 }
 0x291   : > { %8277 = vmatmul.mubr.bf16.gmra.mrb[88].mxu0 %v11132_v11  ;;  %v5860_v11 = vrot.slane %v5858_v55, 1  ;;  %v5941_v55 = vsel %vm2447_vm1, %v5936_v9, %v5940_v14 }
 0x292   : > { %8280 = vmatprep.mubr.bf16.mxu0 %v11979_v12  ;;  %v5928_v12 = vor.u32 %v5926_v51, %v5924_v18  ;;  %v6026_v18 = vshll.u32 %v11981_v61, 16 }
 0x293   : > { %v5861_v48 = vsel %vm2447_vm1, %v5856_v60, %v5860_v11  ;;  %v5864_v33 = vor.u32 %v5862_v4, %v5860_v11  ;;  %v5942_v60 = vshrl.u32 %v11965_v38, 16  ;;  %v5978_v38 = vshll.u32 %v11973_v25, 16 }
 0x294   : > { %8533 = vmatmul.mubr.bf16.gmra.mrb[40].mxu1 %v11980_v36  ;;  %v5933_v8 = vsel %vm2447_vm1, %v5928_v12, %v5932_v27  ;;  %v6028_v51 = vrot.slane %v6026_v18, 1 }
 0x295   : > { %8536 = vmatprep.mubr.bf16.mxu1 %v11981_v61  ;;  %v5869_v43 = vsel %vm2447_vm1, %v5864_v33, %v5868_v7  ;;  %v5944_v7 = vor.u32 %v5942_v60, %v5940_v14  ;;  %v5966_v33 = vshrl.u32 %v11970_v35, 16  ;;  %v5980_v13 = vrot.slane %v5978_v38, 1 }
 0x296   : > { %v5986_v35 = vshll.u32 %v11975_v1, 16 }
 0x299   : > { %8281 = vmatmul.mubr.bf16.gmra.mrb[92].mxu0 %v11146_v53  ;;  %v5877_v53 = vsel %vm2447_vm1, %v5872_v3, %v11148_v24  ;;  %v5906_v24 = vshll.u32 %v11255_v32, 16  ;;  %v5946_v32 = vshll.u32 %v11966_v52, 16  ;;  %v5964_v3 = vrot.slane %v5962_v31, 1 }
 0x29b   : > { %v5908_v28 = vrot.slane %v5906_v24, 1  ;;  %v5948_v2 = vrot.slane %v5946_v32, 1  ;;  %v5988_v24 = vrot.slane %v5986_v35, 1  ;;  %v6030_v32 = vshrl.u32 %v11981_v61, 16 }
 0x29c   : > { %8537 = vmatmul.mubr.bf16.gmra.mrb[44].mxu1 %v7188_v29  ;;  %v5950_v29 = vshrl.u32 %v11966_v52, 16  ;;  %v5970_v52 = vshll.u32 %v11972_v19, 16 }
 0x29d   : > { %8556 = vmatprep.mubr.bf16.mxu1 %v5861_v48  ;;  %v5909_v37 = vsel %vm2447_vm1, %v5904_v47, %v5908_v28  ;;  %v5912_v16 = vor.u32 %v5910_v59, %v5908_v28  ;;  %v5956_v48 = vrot.slane %v5954_v5, 1  ;;  %v5949_v6 = vsel %vm2447_vm1, %v5944_v7, %v5948_v2 }
 0x29e   : > { %v5952_v11 = vor.u32 %v5950_v29, %v5948_v2  ;;  %v5972_v26 = vrot.slane %v5970_v52, 1  ;;  %v5990_v28 = vshrl.u32 %v11975_v1, 16  ;;  %v6032_v12 = vor.u32 %v6030_v32, %v6028_v51 }
 0x29f   : > { %v5917_v45 = vsel %vm2447_vm1, %v5912_v16, %v5916_v63  ;;  %v6006_v16 = vshrl.u32 %v11977_v40, 16 }
 0x2a0   : > { %v5957_v4 = vsel %vm2447_vm1, %v5952_v11, %v5956_v48 }
 0x2a4   : > { %8557 = vmatmul.mubr.bf16.vlgmr.msra.gmra.mrb[0].mxu1 %v5869_v43  ;;  %v5958_v43 = vshrl.u32 %v11969_v17, 16  ;;  %v5994_v17 = vshll.u32 %v11976_v54, 16  ;;  %v6018_v54 = vshll.u32 %v11980_v36, 16 }
 0x2a5   : > { %8560 = vmatprep.mubr.bf16.mxu1 %v5877_v53  ;;  %v5968_v53 = vor.u32 %v5966_v33, %v5964_v3 }
 0x2a6   : > { %v5960_v20 = vor.u32 %v5958_v43, %v5956_v48  ;;  %v5996_v22 = vrot.slane %v5994_v17, 1  ;;  %v6020_v27 = vrot.slane %v6018_v54, 1 }
 0x2a7   : > { %v5973_v57 = vsel %vm2447_vm1, %v5968_v53, %v5972_v26 }
 0x2a8   : > { %v5965_v10 = vsel %vm2447_vm1, %v5960_v20, %v5964_v3 }
 0x2ac   : > { %8561 = vmatmul.mubr.bf16.gmra.mrb[4].mxu1 %v11982_v23  ;;  %v5982_v23 = vshrl.u32 %v11973_v25, 16  ;;  %v6002_v25 = vshll.u32 %v11977_v40, 16 }
 0x2ad   : > { %8564 = vmatprep.mubr.bf16.mxu1 %v5893_v41  ;;  %v5974_v41 = vshrl.u32 %v11972_v19, 16  ;;  %v6010_v19 = vshll.u32 %v11978_v21, 16  ;;  %v6022_v21 = vshrl.u32 %v11980_v36, 16 }
 0x2ae   : > { %v5984_v30 = vor.u32 %v5982_v23, %v5980_v13  ;;  %v6004_v63 = vrot.slane %v6002_v25, 1 }
 0x2af   : > { %v5976_v42 = vor.u32 %v5974_v41, %v5972_v26  ;;  %v6012_v59 = vrot.slane %v6010_v19, 1  ;;  %v6024_v40 = vor.u32 %v6022_v21, %v6020_v27 }
 0x2b0   : > { %v5989_v47 = vsel %vm2447_vm1, %v5984_v30, %v5988_v24 }
 0x2b1   : > { %v5981_v46 = vsel %vm2447_vm1, %v5976_v42, %v5980_v13  ;;  %v6016_v1 = vor.u32 %v6014_v44, %v6012_v59 }
 0x2b3   : > { %v6021_v34 = vsel %vm2447_vm1, %v6016_v1, %v6020_v27 }
 0x2b4   : > { %8565 = vmatmul.mubr.bf16.gmra.mrb[8].mxu1 %v5901_v58  ;;  %v6000_v58 = vor.u32 %v5998_v0, %v5996_v22 }
 0x2b5   : > { %8568 = vmatprep.mubr.bf16.mxu1 %v5909_v37  ;;  %v5992_v37 = vor.u32 %v5990_v28, %v5988_v24 }
 0x2b6   : > { %v6005_v62 = vsel %vm2447_vm1, %v6000_v58, %v6004_v63 }
 0x2b7   : > { %v5997_v56 = vsel %vm2447_vm1, %v5992_v37, %v5996_v22 }
 0x2bc   : > { %8569 = vmatmul.mubr.bf16.gmra.mrb[12].mxu1 %v5917_v45  ;;  %v7213_v45 = vcombine.low %v11187_v15, %v5829_v49 }
 0x2bd   : > { %8572 = vmatprep.mubr.bf16.mxu1 %v5925_v39  ;;  %v6008_v39 = vor.u32 %v6006_v16, %v6004_v63 }
 0x2be   : > { %v6034_v9 = vshll.u32 %v7213_v45, 16 }
 0x2bf   : > { %v6013_v50 = vsel %vm2447_vm1, %v6008_v39, %v6012_v59  ;;  %v11453_v39 = vld [vmem:[%s11587_s5] ss:$0 sm:$0xff] }
 0x2c0   : > { %v6036_v14 = vrot.slane %v6034_v9, 1 }
 0x2c2   : > { %v6037_v15 = vsel %vm2447_vm1, %v6032_v12, %v6036_v14 }
 0x2c4   : > { %8573 = vmatmul.mubr.bf16.gmra.mrb[16].mxu1 %v5933_v8  ;;  %v6029_v8 = vsel %vm2447_vm1, %v6024_v40, %v6028_v51 }
 0x2c5   : > { %8576 = vmatprep.mubr.bf16.mxu1 %v5941_v55  ;;  %v6038_v55 = vshrl.u32 %v7213_v45, 16 }
 0x2c7   : > { %v6040_v2 = vor.u32 %v6038_v55, %v6036_v14 }
 0x2cc   : > { %8577 = vmatmul.mubr.bf16.gmra.mrb[20].mxu1 %v5949_v6 }
 0x2cd   : > { %8580 = vmatprep.mubr.bf16.mxu1 %v5957_v4 }
 0x2d4   : > { %8581 = vmatmul.mubr.bf16.gmra.mrb[24].mxu1 %v5965_v10 }
 0x2d5   : > { %8584 = vmatprep.mubr.bf16.mxu1 %v5973_v57 }
 0x2dc   : > { %8585 = vmatmul.mubr.bf16.gmra.mrb[28].mxu1 %v5981_v46 }
 0x2dd   : > { %8588 = vmatprep.mubr.bf16.mxu1 %v5989_v47 }
 0x2e4   : > { %8589 = vmatmul.mubr.bf16.gmra.mrb[32].mxu1 %v5997_v56 }
 0x2e5   : > { %8592 = vmatprep.mubr.bf16.mxu1 %v6005_v62 }
 0x2ec   : > { %8593 = vmatmul.mubr.bf16.gmra.mrb[36].mxu1 %v6013_v50 }
 0x2ed   : > { %8596 = vmatprep.mubr.bf16.mxu1 %v6021_v34 }
 0x2f4   : > { %8597 = vmatmul.mubr.bf16.gmra.mrb[40].mxu1 %v6029_v8 }
 0x2f5   : > { %8600 = vmatprep.mubr.bf16.mxu1 %v6037_v15 }
 0x2fc   : > { %8601 = vmatmul.mubr.bf16.gmra.mrb[44].mxu1 %v6040_v2 }
 0x314   : > { %v8238_v29 = vpop.f32.mrb[48].mxu0 }
 0x315   : > { %v3503_v5 = vpop.f32.mrb[49].mxu0 }
 0x316   : > { %v8239_v60 = vpop.f32.mrb[50].mxu0 }
 0x317   : > { %v3506_v11 = vpop.f32.mrb[51].mxu0 }
 0x31c   : > { %v11362_v31 = vpop.f32.mrb[52].mxu0 }
 0x31d   : > { %v11364_v36 = vpop.f32.mrb[53].mxu0 }
 0x31e   : > { %v11366_v61 = vpop.f32.mrb[54].mxu0 }
 0x31f   : > { %v11368_v7 = vpop.f32.mrb[55].mxu0 }
 0x324   : > { %v11370_v48 = vpop.f32.mrb[56].mxu0 }
 0x325   : > { %v11372_v6 = vpop.f32.mrb[57].mxu0 }
 0x326   : > { %v11374_v4 = vpop.f32.mrb[58].mxu0 }
 0x327   : > { %v11376_v3 = vpop.f32.mrb[59].mxu0 }
 0x32c   : > { %v11378_v33 = vpop.f32.mrb[60].mxu0 }
 0x32d   : > { %v11380_v52 = vpop.f32.mrb[61].mxu0 }
 0x32e   : > { %v11382_v43 = vpop.f32.mrb[62].mxu0 }
 0x32f   : > { %v11384_v53 = vpop.f32.mrb[63].mxu0 }
 0x334   : > { %v11386_v38 = vpop.f32.mrb[64].mxu0 }
 0x335   : > { %v11388_v20 = vpop.f32.mrb[65].mxu0 }
 0x336   : > { %v11390_v26 = vpop.f32.mrb[66].mxu0 }
 0x337   : > { %v11392_v10 = vpop.f32.mrb[67].mxu0 }
 0x33c   : > { %v11394_v57 = vpop.f32.mrb[68].mxu0 }
 0x33d   : > { %v11396_v13 = vpop.f32.mrb[69].mxu0 }
 0x33e   : > { %v11398_v23 = vpop.f32.mrb[70].mxu0 }
 0x33f   : > { %v11400_v35 = vpop.f32.mrb[71].mxu0 }
 0x344   : > { %v11402_v41 = vpop.f32.mrb[72].mxu0 }
 0x345   : > { %v11404_v30 = vpop.f32.mrb[73].mxu0 }
 0x346   : > { %v11406_v17 = vpop.f32.mrb[74].mxu0 }
 0x347   : > { %v11408_v42 = vpop.f32.mrb[75].mxu0 }
 0x34c   : > { %v11410_v24 = vpop.f32.mrb[76].mxu0 }
 0x34d   : > { %v11412_v46 = vpop.f32.mrb[77].mxu0 }
 0x34e   : > { %v11414_v47 = vpop.f32.mrb[78].mxu0 }
 0x34f   : > { %v11416_v22 = vpop.f32.mrb[79].mxu0 }
 0x354   : > { %v11418_v0 = vpop.f32.mrb[80].mxu0 }
 0x355   : > { %v11420_v25 = vpop.f32.mrb[81].mxu0 }
 0x356   : > { %v11422_v28 = vpop.f32.mrb[82].mxu0 }
 0x357   : > { %v11424_v58 = vpop.f32.mrb[83].mxu0 }
 0x35c   : > { %v11426_v19 = vpop.f32.mrb[84].mxu0 }
 0x35d   : > { %v11428_v37 = vpop.f32.mrb[85].mxu0 }
 0x35e   : > { %v11430_v63 = vpop.f32.mrb[86].mxu0 }
 0x35f   : > { %v11432_v56 = vpop.f32.mrb[87].mxu0 }
 0x364   : > { %v11434_v62 = vpop.f32.mrb[88].mxu0 }
 0x365   : > { %v11436_v59 = vpop.f32.mrb[89].mxu0 }
 0x366   : > { %v11438_v49 = vpop.f32.mrb[90].mxu0 }
 0x367   : > { %v11440_v44 = vpop.f32.mrb[91].mxu0 }
 0x36c   : > { %v11442_v54 = vpop.f32.mrb[92].mxu0 }
 0x36d   : > { %v11444_v16 = vpop.f32.mrb[93].mxu0 }
 0x36e   : > { %v11446_v1 = vpop.f32.mrb[94].mxu0 }
 0x36f   : > { %v11448_v18 = vpop.f32.mrb[95].mxu0 }
 0x377   : > { %v8558_v45 = vpop.f32.mrb[0].mxu1 }
 0x378   : > { %v8604_v27 = vadd.f32 %v8558_v45, %v8238_v29  ;;  %v6147_v50 = vpop.f32.mrb[1].mxu1 }
 0x379   : > { %v8605_v34 = vadd.f32 %v6147_v50, %v3503_v5  ;;  %v8559_v51 = vpop.f32.mrb[2].mxu1 }
 0x37a   : > { %v6395_v9 = vadd.f32 %v8604_v27, %v11453_v39  ;;  %v8606_v21 = vadd.f32 %v8559_v51, %v8239_v60  ;;  %v6150_v32 = vpop.f32.mrb[3].mxu1 }
 0x37b   : > { %v6393_v40 = vadd.f32 %v8605_v34, %v11453_v39  ;;  %v8607_v12 = vadd.f32 %v6150_v32, %v3506_v11 }
 0x37c   : > { %v6396_v14 = vadd.f32 %v8606_v21, %v11453_v39  ;;  %v6443_v15 = vmax.f32 %v6395_v9, 0.0 }
 0x37d   : > { %v6394_v8 = vadd.f32 %v8607_v12, %v11453_v39  ;;  %v6441_v2 = vmax.f32 %v6393_v40, 0.0 }
 0x37e   : > { %v6444_v55 = vmax.f32 %v6396_v14, 0.0 }
 0x37f   : > { %v6442_v29 = vmax.f32 %v6394_v8, 0.0  ;;  %v8562_v5 = vpop.f32.mrb[4].mxu1 }
 0x380   : > { %v7492_v60 = vpack.c.bf16 %v6444_v55, %v6443_v15  ;;  %v8608_v11 = vadd.f32 %v8562_v5, %v11362_v31  ;;  %v6163_v45 = vpop.f32.mrb[5].mxu1 }
 0x381   : > { %v7487_v27 = vpack.c.bf16 %v6442_v29, %v6441_v2  ;;  %v8609_v50 = vadd.f32 %v6163_v45, %v11364_v36  ;;  %v8563_v34 = vpop.f32.mrb[6].mxu1 }
 0x382   : > { %7622 = vst [vmem:[%s11464_s20 + $0x8] sm:$0xff] %v7492_v60   ;;  %v6399_v51 = vadd.f32 %v8608_v11, %v11453_v39  ;;  %v8610_v9 = vadd.f32 %v8563_v34, %v11366_v61  ;;  %v6166_v21 = vpop.f32.mrb[7].mxu1 }
 0x383   : > { %7488 = vst [vmem:[%s11464_s20] sm:$0xff] %v7487_v27   ;;  %v6397_v32 = vadd.f32 %v8609_v50, %v11453_v39  ;;  %v8611_v40 = vadd.f32 %v6166_v21, %v11368_v7 }
 0x384   : > { %v6400_v12 = vadd.f32 %v8610_v9, %v11453_v39  ;;  %v6447_v14 = vmax.f32 %v6399_v51, 0.0 }
 0x385   : > { %v6398_v31 = vadd.f32 %v8611_v40, %v11453_v39  ;;  %v6445_v8 = vmax.f32 %v6397_v32, 0.0 }
 0x386   : > { %v6448_v36 = vmax.f32 %v6400_v12, 0.0 }
 0x387   : > { %v6446_v15 = vmax.f32 %v6398_v31, 0.0  ;;  %v8566_v55 = vpop.f32.mrb[8].mxu1 }
 0x388   : > { %v7502_v2 = vpack.c.bf16 %v6448_v36, %v6447_v14  ;;  %v8612_v61 = vadd.f32 %v8566_v55, %v11370_v48  ;;  %v6179_v29 = vpop.f32.mrb[9].mxu1 }
 0x389   : > { %v7497_v5 = vpack.c.bf16 %v6446_v15, %v6445_v8  ;;  %v8613_v60 = vadd.f32 %v6179_v29, %v11372_v6  ;;  %v8567_v11 = vpop.f32.mrb[10].mxu1 }
 0x38a   : > { %7624 = vst [vmem:[%s11464_s20 + $0x18] sm:$0xff] %v7502_v2   ;;  %v6403_v7 = vadd.f32 %v8612_v61, %v11453_v39  ;;  %v8614_v45 = vadd.f32 %v8567_v11, %v11374_v4  ;;  %v6182_v27 = vpop.f32.mrb[11].mxu1 }
 0x38b   : > { %7623 = vst [vmem:[%s11464_s20 + $0x10] sm:$0xff] %v7497_v5   ;;  %v6401_v50 = vadd.f32 %v8613_v60, %v11453_v39  ;;  %v8615_v34 = vadd.f32 %v6182_v27, %v11376_v3 }
 0x38c   : > { %v6404_v51 = vadd.f32 %v8614_v45, %v11453_v39  ;;  %v6451_v9 = vmax.f32 %v6403_v7, 0.0 }
 0x38d   : > { %v6402_v48 = vadd.f32 %v8615_v34, %v11453_v39  ;;  %v6449_v21 = vmax.f32 %v6401_v50, 0.0 }
 0x38e   : > { %v6452_v6 = vmax.f32 %v6404_v51, 0.0 }
 0x38f   : > { %v6450_v32 = vmax.f32 %v6402_v48, 0.0  ;;  %v8570_v40 = vpop.f32.mrb[12].mxu1 }
 0x390   : > { %v7512_v12 = vpack.c.bf16 %v6452_v6, %v6451_v9  ;;  %v8616_v4 = vadd.f32 %v8570_v40, %v11378_v33  ;;  %v6195_v31 = vpop.f32.mrb[13].mxu1 }
 0x391   : > { %v7507_v14 = vpack.c.bf16 %v6450_v32, %v6449_v21  ;;  %v8617_v36 = vadd.f32 %v6195_v31, %v11380_v52  ;;  %v8571_v8 = vpop.f32.mrb[14].mxu1 }
 0x392   : > { %7626 = vst [vmem:[%s11464_s20 + $0x28] sm:$0xff] %v7512_v12   ;;  %v6407_v3 = vadd.f32 %v8616_v4, %v11453_v39  ;;  %v8618_v15 = vadd.f32 %v8571_v8, %v11382_v43  ;;  %v6198_v55 = vpop.f32.mrb[15].mxu1 }
 0x393   : > { %7625 = vst [vmem:[%s11464_s20 + $0x20] sm:$0xff] %v7507_v14   ;;  %v6405_v2 = vadd.f32 %v8617_v36, %v11453_v39  ;;  %v8619_v61 = vadd.f32 %v6198_v55, %v11384_v53 }
 0x394   : > { %v6408_v29 = vadd.f32 %v8618_v15, %v11453_v39  ;;  %v6455_v5 = vmax.f32 %v6407_v3, 0.0 }
 0x395   : > { %v6406_v33 = vadd.f32 %v8619_v61, %v11453_v39  ;;  %v6453_v60 = vmax.f32 %v6405_v2, 0.0 }
 0x396   : > { %v6456_v52 = vmax.f32 %v6408_v29, 0.0 }
 0x397   : > { %v6454_v11 = vmax.f32 %v6406_v33, 0.0  ;;  %v8574_v7 = vpop.f32.mrb[16].mxu1 }
 0x398   : > { %v7522_v45 = vpack.c.bf16 %v6456_v52, %v6455_v5  ;;  %v8620_v43 = vadd.f32 %v8574_v7, %v11386_v38  ;;  %v6211_v27 = vpop.f32.mrb[17].mxu1 }
 0x399   : > { %v7517_v50 = vpack.c.bf16 %v6454_v11, %v6453_v60  ;;  %v8621_v34 = vadd.f32 %v6211_v27, %v11388_v20  ;;  %v8575_v51 = vpop.f32.mrb[18].mxu1 }
 0x39a   : > { %7628 = vst [vmem:[%s11464_s20 + $0x38] sm:$0xff] %v7522_v45   ;;  %v6411_v53 = vadd.f32 %v8620_v43, %v11453_v39  ;;  %v8622_v48 = vadd.f32 %v8575_v51, %v11390_v26  ;;  %v6214_v9 = vpop.f32.mrb[19].mxu1 }
 0x39b   : > { %7627 = vst [vmem:[%s11464_s20 + $0x30] sm:$0xff] %v7517_v50   ;;  %v6409_v6 = vadd.f32 %v8621_v34, %v11453_v39  ;;  %v8623_v21 = vadd.f32 %v6214_v9, %v11392_v10 }
 0x39c   : > { %v6412_v32 = vadd.f32 %v8622_v48, %v11453_v39  ;;  %v6459_v40 = vmax.f32 %v6411_v53, 0.0 }
 0x39d   : > { %v6410_v38 = vadd.f32 %v8623_v21, %v11453_v39  ;;  %v6457_v12 = vmax.f32 %v6409_v6, 0.0 }
 0x39e   : > { %v6460_v20 = vmax.f32 %v6412_v32, 0.0 }
 0x39f   : > { %v6458_v4 = vmax.f32 %v6410_v38, 0.0  ;;  %v8578_v31 = vpop.f32.mrb[20].mxu1 }
 0x3a0   : > { %v7532_v14 = vpack.c.bf16 %v6460_v20, %v6459_v40  ;;  %v8624_v26 = vadd.f32 %v8578_v31, %v11394_v57  ;;  %v6227_v36 = vpop.f32.mrb[21].mxu1 }
 0x3a1   : > { %v7527_v8 = vpack.c.bf16 %v6458_v4, %v6457_v12  ;;  %v8625_v3 = vadd.f32 %v6227_v36, %v11396_v13  ;;  %v8579_v15 = vpop.f32.mrb[22].mxu1 }
 0x3a2   : > { %7630 = vst [vmem:[%s11464_s20 + $0x48] sm:$0xff] %v7532_v14   ;;  %v6415_v10 = vadd.f32 %v8624_v26, %v11453_v39  ;;  %v8626_v55 = vadd.f32 %v8579_v15, %v11398_v23  ;;  %v6230_v2 = vpop.f32.mrb[23].mxu1 }
 0x3a3   : > { %7629 = vst [vmem:[%s11464_s20 + $0x40] sm:$0xff] %v7527_v8   ;;  %v6413_v61 = vadd.f32 %v8625_v3, %v11453_v39  ;;  %v8627_v29 = vadd.f32 %v6230_v2, %v11400_v35 }
 0x3a4   : > { %v6416_v33 = vadd.f32 %v8626_v55, %v11453_v39  ;;  %v6463_v5 = vmax.f32 %v6415_v10, 0.0 }
 0x3a5   : > { %v6414_v57 = vadd.f32 %v8627_v29, %v11453_v39  ;;  %v6461_v52 = vmax.f32 %v6413_v61, 0.0 }
 0x3a6   : > { %v6464_v13 = vmax.f32 %v6416_v33, 0.0 }
 0x3a7   : > { %v6462_v60 = vmax.f32 %v6414_v57, 0.0  ;;  %v8582_v11 = vpop.f32.mrb[24].mxu1 }
 0x3a8   : > { %v7542_v7 = vpack.c.bf16 %v6464_v13, %v6463_v5  ;;  %v8628_v23 = vadd.f32 %v8582_v11, %v11402_v41  ;;  %v6243_v45 = vpop.f32.mrb[25].mxu1 }
 0x3a9   : > { %v7537_v43 = vpack.c.bf16 %v6462_v60, %v6461_v52  ;;  %v8629_v27 = vadd.f32 %v6243_v45, %v11404_v30  ;;  %v8583_v50 = vpop.f32.mrb[26].mxu1 }
 0x3aa   : > { %7632 = vst [vmem:[%s11464_s20 + $0x58] sm:$0xff] %v7542_v7   ;;  %v6419_v35 = vadd.f32 %v8628_v23, %v11453_v39  ;;  %v8630_v34 = vadd.f32 %v8583_v50, %v11406_v17  ;;  %v6246_v51 = vpop.f32.mrb[27].mxu1 }
 0x3ab   : > { %7631 = vst [vmem:[%s11464_s20 + $0x50] sm:$0xff] %v7537_v43   ;;  %v6417_v53 = vadd.f32 %v8629_v27, %v11453_v39  ;;  %v8631_v48 = vadd.f32 %v6246_v51, %v11408_v42 }
 0x3ac   : > { %v6420_v9 = vadd.f32 %v8630_v34, %v11453_v39  ;;  %v6467_v6 = vmax.f32 %v6419_v35, 0.0 }
 0x3ad   : > { %v6418_v41 = vadd.f32 %v8631_v48, %v11453_v39  ;;  %v6465_v21 = vmax.f32 %v6417_v53, 0.0 }
 0x3ae   : > { %v6468_v30 = vmax.f32 %v6420_v9, 0.0 }
 0x3af   : > { %v6466_v32 = vmax.f32 %v6418_v41, 0.0  ;;  %v8586_v38 = vpop.f32.mrb[28].mxu1 }
 0x3b0   : > { %v7552_v40 = vpack.c.bf16 %v6468_v30, %v6467_v6  ;;  %v8632_v17 = vadd.f32 %v8586_v38, %v11410_v24  ;;  %v6259_v20 = vpop.f32.mrb[29].mxu1 }
 0x3b1   : > { %v7547_v12 = vpack.c.bf16 %v6466_v32, %v6465_v21  ;;  %v8633_v4 = vadd.f32 %v6259_v20, %v11412_v46  ;;  %v8587_v31 = vpop.f32.mrb[30].mxu1 }
 0x3b2   : > { %7634 = vst [vmem:[%s11464_s20 + $0x68] sm:$0xff] %v7552_v40   ;;  %v6423_v42 = vadd.f32 %v8632_v17, %v11453_v39  ;;  %v8634_v14 = vadd.f32 %v8587_v31, %v11414_v47  ;;  %v6262_v26 = vpop.f32.mrb[31].mxu1 }
 0x3b3   : > { %7633 = vst [vmem:[%s11464_s20 + $0x60] sm:$0xff] %v7547_v12   ;;  %v6421_v36 = vadd.f32 %v8633_v4, %v11453_v39  ;;  %v8635_v8 = vadd.f32 %v6262_v26, %v11416_v22 }
 0x3b4   : > { %v6424_v3 = vadd.f32 %v8634_v14, %v11453_v39  ;;  %v6471_v15 = vmax.f32 %v6423_v42, 0.0 }
 0x3b5   : > { %v6422_v24 = vadd.f32 %v8635_v8, %v11453_v39  ;;  %v6469_v10 = vmax.f32 %v6421_v36, 0.0 }
 0x3b6   : > { %v6472_v46 = vmax.f32 %v6424_v3, 0.0 }
 0x3b7   : > { %v6470_v55 = vmax.f32 %v6422_v24, 0.0  ;;  %v8590_v2 = vpop.f32.mrb[32].mxu1 }
 0x3b8   : > { %v7562_v61 = vpack.c.bf16 %v6472_v46, %v6471_v15  ;;  %v8636_v47 = vadd.f32 %v8590_v2, %v11418_v0  ;;  %v6275_v29 = vpop.f32.mrb[33].mxu1 }
 0x3b9   : > { %v7557_v33 = vpack.c.bf16 %v6470_v55, %v6469_v10  ;;  %v8637_v57 = vadd.f32 %v6275_v29, %v11420_v25  ;;  %v8591_v5 = vpop.f32.mrb[34].mxu1 }
 0x3ba   : > { %7636 = vst [vmem:[%s11464_s20 + $0x78] sm:$0xff] %v7562_v61   ;;  %v6427_v22 = vadd.f32 %v8636_v47, %v11453_v39  ;;  %v8638_v13 = vadd.f32 %v8591_v5, %v11422_v28  ;;  %v6278_v52 = vpop.f32.mrb[35].mxu1 }
 0x3bb   : > { %7635 = vst [vmem:[%s11464_s20 + $0x70] sm:$0xff] %v7557_v33   ;;  %v6425_v60 = vadd.f32 %v8637_v57, %v11453_v39  ;;  %v8639_v11 = vadd.f32 %v6278_v52, %v11424_v58 }
 0x3bc   : > { %v6428_v7 = vadd.f32 %v8638_v13, %v11453_v39  ;;  %v6475_v23 = vmax.f32 %v6427_v22, 0.0 }
 0x3bd   : > { %v6426_v0 = vadd.f32 %v8639_v11, %v11453_v39  ;;  %v6473_v45 = vmax.f32 %v6425_v60, 0.0 }
 0x3be   : > { %v6476_v25 = vmax.f32 %v6428_v7, 0.0 }
 0x3bf   : > { %v6474_v43 = vmax.f32 %v6426_v0, 0.0  ;;  %v8594_v27 = vpop.f32.mrb[36].mxu1 }
 0x3c0   : > { %v7572_v50 = vpack.c.bf16 %v6476_v25, %v6475_v23  ;;  %v8640_v28 = vadd.f32 %v8594_v27, %v11426_v19  ;;  %v6291_v35 = vpop.f32.mrb[37].mxu1 }
 0x3c1   : > { %v7567_v34 = vpack.c.bf16 %v6474_v43, %v6473_v45  ;;  %v8641_v51 = vadd.f32 %v6291_v35, %v11428_v37  ;;  %v8595_v53 = vpop.f32.mrb[38].mxu1 }
 0x3c2   : > { %7638 = vst [vmem:[%s11464_s20 + $0x88] sm:$0xff] %v7572_v50   ;;  %v6431_v58 = vadd.f32 %v8640_v28, %v11453_v39  ;;  %v8642_v48 = vadd.f32 %v8595_v53, %v11430_v63  ;;  %v6294_v9 = vpop.f32.mrb[39].mxu1 }
 0x3c3   : > { %7637 = vst [vmem:[%s11464_s20 + $0x80] sm:$0xff] %v7567_v34   ;;  %v6429_v41 = vadd.f32 %v8641_v51, %v11453_v39  ;;  %v8643_v6 = vadd.f32 %v6294_v9, %v11432_v56 }
 0x3c4   : > { %v6432_v30 = vadd.f32 %v8642_v48, %v11453_v39  ;;  %v6479_v21 = vmax.f32 %v6431_v58, 0.0 }
 0x3c5   : > { %v6430_v19 = vadd.f32 %v8643_v6, %v11453_v39  ;;  %v6477_v32 = vmax.f32 %v6429_v41, 0.0 }
 0x3c6   : > { %v6480_v37 = vmax.f32 %v6432_v30, 0.0 }
 0x3c7   : > { %v6478_v38 = vmax.f32 %v6430_v19, 0.0  ;;  %v8598_v40 = vpop.f32.mrb[40].mxu1 }
 0x3c8   : > { %v7582_v17 = vpack.c.bf16 %v6480_v37, %v6479_v21  ;;  %v8644_v63 = vadd.f32 %v8598_v40, %v11434_v62  ;;  %v6307_v20 = vpop.f32.mrb[41].mxu1 }
 0x3c9   : > { %v7577_v12 = vpack.c.bf16 %v6478_v38, %v6477_v32  ;;  %v8645_v4 = vadd.f32 %v6307_v20, %v11436_v59  ;;  %v8599_v31 = vpop.f32.mrb[42].mxu1 }
 0x3ca   : > { %7640 = vst [vmem:[%s11464_s20 + $0x98] sm:$0xff] %v7582_v17   ;;  %v6435_v56 = vadd.f32 %v8644_v63, %v11453_v39  ;;  %v8646_v42 = vadd.f32 %v8599_v31, %v11438_v49  ;;  %v6310_v14 = vpop.f32.mrb[43].mxu1 }
 0x3cb   : > { %7639 = vst [vmem:[%s11464_s20 + $0x90] sm:$0xff] %v7577_v12   ;;  %v6433_v26 = vadd.f32 %v8645_v4, %v11453_v39  ;;  %v8647_v36 = vadd.f32 %v6310_v14, %v11440_v44 }
 0x3cc   : > { %v6436_v8 = vadd.f32 %v8646_v42, %v11453_v39  ;;  %v6483_v3 = vmax.f32 %v6435_v56, 0.0 }
 0x3cd   : > { %v6434_v62 = vadd.f32 %v8647_v36, %v11453_v39  ;;  %v6481_v24 = vmax.f32 %v6433_v26, 0.0 }
 0x3ce   : > { %v6484_v59 = vmax.f32 %v6436_v8, 0.0 }
 0x3cf   : > { %v6482_v15 = vmax.f32 %v6434_v62, 0.0  ;;  %v8602_v46 = vpop.f32.mrb[44].mxu1 }
 0x3d0   : > { %v7592_v10 = vpack.c.bf16 %v6484_v59, %v6483_v3  ;;  %v8648_v49 = vadd.f32 %v8602_v46, %v11442_v54  ;;  %v6323_v55 = vpop.f32.mrb[45].mxu1 }
 0x3d1   : > { %v7587_v2 = vpack.c.bf16 %v6482_v15, %v6481_v24  ;;  %v8649_v61 = vadd.f32 %v6323_v55, %v11444_v16  ;;  %v8603_v47 = vpop.f32.mrb[46].mxu1 }
 0x3d2   : > { %7642 = vst [vmem:[%s11464_s20 + $0xa8] sm:$0xff] %v7592_v10   ;;  %v6439_v44 = vadd.f32 %v8648_v49, %v11453_v39  ;;  %v8650_v29 = vadd.f32 %v8603_v47, %v11446_v1  ;;  %v6326_v33 = vpop.f32.mrb[47].mxu1 }
 0x3d3   : > { %7641 = vst [vmem:[%s11464_s20 + $0xa0] sm:$0xff] %v7587_v2   ;;  %v6437_v57 = vadd.f32 %v8649_v61, %v11453_v39  ;;  %v8651_v5 = vadd.f32 %v6326_v33, %v11448_v18 }
 0x3d4   : > { %v6487_v54 = vmax.f32 %v6439_v44, 0.0  ;;  %v6440_v22 = vadd.f32 %v8650_v29, %v11453_v39 }
 0x3d5   : > { %v6438_v16 = vadd.f32 %v8651_v5, %v11453_v39  ;;  %v6485_v60 = vmax.f32 %v6437_v57, 0.0 }
 0x3d6   : > { %v7367_v13 = vpack.c.bf16 %v6487_v54, %v6487_v54  ;;  %v6488_v52 = vmax.f32 %v6440_v22, 0.0 }
 0x3d7   : > { %v6486_v11 = vmax.f32 %v6438_v16, 0.0 }
 0x3d8   : > { %6727 = vst [vmem:[%s11464_s20 + $0xb8] sm:$0xf] %v7367_v13  ;;  %v7368_v7 = vpack.c.bf16 %v6488_v52, %v6488_v52 }
 0x3d9   : > { %v7597_v0 = vpack.c.bf16 %v6486_v11, %v6485_v60 }
 0x3da   : > { %6728 = vst [vmem:[%s11464_s20 + $0xbc] sm:$0x7] %v7368_v7 }
 0x3db   : > { %7643 = vst [vmem:[%s11464_s20 + $0xb0] sm:$0xff] %v7597_v0  }
 0x3dc PF: > { %s16_s21 = sadd.s32 1, %s9271_s21  }
 0x3dd   : > { %p13_p4 = scmp.ge.s32.totalorder %s16_s21, 4  }
 0x3df   :  { %15 = sbr.rel (!%p13_p4) target bundleno = 1 (0x1), region = 82 }

</bundles_post_ra>
